<compile_context>
chip_gen: v6e
topology: v6e:2x2x1
jax: 0.10.0
libtpu: 0.0.40
codegen_flags: <defaults>
</compile_context>

<pallas_src>
import jax
import jax.numpy as jnp
from jax.experimental import pallas as pl
from jax.experimental.pallas import tpu as pltpu

EPS = 1e-5
L_SEQ = 59          # Flatten() must yield 118 = 2*L features for l7
L_PAD = 64          # positions padded to 64 (padded columns of tab are zero)
VOCAB = 21
VOCAB_PAD = 32      # vocab rows padded to a sublane multiple


def _layernorm(x, g, b):
    # two-pass mean/variance: matches torch.nn.LayerNorm / the reference
    mu = jnp.mean(x, axis=-1, keepdims=True)
    xc = x - mu
    var = jnp.mean(xc * xc, axis=-1, keepdims=True)
    return xc * jax.lax.rsqrt(var + EPS) * g + b


def _dense_relu(x, w_ref, b_ref):
    y = jnp.dot(x.astype(w_ref.dtype), w_ref[...],
                preferred_element_type=jnp.float32) + b_ref[...]
    return jnp.maximum(y, 0.0)


def fnnemb_kernel(ids_ref, emb_ref,
                  ln1g_ref, ln1b_ref,
                  w1_ref, b1_ref, w2_ref, b2_ref,
                  ln3g_ref, ln3b_ref,
                  w4_ref, b4_ref,
                  ln2g_ref, ln2b_ref,
                  w5_ref, b5_ref,
                  vdt_ref, beffd_ref,
                  out_ref, tab_ref):
    # ---- prologue (grid step 0 only): per-vocab-id MLP -> score table -----
    @pl.when(pl.program_id(0) == 0)
    def _():
        x = emb_ref[...]                                   # (32, 128): row v = id v
        x = _layernorm(x, ln1g_ref[...], ln1b_ref[...])    # layernorm1 (dropout = id.)
        x = _dense_relu(x, w1_ref, b1_ref)                 # (32, 256)
        x = _dense_relu(x, w2_ref, b2_ref)                 # (32, 1024)
        g3 = ln3g_ref[...]
        b3 = ln3b_ref[...]
        x = _layernorm(x, g3, b3)                          # batchnorm3 (LayerNorm 1024)
        x = _layernorm(x, g3, b3)                          # ... applied twice in forward
        x = _dense_relu(x, w4_ref, b4_ref)                 # (32, 256)
        g2 = ln2g_ref[...]
        b2l = ln2b_ref[...]
        x = _layernorm(x, g2, b2l)                         # batchnorm2 (LayerNorm 256)
        x = _dense_relu(x, w5_ref, b5_ref)                 # (32, 256)
        r = _layernorm(x, g2, b2l)                         # (32, 256) f32
        # tab[v, t] = r[v] . vd[t]   (folded l6->Flatten->l7 head, f32;
        # columns t >= 59 are zero because vdt is zero there)
        tab_ref[...] = jnp.dot(r, vdt_ref[...],
                               preferred_element_type=jnp.float32)   # (32, 64)

    # ---- per-batch epilogue: gather tab[seq[b,t], t], reduce, sigmoid -----
    ids = ids_ref[...]                                     # (tb, 64) int32
    tb = ids.shape[0]
    viota = jax.lax.broadcasted_iota(jnp.int32, (tb, VOCAB_PAD, L_PAD), 1)
    sel = jnp.where(viota == ids[:, None, :],
                    tab_ref[...][None, :, :], 0.0)         # (tb, 32, 64) f32
    d = jnp.sum(jnp.sum(sel, axis=2), axis=1, keepdims=True)          # (tb, 1)
    d = d + beffd_ref[0]
    p1 = 1.0 / (1.0 + jnp.exp(-d))                         # == softmax(logits)[:, 1]
    p0 = 1.0 - p1                                          # == softmax(logits)[:, 0]
    # lane-dense (tb, 128) output slab: probs in lanes 0/1, zeros elsewhere
    col = jax.lax.broadcasted_iota(jnp.int32, out_ref.shape, 1)
    out_ref[...] = jnp.where(col == 0, p0, jnp.where(col == 1, p1, 0.0))


def _batch_tile(batch):
    """Whole batch elements per grid step; the block's sublane dim must be a
    multiple of 8 unless it is the full extent."""
    if batch <= 8:
        return batch                          # single full-extent step
    for tb in (256, 128, 64, 32, 16, 8):
        if batch % tb == 0:
            return tb
    return batch                              # awkward batch -> one full-extent step


@jax.jit
def fnnemb_forward(seq, params):
    batch, seq_len = seq.shape
    assert seq_len == L_SEQ, "Flatten output must be 118 features for l7"

    tb = _batch_tile(batch)
    grid = (batch // tb,)
    f32, bf16 = jnp.float32, jnp.bfloat16

    # ---- parameter prep: pure weight algebra (outside the kernel) ---------
    emb = jnp.zeros((VOCAB_PAD, 128), f32).at[:VOCAB].set(params["embedding"])
    w1 = params["w1"].astype(bf16)
    w2 = params["w2"].astype(bf16)
    w4 = params["w4"].astype(bf16)
    w5 = params["w5"].astype(bf16)

    # fold l6 -> Flatten -> l7 -> (2-class softmax) into per-position vectors
    w6, b6 = params["w6"], params["b6"]                 # (256, 2), (1, 2)
    w7, b7 = params["w7"], params["b7"]                 # (118, 2), (1, 2)
    w7r = w7.reshape(seq_len, 2, 2)                     # [t, c, k] = w7[2t+c, k]
    weff = jnp.einsum("jc,tck->tjk", w6, w7r)           # (59, 256, 2)
    vd = weff[:, :, 1] - weff[:, :, 0]                  # (59, 256)
    vdt = jnp.zeros((256, L_PAD), f32).at[:, :seq_len].set(vd.T)   # (256, 64)
    beff = b7.reshape(2) + jnp.tile(b6.reshape(2), seq_len) @ w7   # (2,)
    beffd = (beff[1] - beff[0]).reshape(1)                          # (1,) f32

    # pad sequence positions 59 -> 64 (tab columns for t >= 59 are zero)
    ids = jnp.zeros((batch, L_PAD), jnp.int32).at[:, :seq_len].set(
        seq.astype(jnp.int32))

    def const_spec(a):                 # weight-resident: same block every step
        return pl.BlockSpec(a.shape, lambda i: (0, 0))

    vmem_args = (emb,
                 params["ln1_g"], params["ln1_b"],
                 w1, params["b1"], w2, params["b2"],
                 params["ln3_g"], params["ln3_b"],
                 w4, params["b4"],
                 params["ln2_g"], params["ln2_b"],
                 w5, params["b5"],
                 vdt)
    in_specs = ([pl.BlockSpec((tb, L_PAD), lambda i: (i, 0))]
                + [const_spec(a) for a in vmem_args]
                + [pl.BlockSpec(memory_space=pltpu.MemorySpace.SMEM)])

    mlp_flops = 2 * VOCAB_PAD * (128 * 256 + 256 * 1024 + 1024 * 256 + 256 * 256)
    head_flops = 2 * VOCAB_PAD * 256 * L_PAD + 4 * batch * VOCAB_PAD * L_PAD
    weight_bytes = int(sum(a.size * a.dtype.itemsize for a in vmem_args)) + 4
    io_bytes = batch * L_PAD * 4 + batch * 128 * 4

    out_padded = pl.pallas_call(
        fnnemb_kernel,
        out_shape=jax.ShapeDtypeStruct((batch, 128), f32),
        grid=grid,
        in_specs=in_specs,
        out_specs=pl.BlockSpec((tb, 128), lambda i: (i, 0)),
        scratch_shapes=[pltpu.VMEM((VOCAB_PAD, L_PAD), f32)],
        compiler_params=pltpu.CompilerParams(
            dimension_semantics=("arbitrary",),   # step 0 fills the scratch table
            vmem_limit_bytes=32 * 1024 * 1024),
        cost_estimate=pl.CostEstimate(
            flops=mlp_flops + head_flops,
            transcendentals=6 * VOCAB_PAD + batch,
            bytes_accessed=weight_bytes + io_bytes),
    )(ids, *vmem_args, beffd)
    return out_padded[:, :2]


def fnnemb_reference(seq, params):
    """Unfused transcription of FNNemb.forward (same mixed-precision policy)."""
    f32, bf16 = jnp.float32, jnp.bfloat16
    batch, seq_len = seq.shape

    def ln(x, g, b):
        mu = jnp.mean(x, axis=-1, keepdims=True)
        var = jnp.mean((x - mu) ** 2, axis=-1, keepdims=True)
        return (x - mu) * jax.lax.rsqrt(var + EPS) * g + b

    def dense(x, w, b, relu=True, low=True):
        if low:
            y = jnp.dot(x.astype(bf16), w.astype(bf16),
                        preferred_element_type=f32) + b
        else:
            y = jnp.dot(x, w) + b
        return jnp.maximum(y, 0.0) if relu else y

    x = jnp.take(params["embedding"], seq.reshape(-1), axis=0)    # (B*L, 128)
    x = ln(x, params["ln1_g"], params["ln1_b"])
    x = dense(x, params["w1"], params["b1"])
    x = dense(x, params["w2"], params["b2"])
    x = ln(x, params["ln3_g"], params["ln3_b"])
    x = ln(x, params["ln3_g"], params["ln3_b"])
    x = dense(x, params["w4"], params["b4"])
    x = ln(x, params["ln2_g"], params["ln2_b"])
    x = dense(x, params["w5"], params["b5"])
    x = ln(x, params["ln2_g"], params["ln2_b"])
    x = dense(x, params["w6"], params["b6"], relu=False, low=False)  # (B*L, 2)
    x = x.reshape(batch, seq_len * 2)                             # Flatten
    logits = jnp.dot(x, params["w7"]) + params["b7"]              # (B, 2)
    return jax.nn.softmax(logits, axis=1)


def init_params(key):
    """Deterministic parameter init matching FNNemb.__init__ shapes."""
    ks = jax.random.split(key, 16)

    def linear(kw, kb, din, dout):
        bound = 1.0 / jnp.sqrt(din)
        w = jax.random.uniform(kw, (din, dout), jnp.float32, -bound, bound)
        b = jax.random.uniform(kb, (1, dout), jnp.float32, -bound, bound)
        return w, b

    p = {}
    p["embedding"] = jax.random.normal(ks[0], (VOCAB, 128), jnp.float32)
    p["ln1_g"] = jnp.ones((1, 128), jnp.float32)
    p["ln1_b"] = jnp.zeros((1, 128), jnp.float32)
    p["ln2_g"] = jnp.ones((1, 256), jnp.float32)    # batchnorm2 = LayerNorm(256)
    p["ln2_b"] = jnp.zeros((1, 256), jnp.float32)
    p["ln3_g"] = jnp.ones((1, 1024), jnp.float32)   # batchnorm3 = LayerNorm(1024)
    p["ln3_b"] = jnp.zeros((1, 1024), jnp.float32)
    p["w1"], p["b1"] = linear(ks[1], ks[2], 128, 256)
    p["w2"], p["b2"] = linear(ks[3], ks[4], 256, 1024)
    # l3 (1024 -> 1024) exists in __init__ but is never used in forward.
    p["w4"], p["b4"] = linear(ks[5], ks[6], 1024, 256)
    p["w5"], p["b5"] = linear(ks[7], ks[8], 256, 256)
    p["w6"], p["b6"] = linear(ks[9], ks[10], 256, 2)
    p["w7"], p["b7"] = linear(ks[11], ks[12], 118, 2)
    return p


if __name__ == "__main__":
    key = jax.random.PRNGKey(0)
    kp, ks = jax.random.split(key)
    params = init_params(kp)

    B = 2                                            # L fixed at 59 by Linear(118, 2)
    seq = jax.random.randint(ks, (B, L_SEQ), 0, VOCAB, dtype=jnp.int32)

    out = fnnemb_forward(seq, params)
    out = jax.block_until_ready(out)

    assert out.shape == (B, 2)
    assert bool(jnp.all(jnp.isfinite(out)))
    assert bool(jnp.allclose(jnp.sum(out, axis=1), 1.0, atol=1e-5))

    ref = fnnemb_reference(seq, params)
    err = float(jnp.max(jnp.abs(out - ref)))
    assert err < 5e-3, f"max|kernel - reference| = {err}"
    print("KERNEL_OK")
</pallas_src>

<mosaic_0001>
module attributes {stable_mosaic.version = 11 : i64} {
  func.func @fnnemb_kernel(%arg0: i32, %arg1: memref<2x64xi32, #tpu.memory_space<vmem>>, %arg2: memref<32x128xf32, #tpu.memory_space<vmem>>, %arg3: memref<1x128xf32, #tpu.memory_space<vmem>>, %arg4: memref<1x128xf32, #tpu.memory_space<vmem>>, %arg5: memref<128x256xbf16, #tpu.memory_space<vmem>>, %arg6: memref<1x256xf32, #tpu.memory_space<vmem>>, %arg7: memref<256x1024xbf16, #tpu.memory_space<vmem>>, %arg8: memref<1x1024xf32, #tpu.memory_space<vmem>>, %arg9: memref<1x1024xf32, #tpu.memory_space<vmem>>, %arg10: memref<1x1024xf32, #tpu.memory_space<vmem>>, %arg11: memref<1024x256xbf16, #tpu.memory_space<vmem>>, %arg12: memref<1x256xf32, #tpu.memory_space<vmem>>, %arg13: memref<1x256xf32, #tpu.memory_space<vmem>>, %arg14: memref<1x256xf32, #tpu.memory_space<vmem>>, %arg15: memref<256x256xbf16, #tpu.memory_space<vmem>>, %arg16: memref<1x256xf32, #tpu.memory_space<vmem>>, %arg17: memref<256x64xf32, #tpu.memory_space<vmem>>, %arg18: memref<1xf32, #tpu.memory_space<smem>>, %arg19: memref<2x128xf32, #tpu.memory_space<vmem>>, %arg20: memref<32x64xf32, #tpu.memory_space<vmem>>) attributes {dimension_semantics = [#tpu.dimension_semantics<arbitrary>], iteration_bounds = array<i64: 1>, scalar_prefetch = 0 : i64, scratch_operands = 1 : i64, tpu.core_type = #tpu.core_type<tc>, window_params = [{transform_indices = @transform_0, window_bounds = array<i64: 2, 64>}, {pipeline_mode = #tpu.pipeline_mode<synchronous>, transform_indices = @transform_1, window_bounds = array<i64: 32, 128>}, {pipeline_mode = #tpu.pipeline_mode<synchronous>, transform_indices = @transform_2, window_bounds = array<i64: 1, 128>}, {pipeline_mode = #tpu.pipeline_mode<synchronous>, transform_indices = @transform_3, window_bounds = array<i64: 1, 128>}, {pipeline_mode = #tpu.pipeline_mode<synchronous>, transform_indices = @transform_4, window_bounds = array<i64: 128, 256>}, {pipeline_mode = #tpu.pipeline_mode<synchronous>, transform_indices = @transform_5, window_bounds = array<i64: 1, 256>}, {pipeline_mode = #tpu.pipeline_mode<synchronous>, transform_indices = @transform_6, window_bounds = array<i64: 256, 1024>}, {pipeline_mode = #tpu.pipeline_mode<synchronous>, transform_indices = @transform_7, window_bounds = array<i64: 1, 1024>}, {pipeline_mode = #tpu.pipeline_mode<synchronous>, transform_indices = @transform_8, window_bounds = array<i64: 1, 1024>}, {pipeline_mode = #tpu.pipeline_mode<synchronous>, transform_indices = @transform_9, window_bounds = array<i64: 1, 1024>}, {pipeline_mode = #tpu.pipeline_mode<synchronous>, transform_indices = @transform_10, window_bounds = array<i64: 1024, 256>}, {pipeline_mode = #tpu.pipeline_mode<synchronous>, transform_indices = @transform_11, window_bounds = array<i64: 1, 256>}, {pipeline_mode = #tpu.pipeline_mode<synchronous>, transform_indices = @transform_12, window_bounds = array<i64: 1, 256>}, {pipeline_mode = #tpu.pipeline_mode<synchronous>, transform_indices = @transform_13, window_bounds = array<i64: 1, 256>}, {pipeline_mode = #tpu.pipeline_mode<synchronous>, transform_indices = @transform_14, window_bounds = array<i64: 256, 256>}, {pipeline_mode = #tpu.pipeline_mode<synchronous>, transform_indices = @transform_15, window_bounds = array<i64: 1, 256>}, {pipeline_mode = #tpu.pipeline_mode<synchronous>, transform_indices = @transform_16, window_bounds = array<i64: 256, 64>}, {transform_indices = @transform_17, window_bounds = array<i64: 1>}, {transform_indices = @transform_18, window_bounds = array<i64: 2, 128>}]} {
    %c0_i32 = arith.constant 0 : i32
    %0 = arith.cmpi eq, %arg0, %c0_i32 : i32
    %1 = arith.extui %0 : i1 to i32
    %c0_i32_0 = arith.constant 0 : i32
    %2 = arith.cmpi ne, %1, %c0_i32_0 : i32
    scf.if %2 {
      %c0_15 = arith.constant 0 : index
      %c0_16 = arith.constant 0 : index
      %42 = vector.load %arg2[%c0_15, %c0_16] : memref<32x128xf32, #tpu.memory_space<vmem>>, vector<32x128xf32>
      %c0_17 = arith.constant 0 : index
      %c0_18 = arith.constant 0 : index
      %43 = vector.load %arg3[%c0_17, %c0_18] : memref<1x128xf32, #tpu.memory_space<vmem>>, vector<1x128xf32>
      %c0_19 = arith.constant 0 : index
      %c0_20 = arith.constant 0 : index
      %44 = vector.load %arg4[%c0_19, %c0_20] : memref<1x128xf32, #tpu.memory_space<vmem>>, vector<1x128xf32>
      %cst_21 = arith.constant dense<0.000000e+00> : vector<32xf32>
      %45 = vector.multi_reduction <add>, %42, %cst_21 [1] : vector<32x128xf32> to vector<32xf32>
      %46 = vector.shape_cast %45 : vector<32xf32> to vector<32x1xf32>
      %cst_22 = arith.constant 1.280000e+02 : f32
      %47 = vector.broadcast %cst_22 : f32 to vector<32x1xf32>
      %48 = arith.divf %46, %47 : vector<32x1xf32>
      %49 = vector.broadcast %48 : vector<32x1xf32> to vector<32x128xf32>
      %50 = arith.subf %42, %49 : vector<32x128xf32>
      %51 = arith.mulf %50, %50 : vector<32x128xf32>
      %cst_23 = arith.constant dense<0.000000e+00> : vector<32xf32>
      %52 = vector.multi_reduction <add>, %51, %cst_23 [1] : vector<32x128xf32> to vector<32xf32>
      %53 = vector.shape_cast %52 : vector<32xf32> to vector<32x1xf32>
      %cst_24 = arith.constant 1.280000e+02 : f32
      %54 = vector.broadcast %cst_24 : f32 to vector<32x1xf32>
      %55 = arith.divf %53, %54 : vector<32x1xf32>
      %cst_25 = arith.constant 9.99999974E-6 : f32
      %56 = vector.broadcast %cst_25 : f32 to vector<32x1xf32>
      %57 = arith.addf %55, %56 : vector<32x1xf32>
      %58 = math.rsqrt %57 : vector<32x1xf32>
      %59 = vector.broadcast %58 : vector<32x1xf32> to vector<32x128xf32>
      %60 = arith.mulf %50, %59 : vector<32x128xf32>
      %61 = vector.broadcast %43 : vector<1x128xf32> to vector<32x128xf32>
      %62 = arith.mulf %60, %61 : vector<32x128xf32>
      %63 = vector.broadcast %44 : vector<1x128xf32> to vector<32x128xf32>
      %64 = arith.addf %62, %63 : vector<32x128xf32>
      %65 = arith.truncf %64 : vector<32x128xf32> to vector<32x128xbf16>
      %c0_26 = arith.constant 0 : index
      %c0_27 = arith.constant 0 : index
      %66 = vector.load %arg5[%c0_26, %c0_27] : memref<128x256xbf16, #tpu.memory_space<vmem>>, vector<128x256xbf16>
      %cst_28 = arith.constant dense<0.000000e+00> : vector<32x256xf32>
      %67 = tpu.matmul %65, %66, %cst_28 {dimension_numbers = #tpu.dot_dimension_numbers<[1], [0], [0], [1], [0, 0, 1, 1], [], []>} : vector<32x128xbf16>, vector<128x256xbf16>, vector<32x256xf32> -> vector<32x256xf32>
      %c0_29 = arith.constant 0 : index
      %c0_30 = arith.constant 0 : index
      %68 = vector.load %arg6[%c0_29, %c0_30] : memref<1x256xf32, #tpu.memory_space<vmem>>, vector<1x256xf32>
      %69 = vector.broadcast %68 : vector<1x256xf32> to vector<32x256xf32>
      %70 = arith.addf %67, %69 : vector<32x256xf32>
      %cst_31 = arith.constant 0.000000e+00 : f32
      %71 = vector.broadcast %cst_31 : f32 to vector<32x256xf32>
      %72 = arith.maximumf %70, %71 : vector<32x256xf32>
      %73 = arith.truncf %72 : vector<32x256xf32> to vector<32x256xbf16>
      %c0_32 = arith.constant 0 : index
      %c0_33 = arith.constant 0 : index
      %74 = vector.load %arg7[%c0_32, %c0_33] : memref<256x1024xbf16, #tpu.memory_space<vmem>>, vector<256x1024xbf16>
      %cst_34 = arith.constant dense<0.000000e+00> : vector<32x1024xf32>
      %75 = tpu.matmul %73, %74, %cst_34 {dimension_numbers = #tpu.dot_dimension_numbers<[1], [0], [0], [1], [0, 0, 1, 1], [], []>} : vector<32x256xbf16>, vector<256x1024xbf16>, vector<32x1024xf32> -> vector<32x1024xf32>
      %c0_35 = arith.constant 0 : index
      %c0_36 = arith.constant 0 : index
      %76 = vector.load %arg8[%c0_35, %c0_36] : memref<1x1024xf32, #tpu.memory_space<vmem>>, vector<1x1024xf32>
      %77 = vector.broadcast %76 : vector<1x1024xf32> to vector<32x1024xf32>
      %78 = arith.addf %75, %77 : vector<32x1024xf32>
      %cst_37 = arith.constant 0.000000e+00 : f32
      %79 = vector.broadcast %cst_37 : f32 to vector<32x1024xf32>
      %80 = arith.maximumf %78, %79 : vector<32x1024xf32>
      %c0_38 = arith.constant 0 : index
      %c0_39 = arith.constant 0 : index
      %81 = vector.load %arg9[%c0_38, %c0_39] : memref<1x1024xf32, #tpu.memory_space<vmem>>, vector<1x1024xf32>
      %c0_40 = arith.constant 0 : index
      %c0_41 = arith.constant 0 : index
      %82 = vector.load %arg10[%c0_40, %c0_41] : memref<1x1024xf32, #tpu.memory_space<vmem>>, vector<1x1024xf32>
      %cst_42 = arith.constant dense<0.000000e+00> : vector<32xf32>
      %83 = vector.multi_reduction <add>, %80, %cst_42 [1] : vector<32x1024xf32> to vector<32xf32>
      %84 = vector.shape_cast %83 : vector<32xf32> to vector<32x1xf32>
      %cst_43 = arith.constant 1.024000e+03 : f32
      %85 = vector.broadcast %cst_43 : f32 to vector<32x1xf32>
      %86 = arith.divf %84, %85 : vector<32x1xf32>
      %87 = vector.broadcast %86 : vector<32x1xf32> to vector<32x1024xf32>
      %88 = arith.subf %80, %87 : vector<32x1024xf32>
      %89 = arith.mulf %88, %88 : vector<32x1024xf32>
      %cst_44 = arith.constant dense<0.000000e+00> : vector<32xf32>
      %90 = vector.multi_reduction <add>, %89, %cst_44 [1] : vector<32x1024xf32> to vector<32xf32>
      %91 = vector.shape_cast %90 : vector<32xf32> to vector<32x1xf32>
      %cst_45 = arith.constant 1.024000e+03 : f32
      %92 = vector.broadcast %cst_45 : f32 to vector<32x1xf32>
      %93 = arith.divf %91, %92 : vector<32x1xf32>
      %cst_46 = arith.constant 9.99999974E-6 : f32
      %94 = vector.broadcast %cst_46 : f32 to vector<32x1xf32>
      %95 = arith.addf %93, %94 : vector<32x1xf32>
      %96 = math.rsqrt %95 : vector<32x1xf32>
      %97 = vector.broadcast %96 : vector<32x1xf32> to vector<32x1024xf32>
      %98 = arith.mulf %88, %97 : vector<32x1024xf32>
      %99 = vector.broadcast %81 : vector<1x1024xf32> to vector<32x1024xf32>
      %100 = arith.mulf %98, %99 : vector<32x1024xf32>
      %101 = vector.broadcast %82 : vector<1x1024xf32> to vector<32x1024xf32>
      %102 = arith.addf %100, %101 : vector<32x1024xf32>
      %cst_47 = arith.constant dense<0.000000e+00> : vector<32xf32>
      %103 = vector.multi_reduction <add>, %102, %cst_47 [1] : vector<32x1024xf32> to vector<32xf32>
      %104 = vector.shape_cast %103 : vector<32xf32> to vector<32x1xf32>
      %cst_48 = arith.constant 1.024000e+03 : f32
      %105 = vector.broadcast %cst_48 : f32 to vector<32x1xf32>
      %106 = arith.divf %104, %105 : vector<32x1xf32>
      %107 = vector.broadcast %106 : vector<32x1xf32> to vector<32x1024xf32>
      %108 = arith.subf %102, %107 : vector<32x1024xf32>
      %109 = arith.mulf %108, %108 : vector<32x1024xf32>
      %cst_49 = arith.constant dense<0.000000e+00> : vector<32xf32>
      %110 = vector.multi_reduction <add>, %109, %cst_49 [1] : vector<32x1024xf32> to vector<32xf32>
      %111 = vector.shape_cast %110 : vector<32xf32> to vector<32x1xf32>
      %cst_50 = arith.constant 1.024000e+03 : f32
      %112 = vector.broadcast %cst_50 : f32 to vector<32x1xf32>
      %113 = arith.divf %111, %112 : vector<32x1xf32>
      %cst_51 = arith.constant 9.99999974E-6 : f32
      %114 = vector.broadcast %cst_51 : f32 to vector<32x1xf32>
      %115 = arith.addf %113, %114 : vector<32x1xf32>
      %116 = math.rsqrt %115 : vector<32x1xf32>
      %117 = vector.broadcast %116 : vector<32x1xf32> to vector<32x1024xf32>
      %118 = arith.mulf %108, %117 : vector<32x1024xf32>
      %119 = vector.broadcast %81 : vector<1x1024xf32> to vector<32x1024xf32>
      %120 = arith.mulf %118, %119 : vector<32x1024xf32>
      %121 = vector.broadcast %82 : vector<1x1024xf32> to vector<32x1024xf32>
      %122 = arith.addf %120, %121 : vector<32x1024xf32>
      %123 = arith.truncf %122 : vector<32x1024xf32> to vector<32x1024xbf16>
      %c0_52 = arith.constant 0 : index
      %c0_53 = arith.constant 0 : index
      %124 = vector.load %arg11[%c0_52, %c0_53] : memref<1024x256xbf16, #tpu.memory_space<vmem>>, vector<1024x256xbf16>
      %cst_54 = arith.constant dense<0.000000e+00> : vector<32x256xf32>
      %125 = tpu.matmul %123, %124, %cst_54 {dimension_numbers = #tpu.dot_dimension_numbers<[1], [0], [0], [1], [0, 0, 1, 1], [], []>} : vector<32x1024xbf16>, vector<1024x256xbf16>, vector<32x256xf32> -> vector<32x256xf32>
      %c0_55 = arith.constant 0 : index
      %c0_56 = arith.constant 0 : index
      %126 = vector.load %arg12[%c0_55, %c0_56] : memref<1x256xf32, #tpu.memory_space<vmem>>, vector<1x256xf32>
      %127 = vector.broadcast %126 : vector<1x256xf32> to vector<32x256xf32>
      %128 = arith.addf %125, %127 : vector<32x256xf32>
      %cst_57 = arith.constant 0.000000e+00 : f32
      %129 = vector.broadcast %cst_57 : f32 to vector<32x256xf32>
      %130 = arith.maximumf %128, %129 : vector<32x256xf32>
      %c0_58 = arith.constant 0 : index
      %c0_59 = arith.constant 0 : index
      %131 = vector.load %arg13[%c0_58, %c0_59] : memref<1x256xf32, #tpu.memory_space<vmem>>, vector<1x256xf32>
      %c0_60 = arith.constant 0 : index
      %c0_61 = arith.constant 0 : index
      %132 = vector.load %arg14[%c0_60, %c0_61] : memref<1x256xf32, #tpu.memory_space<vmem>>, vector<1x256xf32>
      %cst_62 = arith.constant dense<0.000000e+00> : vector<32xf32>
      %133 = vector.multi_reduction <add>, %130, %cst_62 [1] : vector<32x256xf32> to vector<32xf32>
      %134 = vector.shape_cast %133 : vector<32xf32> to vector<32x1xf32>
      %cst_63 = arith.constant 2.560000e+02 : f32
      %135 = vector.broadcast %cst_63 : f32 to vector<32x1xf32>
      %136 = arith.divf %134, %135 : vector<32x1xf32>
      %137 = vector.broadcast %136 : vector<32x1xf32> to vector<32x256xf32>
      %138 = arith.subf %130, %137 : vector<32x256xf32>
      %139 = arith.mulf %138, %138 : vector<32x256xf32>
      %cst_64 = arith.constant dense<0.000000e+00> : vector<32xf32>
      %140 = vector.multi_reduction <add>, %139, %cst_64 [1] : vector<32x256xf32> to vector<32xf32>
      %141 = vector.shape_cast %140 : vector<32xf32> to vector<32x1xf32>
      %cst_65 = arith.constant 2.560000e+02 : f32
      %142 = vector.broadcast %cst_65 : f32 to vector<32x1xf32>
      %143 = arith.divf %141, %142 : vector<32x1xf32>
      %cst_66 = arith.constant 9.99999974E-6 : f32
      %144 = vector.broadcast %cst_66 : f32 to vector<32x1xf32>
      %145 = arith.addf %143, %144 : vector<32x1xf32>
      %146 = math.rsqrt %145 : vector<32x1xf32>
      %147 = vector.broadcast %146 : vector<32x1xf32> to vector<32x256xf32>
      %148 = arith.mulf %138, %147 : vector<32x256xf32>
      %149 = vector.broadcast %131 : vector<1x256xf32> to vector<32x256xf32>
      %150 = arith.mulf %148, %149 : vector<32x256xf32>
      %151 = vector.broadcast %132 : vector<1x256xf32> to vector<32x256xf32>
      %152 = arith.addf %150, %151 : vector<32x256xf32>
      %153 = arith.truncf %152 : vector<32x256xf32> to vector<32x256xbf16>
      %c0_67 = arith.constant 0 : index
      %c0_68 = arith.constant 0 : index
      %154 = vector.load %arg15[%c0_67, %c0_68] : memref<256x256xbf16, #tpu.memory_space<vmem>>, vector<256x256xbf16>
      %cst_69 = arith.constant dense<0.000000e+00> : vector<32x256xf32>
      %155 = tpu.matmul %153, %154, %cst_69 {dimension_numbers = #tpu.dot_dimension_numbers<[1], [0], [0], [1], [0, 0, 1, 1], [], []>} : vector<32x256xbf16>, vector<256x256xbf16>, vector<32x256xf32> -> vector<32x256xf32>
      %c0_70 = arith.constant 0 : index
      %c0_71 = arith.constant 0 : index
      %156 = vector.load %arg16[%c0_70, %c0_71] : memref<1x256xf32, #tpu.memory_space<vmem>>, vector<1x256xf32>
      %157 = vector.broadcast %156 : vector<1x256xf32> to vector<32x256xf32>
      %158 = arith.addf %155, %157 : vector<32x256xf32>
      %cst_72 = arith.constant 0.000000e+00 : f32
      %159 = vector.broadcast %cst_72 : f32 to vector<32x256xf32>
      %160 = arith.maximumf %158, %159 : vector<32x256xf32>
      %cst_73 = arith.constant dense<0.000000e+00> : vector<32xf32>
      %161 = vector.multi_reduction <add>, %160, %cst_73 [1] : vector<32x256xf32> to vector<32xf32>
      %162 = vector.shape_cast %161 : vector<32xf32> to vector<32x1xf32>
      %cst_74 = arith.constant 2.560000e+02 : f32
      %163 = vector.broadcast %cst_74 : f32 to vector<32x1xf32>
      %164 = arith.divf %162, %163 : vector<32x1xf32>
      %165 = vector.broadcast %164 : vector<32x1xf32> to vector<32x256xf32>
      %166 = arith.subf %160, %165 : vector<32x256xf32>
      %167 = arith.mulf %166, %166 : vector<32x256xf32>
      %cst_75 = arith.constant dense<0.000000e+00> : vector<32xf32>
      %168 = vector.multi_reduction <add>, %167, %cst_75 [1] : vector<32x256xf32> to vector<32xf32>
      %169 = vector.shape_cast %168 : vector<32xf32> to vector<32x1xf32>
      %cst_76 = arith.constant 2.560000e+02 : f32
      %170 = vector.broadcast %cst_76 : f32 to vector<32x1xf32>
      %171 = arith.divf %169, %170 : vector<32x1xf32>
      %cst_77 = arith.constant 9.99999974E-6 : f32
      %172 = vector.broadcast %cst_77 : f32 to vector<32x1xf32>
      %173 = arith.addf %171, %172 : vector<32x1xf32>
      %174 = math.rsqrt %173 : vector<32x1xf32>
      %175 = vector.broadcast %174 : vector<32x1xf32> to vector<32x256xf32>
      %176 = arith.mulf %166, %175 : vector<32x256xf32>
      %177 = vector.broadcast %131 : vector<1x256xf32> to vector<32x256xf32>
      %178 = arith.mulf %176, %177 : vector<32x256xf32>
      %179 = vector.broadcast %132 : vector<1x256xf32> to vector<32x256xf32>
      %180 = arith.addf %178, %179 : vector<32x256xf32>
      %c0_78 = arith.constant 0 : index
      %c0_79 = arith.constant 0 : index
      %181 = vector.load %arg17[%c0_78, %c0_79] : memref<256x64xf32, #tpu.memory_space<vmem>>, vector<256x64xf32>
      %cst_80 = arith.constant dense<0.000000e+00> : vector<32x64xf32>
      %182 = tpu.matmul %180, %181, %cst_80 {dimension_numbers = #tpu.dot_dimension_numbers<[1], [0], [0], [1], [0, 0, 1, 1], [], []>} : vector<32x256xf32>, vector<256x64xf32>, vector<32x64xf32> -> vector<32x64xf32>
      %c0_81 = arith.constant 0 : index
      %c0_82 = arith.constant 0 : index
      %183 = vector.load %arg20[%c0_81, %c0_82] : memref<32x64xf32, #tpu.memory_space<vmem>>, vector<32x64xf32>
      tpu.vector_store %arg20[%c0_81, %c0_82], %182 {strides = array<i32>} : memref<32x64xf32, #tpu.memory_space<vmem>>, vector<32x64xf32>,
    } else {
    }
    %c0 = arith.constant 0 : index
    %c0_1 = arith.constant 0 : index
    %3 = vector.load %arg1[%c0, %c0_1] : memref<2x64xi32, #tpu.memory_space<vmem>>, vector<2x64xi32>
    %4 = tpu.iota {dimensions = array<i32: 1>} : vector<2x32x64xi32>
    %5 = vector.shape_cast %3 : vector<2x64xi32> to vector<2x1x64xi32>
    %6 = vector.broadcast %5 : vector<2x1x64xi32> to vector<2x32x64xi32>
    %7 = arith.cmpi eq, %4, %6 : vector<2x32x64xi32>
    %c0_2 = arith.constant 0 : index
    %c0_3 = arith.constant 0 : index
    %8 = vector.load %arg20[%c0_2, %c0_3] : memref<32x64xf32, #tpu.memory_space<vmem>>, vector<32x64xf32>
    %9 = vector.shape_cast %8 : vector<32x64xf32> to vector<1x32x64xf32>
    %cst = arith.constant 0.000000e+00 : f32
    %10 = vector.shape_cast %9 : vector<1x32x64xf32> to vector<1x32x64xf32>
    %11 = vector.broadcast %10 : vector<1x32x64xf32> to vector<2x32x64xf32>
    %12 = vector.broadcast %cst : f32 to vector<2x32x64xf32>
    %13 = arith.select %7, %11, %12 : vector<2x32x64xi1>, vector<2x32x64xf32>
    %cst_4 = arith.constant dense<0.000000e+00> : vector<2x32xf32>
    %14 = vector.multi_reduction <add>, %13, %cst_4 [2] : vector<2x32x64xf32> to vector<2x32xf32>
    %cst_5 = arith.constant dense<0.000000e+00> : vector<2xf32>
    %15 = vector.multi_reduction <add>, %14, %cst_5 [1] : vector<2x32xf32> to vector<2xf32>
    %16 = vector.shape_cast %15 : vector<2xf32> to vector<2x1xf32>
    %c0_6 = arith.constant 0 : index
    %17 = memref.load %arg18[%c0_6] : memref<1xf32, #tpu.memory_space<smem>>
    %18 = vector.broadcast %17 : f32 to vector<2x1xf32>
    %19 = arith.addf %16, %18 : vector<2x1xf32>
    %cst_7 = arith.constant 0.000000e+00 : f32
    %20 = vector.broadcast %cst_7 : f32 to vector<2x1xf32>
    %21 = arith.subf %20, %19 : vector<2x1xf32>
    %22 = math.exp %21 : vector<2x1xf32>
    %cst_8 = arith.constant 1.000000e+00 : f32
    %23 = vector.broadcast %cst_8 : f32 to vector<2x1xf32>
    %24 = arith.addf %23, %22 : vector<2x1xf32>
    %cst_9 = arith.constant 1.000000e+00 : f32
    %25 = vector.broadcast %cst_9 : f32 to vector<2x1xf32>
    %26 = arith.divf %25, %24 : vector<2x1xf32>
    %cst_10 = arith.constant 1.000000e+00 : f32
    %27 = vector.broadcast %cst_10 : f32 to vector<2x1xf32>
    %28 = arith.subf %27, %26 : vector<2x1xf32>
    %29 = tpu.iota {dimensions = array<i32: 1>} : vector<2x128xi32>
    %c0_i32_11 = arith.constant 0 : i32
    %30 = vector.broadcast %c0_i32_11 : i32 to vector<2x128xi32>
    %31 = arith.cmpi eq, %29, %30 : vector<2x128xi32>
    %c1_i32 = arith.constant 1 : i32
    %32 = vector.broadcast %c1_i32 : i32 to vector<2x128xi32>
    %33 = arith.cmpi eq, %29, %32 : vector<2x128xi32>
    %cst_12 = arith.constant 0.000000e+00 : f32
    %34 = vector.shape_cast %26 : vector<2x1xf32> to vector<2x1xf32>
    %35 = vector.broadcast %34 : vector<2x1xf32> to vector<2x128xf32>
    %36 = vector.broadcast %cst_12 : f32 to vector<2x128xf32>
    %37 = arith.select %33, %35, %36 : vector<2x128xi1>, vector<2x128xf32>
    %38 = vector.shape_cast %28 : vector<2x1xf32> to vector<2x1xf32>
    %39 = vector.broadcast %38 : vector<2x1xf32> to vector<2x128xf32>
    %40 = arith.select %31, %39, %37 : vector<2x128xi1>, vector<2x128xf32>
    %c0_13 = arith.constant 0 : index
    %c0_14 = arith.constant 0 : index
    %41 = vector.load %arg19[%c0_13, %c0_14] : memref<2x128xf32, #tpu.memory_space<vmem>>, vector<2x128xf32>
    tpu.vector_store %arg19[%c0_13, %c0_14], %40 {strides = array<i32>} : memref<2x128xf32, #tpu.memory_space<vmem>>, vector<2x128xf32>,
    return
  }
  func.func @transform_0(%arg0: i32) -> (i32, i32) {
    %c0_i32 = arith.constant 0 : i32
    %c0_i32_0 = arith.constant 0 : i32
    return %arg0, %c0_i32 : i32, i32
  }
  func.func @transform_1(%arg0: i32) -> (i32, i32) {
    %c0_i32 = arith.constant 0 : i32
    %c0_i32_0 = arith.constant 0 : i32
    %c0_i32_1 = arith.constant 0 : i32
    return %c0_i32, %c0_i32_0 : i32, i32
  }
  func.func @transform_2(%arg0: i32) -> (i32, i32) {
    %c0_i32 = arith.constant 0 : i32
    %c0_i32_0 = arith.constant 0 : i32
    %c0_i32_1 = arith.constant 0 : i32
    return %c0_i32, %c0_i32_0 : i32, i32
  }
  func.func @transform_3(%arg0: i32) -> (i32, i32) {
    %c0_i32 = arith.constant 0 : i32
    %c0_i32_0 = arith.constant 0 : i32
    %c0_i32_1 = arith.constant 0 : i32
    return %c0_i32, %c0_i32_0 : i32, i32
  }
  func.func @transform_4(%arg0: i32) -> (i32, i32) {
    %c0_i32 = arith.constant 0 : i32
    %c0_i32_0 = arith.constant 0 : i32
    %c0_i32_1 = arith.constant 0 : i32
    return %c0_i32, %c0_i32_0 : i32, i32
  }
  func.func @transform_5(%arg0: i32) -> (i32, i32) {
    %c0_i32 = arith.constant 0 : i32
    %c0_i32_0 = arith.constant 0 : i32
    %c0_i32_1 = arith.constant 0 : i32
    return %c0_i32, %c0_i32_0 : i32, i32
  }
  func.func @transform_6(%arg0: i32) -> (i32, i32) {
    %c0_i32 = arith.constant 0 : i32
    %c0_i32_0 = arith.constant 0 : i32
    %c0_i32_1 = arith.constant 0 : i32
    return %c0_i32, %c0_i32_0 : i32, i32
  }
  func.func @transform_7(%arg0: i32) -> (i32, i32) {
    %c0_i32 = arith.constant 0 : i32
    %c0_i32_0 = arith.constant 0 : i32
    %c0_i32_1 = arith.constant 0 : i32
    return %c0_i32, %c0_i32_0 : i32, i32
  }
  func.func @transform_8(%arg0: i32) -> (i32, i32) {
    %c0_i32 = arith.constant 0 : i32
    %c0_i32_0 = arith.constant 0 : i32
    %c0_i32_1 = arith.constant 0 : i32
    return %c0_i32, %c0_i32_0 : i32, i32
  }
  func.func @transform_9(%arg0: i32) -> (i32, i32) {
    %c0_i32 = arith.constant 0 : i32
    %c0_i32_0 = arith.constant 0 : i32
    %c0_i32_1 = arith.constant 0 : i32
    return %c0_i32, %c0_i32_0 : i32, i32
  }
  func.func @transform_10(%arg0: i32) -> (i32, i32) {
    %c0_i32 = arith.constant 0 : i32
    %c0_i32_0 = arith.constant 0 : i32
    %c0_i32_1 = arith.constant 0 : i32
    return %c0_i32, %c0_i32_0 : i32, i32
  }
  func.func @transform_11(%arg0: i32) -> (i32, i32) {
    %c0_i32 = arith.constant 0 : i32
    %c0_i32_0 = arith.constant 0 : i32
    %c0_i32_1 = arith.constant 0 : i32
    return %c0_i32, %c0_i32_0 : i32, i32
  }
  func.func @transform_12(%arg0: i32) -> (i32, i32) {
    %c0_i32 = arith.constant 0 : i32
    %c0_i32_0 = arith.constant 0 : i32
    %c0_i32_1 = arith.constant 0 : i32
    return %c0_i32, %c0_i32_0 : i32, i32
  }
  func.func @transform_13(%arg0: i32) -> (i32, i32) {
    %c0_i32 = arith.constant 0 : i32
    %c0_i32_0 = arith.constant 0 : i32
    %c0_i32_1 = arith.constant 0 : i32
    return %c0_i32, %c0_i32_0 : i32, i32
  }
  func.func @transform_14(%arg0: i32) -> (i32, i32) {
    %c0_i32 = arith.constant 0 : i32
    %c0_i32_0 = arith.constant 0 : i32
    %c0_i32_1 = arith.constant 0 : i32
    return %c0_i32, %c0_i32_0 : i32, i32
  }
  func.func @transform_15(%arg0: i32) -> (i32, i32) {
    %c0_i32 = arith.constant 0 : i32
    %c0_i32_0 = arith.constant 0 : i32
    %c0_i32_1 = arith.constant 0 : i32
    return %c0_i32, %c0_i32_0 : i32, i32
  }
  func.func @transform_16(%arg0: i32) -> (i32, i32) {
    %c0_i32 = arith.constant 0 : i32
    %c0_i32_0 = arith.constant 0 : i32
    %c0_i32_1 = arith.constant 0 : i32
    return %c0_i32, %c0_i32_0 : i32, i32
  }
  func.func @transform_17(%arg0: i32) -> i32 {
    %c0_i32 = arith.constant 0 : i32
    %c0_i32_0 = arith.constant 0 : i32
    return %c0_i32 : i32
  }
  func.func @transform_18(%arg0: i32) -> (i32, i32) {
    %c0_i32 = arith.constant 0 : i32
    %c0_i32_0 = arith.constant 0 : i32
    return %arg0, %c0_i32 : i32, i32
  }
}

</mosaic_0001>

<bundles_post_ra>
// kernel: tile.6
= control target key start
LH: loop header
LB: loop body
LE: loop exit
PB: predicated region body
PF: predicated region fallthrough
CT: control target
= control target key end

     0   :  { %2 = vsyncpa [#allocation1], 0  ;;  %s63_s6 = smov [#allocation0]   ;;  %s101_s0 = inlined_call_operand.hbm [shape: f32[2], index: 0, kind: input, shape index: {}]   ;;  %s102_s1 = inlined_call_operand.vmem [shape: f32[59,2], index: 1, kind: output, shape index: {}]  }
   0x1   :  { %s9_s7 = sshll.u32 %s63_s6, 4  ;;  %s10_s7 = int_to_ptr.vmem [resolvable:$true] %s9_s7 }
   0x2   :  { %s49_s8 = scalar_lea.vmem %s10_s7, 16  ;;  %s53_s9 = scalar_lea.vmem %s10_s7, 32 }
   0x3   :  { %p50_p0 = scmp.ne.s32.totalorder %s10_s7, %s49_s8  ;;  %p54_p1 = scmp.lt.s32.totalorder %s10_s7, %s10_s7 }
   0x4   :  { %p55_p2 = scmp.lt.s32.totalorder %s53_s9, %s49_s8 }
   0x6   :  { %p56_p3 = por %p55_p2, %p54_p1 }
   0x8   :  { %p57_p4 = pnand %p56_p3, %p50_p0 }
   0xa   :  { %60 = shalt.err (!%p57_p4)
}
   0xb   :  { %12 = dma.hbm_to_vmem [thread:$0]  %s101_s0, 16, %s10_s7, [#allocation1]  }
   0xc   :  { %61 = dma.done.wait [#allocation1], 16  }
   0xd   :  { %62 = vsyncadd [#allocation1], 4294967280  ;;  %v16_v0 = vld [vmem:[#allocation0] ss:$0 sm:$0xff] }
   0xe   :  { %17 = vst [vmem:[%s102_s1] sm:$0xff] %v16_v0  ;;  %33 = vst [vmem:[%s102_s1 + $0x8] sm:$0xff] %v16_v0 }
   0xf   :  { %34 = vst [vmem:[%s102_s1 + $0x10] sm:$0xff] %v16_v0  ;;  %35 = vst [vmem:[%s102_s1 + $0x18] sm:$0xff] %v16_v0 }
  0x10   :  { %36 = vst [vmem:[%s102_s1 + $0x20] sm:$0xff] %v16_v0  ;;  %37 = vst [vmem:[%s102_s1 + $0x28] sm:$0xff] %v16_v0 }
  0x11   :  { %38 = vst [vmem:[%s102_s1 + $0x30] sm:$0xff] %v16_v0  ;;  %39 = vst [vmem:[%s102_s1 + $0x38] sm:$0xff] %v16_v0 }
  0x12   :  { %32 = vsyncpa [#allocation1], 1 }

// kernel: tile.7
= control target key start
LH: loop header
LB: loop body
LE: loop exit
PB: predicated region body
PF: predicated region fallthrough
CT: control target
= control target key end

     0   :  { %s477_s10 = smov 116   ;;  %s478_s11 = smov 112   ;;  %vm3_vm0 = vcmask 15360   ;;  %vm9_vm1 = vcmask 966560   ;;  %vm15_vm2 = vcmask 950160   ;;  %vm21_vm3 = vcmask 933760   ;;  %s725_s0 = inlined_call_operand.vmem [shape: f32[59,2], index: 0, kind: input, shape index: {}]   ;;  %s726_s1 = inlined_call_operand.vmem [shape: f32[118], index: 1, kind: output, shape index: {}]  }
   0x1   :  { %v361_v0 = vld [vmem:[%s725_s0 + $0x3a] sm:$0x1]   ;;  %v363_v1 = vld [vmem:[%s725_s0 + $0x38] sm:$0x1]   ;;  %v362_v2 = vld [vmem:[%s725_s0 + $0x39] sm:$0x1]  }
   0x2   :  { %7 = vrot.lane.b32.xlu0 %v361_v0, %s477_s10  ;;  %19 = vrot.lane.b32.xlu1 %v363_v1, %s478_s11  ;;  %v364_v3 = vld [vmem:[%s725_s0 + $0x37] sm:$0x1]   ;;  %s479_s16 = smov 114   ;;  %s480_s17 = smov 110   ;;  %v365_v4 = vld [vmem:[%s725_s0 + $0x36] sm:$0x1]  }
   0x3   :  { %v366_v5 = vld [vmem:[%s725_s0 + $0x35] sm:$0x1]   ;;  %s481_s22 = smov 108   ;;  %s482_s23 = smov 106   ;;  %v367_v6 = vld [vmem:[%s725_s0 + $0x34] sm:$0x1]  }
   0x4   :  { %v368_v7 = vld [vmem:[%s725_s0 + $0x33] sm:$0x1]   ;;  %s483_s28 = smov 104   ;;  %s484_s29 = smov 102   ;;  %v369_v8 = vld [vmem:[%s725_s0 + $0x32] sm:$0x1]  }
   0x5   :  { %v370_v9 = vld [vmem:[%s725_s0 + $0x31] sm:$0x1]   ;;  %s485_s5 = smov 100   ;;  %s486_s6 = smov 98   ;;  %v371_v10 = vld [vmem:[%s725_s0 + $0x30] sm:$0x1]  }
   0x6   :  { %13 = vrot.lane.b32.xlu0 %v362_v2, %s479_s16  ;;  %25 = vrot.lane.b32.xlu1 %v364_v3, %s480_s17  ;;  %v372_v11 = vld [vmem:[%s725_s0 + $0x2f] sm:$0x1]   ;;  %s487_s11 = smov 96   ;;  %s488_s12 = smov 94   ;;  %v373_v12 = vld [vmem:[%s725_s0 + $0x2e] sm:$0x1]  }
   0x7   :  { %v374_v13 = vld [vmem:[%s725_s0 + $0x2d] sm:$0x1]   ;;  %s489_s17 = smov 92   ;;  %s490_s18 = smov 90   ;;  %v375_v14 = vld [vmem:[%s725_s0 + $0x2c] sm:$0x1]  }
   0x8   :  { %v376_v15 = vld [vmem:[%s725_s0 + $0x2b] sm:$0x1]   ;;  %s492_s24 = smov 86   ;;  %v2_v16 = vld [vmem:[%s725_s0] sm:$0x1]   ;;  %s493_s2 = smov 84  }
   0x9   :  { %v377_v17 = vld [vmem:[%s725_s0 + $0x2a] sm:$0x1]   ;;  %v378_v18 = vld [vmem:[%s725_s0 + $0x29] sm:$0x1]   ;;  %4 = vst.msk [vmem:[#allocation0] sm:$0x1] %vm3_vm0, %v2_v16  }
   0xa   :  { %31 = vrot.lane.b32.xlu0 %v365_v4, %s481_s22  ;;  %37 = vrot.lane.b32.xlu1 %v366_v5, %s482_s23  ;;  %s491_s23 = smov 88   ;;  %s494_s3 = smov 82   ;;  %v379_v19 = vld [vmem:[%s725_s0 + $0x28] sm:$0x1]   ;;  %v380_v20 = vld [vmem:[%s725_s0 + $0x27] sm:$0x1]  }
   0xb   :  { %s495_s8 = smov 80   ;;  %s496_s9 = smov 78   ;;  %v381_v21 = vld [vmem:[%s725_s0 + $0x26] sm:$0x1]   ;;  %v382_v22 = vld [vmem:[%s725_s0 + $0x25] sm:$0x1]  }
   0xc   :  { %s497_s14 = smov 76   ;;  %s498_s15 = smov 74   ;;  %v383_v23 = vld [vmem:[%s725_s0 + $0x24] sm:$0x1]   ;;  %v384_v24 = vld [vmem:[%s725_s0 + $0x23] sm:$0x1]  }
   0xd   :  { %s499_s20 = smov 72   ;;  %s500_s21 = smov 70   ;;  %v385_v25 = vld [vmem:[%s725_s0 + $0x22] sm:$0x1]   ;;  %v386_v26 = vld [vmem:[%s725_s0 + $0x21] sm:$0x1]  }
   0xe   :  { %43 = vrot.lane.b32.xlu0 %v367_v6, %s483_s28  ;;  %49 = vrot.lane.b32.xlu1 %v368_v7, %s484_s29  ;;  %s501_s26 = smov 68   ;;  %s502_s27 = smov 66   ;;  %v387_v27 = vld [vmem:[%s725_s0 + $0x20] sm:$0x1]   ;;  %v388_v28 = vld [vmem:[%s725_s0 + $0x1f] sm:$0x1]  }
   0xf   :  { %s504_s4 = smov 62   ;;  %v389_v29 = vld [vmem:[%s725_s0 + $0x1e] sm:$0x1]   ;;  %v390_v30 = vld [vmem:[%s725_s0 + $0x1d] sm:$0x1]   ;;  %s506_s10 = smov 58  }
  0x10   :  { %v391_v31 = vld [vmem:[%s725_s0 + $0x1c] sm:$0x1]   ;;  %v392_v32 = vld [vmem:[%s725_s0 + $0x1b] sm:$0x1]   ;;  %s508_s16 = smov 54   ;;  %s510_s22 = smov 50  }
  0x11   :  { %v393_v33 = vld [vmem:[%s725_s0 + $0x1a] sm:$0x1]   ;;  %v394_v34 = vld [vmem:[%s725_s0 + $0x19] sm:$0x1]   ;;  %v395_v35 = vld [vmem:[%s725_s0 + $0x18] sm:$0x1]  }
  0x12   :  { %55 = vrot.lane.b32.xlu0 %v369_v8, %s485_s5  ;;  %61 = vrot.lane.b32.xlu1 %v370_v9, %s486_s6  ;;  %v396_v36 = vld [vmem:[%s725_s0 + $0x17] sm:$0x1]   ;;  %s512_s28 = smov 46   ;;  %v397_v37 = vld [vmem:[%s725_s0 + $0x16] sm:$0x1]   ;;  %s514_s5 = smov 42  }
  0x13   :  { %v398_v38 = vld [vmem:[%s725_s0 + $0x15] sm:$0x1]   ;;  %v399_v39 = vld [vmem:[%s725_s0 + $0x14] sm:$0x1]   ;;  %v400_v40 = vld [vmem:[%s725_s0 + $0x13] sm:$0x1]  }
  0x14   :  { %v401_v41 = vld [vmem:[%s725_s0 + $0x12] sm:$0x1]   ;;  %v402_v42 = vld [vmem:[%s725_s0 + $0x11] sm:$0x1]   ;;  %v403_v43 = vld [vmem:[%s725_s0 + $0x10] sm:$0x1]  }
  0x15   :  { %v404_v44 = vld [vmem:[%s725_s0 + $0xf] sm:$0x1]   ;;  %v405_v45 = vld [vmem:[%s725_s0 + $0xe] sm:$0x1]   ;;  %v406_v46 = vld [vmem:[%s725_s0 + $0xd] sm:$0x1]  }
  0x16   :  { %67 = vrot.lane.b32.xlu0 %v371_v10, %s487_s11  ;;  %73 = vrot.lane.b32.xlu1 %v372_v11, %s488_s12  ;;  %s516_s11 = smov 38   ;;  %s522_s29 = smov 26   ;;  %v407_v47 = vld [vmem:[%s725_s0 + $0xc] sm:$0x1]   ;;  %v408_v48 = vld [vmem:[%s725_s0 + $0xb] sm:$0x1]  }
  0x17   :  { %s524_s6 = smov 22   ;;  %v409_v49 = vld [vmem:[%s725_s0 + $0xa] sm:$0x1]   ;;  %v410_v50 = vld [vmem:[%s725_s0 + $0x9] sm:$0x1]   ;;  %s526_s12 = smov 18  }
  0x18   :  { %v411_v51 = vld [vmem:[%s725_s0 + $0x8] sm:$0x1]   ;;  %v412_v52 = vld [vmem:[%s725_s0 + $0x7] sm:$0x1]   ;;  %v413_v53 = vld [vmem:[%s725_s0 + $0x6] sm:$0x1]  }
  0x19   :  { %v414_v54 = vld [vmem:[%s725_s0 + $0x5] sm:$0x1]   ;;  %v415_v55 = vld [vmem:[%s725_s0 + $0x4] sm:$0x1]   ;;  %v416_v56 = vld [vmem:[%s725_s0 + $0x3] sm:$0x1]  }
  0x1a   :  { %79 = vrot.lane.b32.xlu0 %v373_v12, %s489_s17  ;;  %85 = vrot.lane.b32.xlu1 %v374_v13, %s490_s18  ;;  %s518_s17 = smov 34   ;;  %s528_s18 = smov 14   ;;  %v417_v57 = vld [vmem:[%s725_s0 + $0x2] sm:$0x1]   ;;  %v418_v58 = vld [vmem:[%s725_s0 + $0x1] sm:$0x1]  }
  0x1b   :  { %s532_s30 = smov 6   ;;  %s533_s0 = smov 4   ;;  %vm27_vm4 = vcmask 917360   ;;  %vm33_vm5 = vcmask 900960   ;;  %vm39_vm6 = vcmask 884560   ;;  %vm45_vm7 = vcmask 868160  }
  0x1c   :  { %vm51_vm8 = vcmask 851760   ;;  %vm57_vm9 = vcmask 835360   ;;  %vm63_vm10 = vcmask 818960   ;;  %vm69_vm11 = vcmask 802560  }
  0x1d   :  { %vm75_vm12 = vcmask 786160   ;;  %vm81_vm13 = vcmask 769760   ;;  %vm87_vm14 = vcmask 753360   ;;  %vm93_vm15 = vcmask 736960  }
  0x1e   :  { %91 = vrot.lane.b32.xlu0 %v375_v14, %s491_s23  ;;  %97 = vrot.lane.b32.xlu1 %v376_v15, %s492_s24  ;;  %s520_s23 = smov 30   ;;  %s530_s24 = smov 10   ;;  %vm99_vm0 = vcmask 720560  }
  0x22   :  { %103 = vrot.lane.b32.xlu0 %v377_v17, %s493_s2  ;;  %109 = vrot.lane.b32.xlu1 %v378_v18, %s494_s3  ;;  %s503_s3 = smov 64  }
  0x26   :  { %115 = vrot.lane.b32.xlu0 %v379_v19, %s495_s8  ;;  %121 = vrot.lane.b32.xlu1 %v380_v20, %s496_s9  ;;  %s505_s9 = smov 60  }
  0x2a   :  { %127 = vrot.lane.b32.xlu0 %v381_v21, %s497_s14  ;;  %133 = vrot.lane.b32.xlu1 %v382_v22, %s498_s15  ;;  %s507_s15 = smov 56  }
  0x2e   :  { %139 = vrot.lane.b32.xlu0 %v383_v23, %s499_s20  ;;  %145 = vrot.lane.b32.xlu1 %v384_v24, %s500_s21  ;;  %s509_s21 = smov 52  }
  0x32   :  { %151 = vrot.lane.b32.xlu0 %v385_v25, %s501_s26  ;;  %157 = vrot.lane.b32.xlu1 %v386_v26, %s502_s27  ;;  %s511_s27 = smov 48  }
  0x36   :  { %163 = vrot.lane.b32.xlu0 %v387_v27, %s503_s3  ;;  %169 = vrot.lane.b32.xlu1 %v388_v28, %s504_s4  ;;  %s513_s4 = smov 44  }
  0x3a   :  { %175 = vrot.lane.b32.xlu0 %v389_v29, %s505_s9  ;;  %181 = vrot.lane.b32.xlu1 %v390_v30, %s506_s10  ;;  %s515_s10 = smov 40  }
  0x3e   :  { %187 = vrot.lane.b32.xlu0 %v391_v31, %s507_s15  ;;  %193 = vrot.lane.b32.xlu1 %v392_v32, %s508_s16  ;;  %s517_s16 = smov 36  }
  0x42   :  { %199 = vrot.lane.b32.xlu0 %v393_v33, %s509_s21  ;;  %205 = vrot.lane.b32.xlu1 %v394_v34, %s510_s22  ;;  %s519_s22 = smov 32  }
  0x46   :  { %211 = vrot.lane.b32.xlu0 %v395_v35, %s511_s27  ;;  %217 = vrot.lane.b32.xlu1 %v396_v36, %s512_s28  ;;  %s521_s28 = smov 28  }
  0x4a   :  { %223 = vrot.lane.b32.xlu0 %v397_v37, %s513_s4  ;;  %229 = vrot.lane.b32.xlu1 %v398_v38, %s514_s5  ;;  %s523_s5 = smov 24  }
  0x4e   :  { %235 = vrot.lane.b32.xlu0 %v399_v39, %s515_s10  ;;  %241 = vrot.lane.b32.xlu1 %v400_v40, %s516_s11  ;;  %s525_s11 = smov 20  }
  0x52   :  { %247 = vrot.lane.b32.xlu0 %v401_v41, %s517_s16  ;;  %253 = vrot.lane.b32.xlu1 %v402_v42, %s518_s17  ;;  %s527_s17 = smov 16  }
  0x56   :  { %259 = vrot.lane.b32.xlu0 %v403_v43, %s519_s22  ;;  %265 = vrot.lane.b32.xlu1 %v404_v44, %s520_s23  ;;  %s529_s23 = smov 12  }
  0x5a   :  { %271 = vrot.lane.b32.xlu0 %v405_v45, %s521_s28  ;;  %277 = vrot.lane.b32.xlu1 %v406_v46, %s522_s29  ;;  %s531_s29 = smov 8  }
  0x5e   :  { %283 = vrot.lane.b32.xlu0 %v407_v47, %s523_s5  ;;  %289 = vrot.lane.b32.xlu1 %v408_v48, %s524_s6  ;;  %s534_s6 = smov 2  }
  0x62   :  { %295 = vrot.lane.b32.xlu0 %v409_v49, %s525_s11  ;;  %301 = vrot.lane.b32.xlu1 %v410_v50, %s526_s12 }
  0x66   :  { %307 = vrot.lane.b32.xlu0 %v411_v51, %s527_s17  ;;  %313 = vrot.lane.b32.xlu1 %v412_v52, %s528_s18 }
  0x6a   :  { %319 = vrot.lane.b32.xlu0 %v413_v53, %s529_s23  ;;  %325 = vrot.lane.b32.xlu1 %v414_v54, %s530_s24 }
  0x6e   :  { %331 = vrot.lane.b32.xlu0 %v415_v55, %s531_s29  ;;  %337 = vrot.lane.b32.xlu1 %v416_v56, %s532_s30 }
  0x72   :  { %343 = vrot.lane.b32.xlu0 %v417_v57, %s533_s0  ;;  %349 = vrot.lane.b32.xlu1 %v418_v58, %s534_s6 }
  0x74   :  { %v8_v59 = vpop.permute.xlu0 %7   ;;  %v20_v60 = vpop.permute.xlu1 %19  }
  0x75   :  { %10 = vst.msk [vmem:[#allocation0] sm:$0x1] %vm9_vm1, %v8_v59   ;;  %vm105_vm1 = vcmask 704160  }
  0x78   :  { %v14_v61 = vpop.permute.xlu0 %13   ;;  %v26_v62 = vpop.permute.xlu1 %25  }
  0x79   :  { %16 = vst.msk [vmem:[#allocation0] sm:$0x1] %vm15_vm2, %v14_v61   ;;  %vm111_vm2 = vcmask 687760  }
  0x7a   :  { %22 = vst.msk [vmem:[#allocation0] sm:$0x1] %vm21_vm3, %v20_v60   ;;  %vm117_vm3 = vcmask 671360  }
  0x7b   :  { %28 = vst.msk [vmem:[#allocation0] sm:$0x1] %vm27_vm4, %v26_v62   ;;  %vm123_vm4 = vcmask 654960  }
  0x7c   :  { %v32_v63 = vpop.permute.xlu0 %31   ;;  %v38_v0 = vpop.permute.xlu1 %37  }
  0x7d   :  { %34 = vst.msk [vmem:[#allocation0] sm:$0x1] %vm33_vm5, %v32_v63   ;;  %vm129_vm5 = vcmask 638560  }
  0x7e   :  { %40 = vst.msk [vmem:[#allocation0] sm:$0x1] %vm39_vm6, %v38_v0   ;;  %vm135_vm6 = vcmask 622160  }
  0x80   :  { %v44_v1 = vpop.permute.xlu0 %43   ;;  %v50_v2 = vpop.permute.xlu1 %49  }
  0x81   :  { %46 = vst.msk [vmem:[#allocation0] sm:$0x1] %vm45_vm7, %v44_v1   ;;  %vm141_vm7 = vcmask 605760  }
  0x82   :  { %52 = vst.msk [vmem:[#allocation0] sm:$0x1] %vm51_vm8, %v50_v2   ;;  %vm147_vm8 = vcmask 589360  }
  0x84   :  { %v56_v3 = vpop.permute.xlu0 %55   ;;  %v62_v4 = vpop.permute.xlu1 %61  }
  0x85   :  { %58 = vst.msk [vmem:[#allocation0] sm:$0x1] %vm57_vm9, %v56_v3   ;;  %vm153_vm9 = vcmask 572960  }
  0x86   :  { %64 = vst.msk [vmem:[#allocation0] sm:$0x1] %vm63_vm10, %v62_v4   ;;  %vm159_vm10 = vcmask 556560  }
  0x88   :  { %v68_v5 = vpop.permute.xlu0 %67   ;;  %v74_v6 = vpop.permute.xlu1 %73  }
  0x89   :  { %70 = vst.msk [vmem:[#allocation0] sm:$0x1] %vm69_vm11, %v68_v5   ;;  %vm165_vm11 = vcmask 540160  }
  0x8a   :  { %76 = vst.msk [vmem:[#allocation0] sm:$0x1] %vm75_vm12, %v74_v6   ;;  %vm171_vm12 = vcmask 523760  }
  0x8c   :  { %v80_v7 = vpop.permute.xlu0 %79   ;;  %v86_v8 = vpop.permute.xlu1 %85  }
  0x8d   :  { %82 = vst.msk [vmem:[#allocation0] sm:$0x1] %vm81_vm13, %v80_v7   ;;  %vm177_vm13 = vcmask 507360  }
  0x8e   :  { %88 = vst.msk [vmem:[#allocation0] sm:$0x1] %vm87_vm14, %v86_v8   ;;  %vm183_vm14 = vcmask 490960  }
  0x90   :  { %v92_v9 = vpop.permute.xlu0 %91   ;;  %v98_v10 = vpop.permute.xlu1 %97  }
  0x91   :  { %94 = vst.msk [vmem:[#allocation0] sm:$0x1] %vm93_vm15, %v92_v9   ;;  %vm189_vm15 = vcmask 474560  }
  0x92   :  { %100 = vst.msk [vmem:[#allocation0] sm:$0x1] %vm99_vm0, %v98_v10   ;;  %vm195_vm0 = vcmask 458160  }
  0x94   :  { %v104_v11 = vpop.permute.xlu0 %103   ;;  %v110_v12 = vpop.permute.xlu1 %109  }
  0x95   :  { %106 = vst.msk [vmem:[#allocation0] sm:$0x1] %vm105_vm1, %v104_v11   ;;  %vm201_vm1 = vcmask 441760  }
  0x96   :  { %112 = vst.msk [vmem:[#allocation0] sm:$0x1] %vm111_vm2, %v110_v12   ;;  %vm207_vm2 = vcmask 425360  }
  0x98   :  { %v116_v13 = vpop.permute.xlu0 %115   ;;  %v122_v14 = vpop.permute.xlu1 %121  }
  0x99   :  { %118 = vst.msk [vmem:[#allocation0] sm:$0x1] %vm117_vm3, %v116_v13   ;;  %vm213_vm3 = vcmask 408960  }
  0x9a   :  { %124 = vst.msk [vmem:[#allocation0] sm:$0x1] %vm123_vm4, %v122_v14   ;;  %vm219_vm4 = vcmask 392560  }
  0x9c   :  { %v128_v15 = vpop.permute.xlu0 %127   ;;  %v134_v16 = vpop.permute.xlu1 %133  }
  0x9d   :  { %130 = vst.msk [vmem:[#allocation0] sm:$0x1] %vm129_vm5, %v128_v15   ;;  %vm225_vm5 = vcmask 376160  }
  0x9e   :  { %136 = vst.msk [vmem:[#allocation0] sm:$0x1] %vm135_vm6, %v134_v16   ;;  %vm231_vm6 = vcmask 359760  }
  0xa0   :  { %v140_v17 = vpop.permute.xlu0 %139   ;;  %v146_v18 = vpop.permute.xlu1 %145  }
  0xa1   :  { %142 = vst.msk [vmem:[#allocation0] sm:$0x1] %vm141_vm7, %v140_v17   ;;  %vm237_vm7 = vcmask 343360  }
  0xa2   :  { %148 = vst.msk [vmem:[#allocation0] sm:$0x1] %vm147_vm8, %v146_v18   ;;  %vm243_vm8 = vcmask 326960  }
  0xa4   :  { %v152_v19 = vpop.permute.xlu0 %151   ;;  %v158_v20 = vpop.permute.xlu1 %157  }
  0xa5   :  { %154 = vst.msk [vmem:[#allocation0] sm:$0x1] %vm153_vm9, %v152_v19   ;;  %vm249_vm9 = vcmask 310560  }
  0xa6   :  { %160 = vst.msk [vmem:[#allocation0] sm:$0x1] %vm159_vm10, %v158_v20   ;;  %vm255_vm10 = vcmask 294160  }
  0xa8   :  { %v164_v21 = vpop.permute.xlu0 %163   ;;  %v170_v22 = vpop.permute.xlu1 %169  }
  0xa9   :  { %166 = vst.msk [vmem:[#allocation0] sm:$0x1] %vm165_vm11, %v164_v21   ;;  %vm261_vm11 = vcmask 277760  }
  0xaa   :  { %172 = vst.msk [vmem:[#allocation0] sm:$0x1] %vm171_vm12, %v170_v22   ;;  %vm267_vm12 = vcmask 261360  }
  0xac   :  { %v176_v23 = vpop.permute.xlu0 %175   ;;  %v182_v24 = vpop.permute.xlu1 %181  }
  0xad   :  { %178 = vst.msk [vmem:[#allocation0] sm:$0x1] %vm177_vm13, %v176_v23   ;;  %vm273_vm13 = vcmask 244960  }
  0xae   :  { %184 = vst.msk [vmem:[#allocation0] sm:$0x1] %vm183_vm14, %v182_v24   ;;  %vm279_vm14 = vcmask 228560  }
  0xb0   :  { %v188_v25 = vpop.permute.xlu0 %187   ;;  %v194_v26 = vpop.permute.xlu1 %193  }
  0xb1   :  { %190 = vst.msk [vmem:[#allocation0] sm:$0x1] %vm189_vm15, %v188_v25   ;;  %vm285_vm15 = vcmask 212160  }
  0xb2   :  { %196 = vst.msk [vmem:[#allocation0] sm:$0x1] %vm195_vm0, %v194_v26   ;;  %vm291_vm0 = vcmask 195760  }
  0xb4   :  { %v200_v27 = vpop.permute.xlu0 %199   ;;  %v206_v28 = vpop.permute.xlu1 %205  }
  0xb5   :  { %202 = vst.msk [vmem:[#allocation0] sm:$0x1] %vm201_vm1, %v200_v27   ;;  %vm297_vm1 = vcmask 179360  }
  0xb6   :  { %208 = vst.msk [vmem:[#allocation0] sm:$0x1] %vm207_vm2, %v206_v28   ;;  %vm303_vm2 = vcmask 162960  }
  0xb8   :  { %v212_v29 = vpop.permute.xlu0 %211   ;;  %v218_v30 = vpop.permute.xlu1 %217  }
  0xb9   :  { %214 = vst.msk [vmem:[#allocation0] sm:$0x1] %vm213_vm3, %v212_v29   ;;  %vm309_vm3 = vcmask 146560  }
  0xba   :  { %220 = vst.msk [vmem:[#allocation0] sm:$0x1] %vm219_vm4, %v218_v30   ;;  %vm315_vm4 = vcmask 130160  }
  0xbc   :  { %v224_v31 = vpop.permute.xlu0 %223   ;;  %v230_v32 = vpop.permute.xlu1 %229  }
  0xbd   :  { %226 = vst.msk [vmem:[#allocation0] sm:$0x1] %vm225_vm5, %v224_v31   ;;  %vm321_vm5 = vcmask 113760  }
  0xbe   :  { %232 = vst.msk [vmem:[#allocation0] sm:$0x1] %vm231_vm6, %v230_v32   ;;  %vm327_vm6 = vcmask 97360  }
  0xc0   :  { %v236_v33 = vpop.permute.xlu0 %235   ;;  %v242_v34 = vpop.permute.xlu1 %241  }
  0xc1   :  { %238 = vst.msk [vmem:[#allocation0] sm:$0x1] %vm237_vm7, %v236_v33   ;;  %vm333_vm7 = vcmask 80960  }
  0xc2   :  { %244 = vst.msk [vmem:[#allocation0] sm:$0x1] %vm243_vm8, %v242_v34   ;;  %vm339_vm8 = vcmask 64560  }
  0xc4   :  { %v248_v35 = vpop.permute.xlu0 %247   ;;  %v254_v36 = vpop.permute.xlu1 %253  }
  0xc5   :  { %250 = vst.msk [vmem:[#allocation0] sm:$0x1] %vm249_vm9, %v248_v35   ;;  %vm345_vm9 = vcmask 48160  }
  0xc6   :  { %256 = vst.msk [vmem:[#allocation0] sm:$0x1] %vm255_vm10, %v254_v36   ;;  %vm351_vm10 = vcmask 31760  }
  0xc8   :  { %v260_v37 = vpop.permute.xlu0 %259   ;;  %v266_v38 = vpop.permute.xlu1 %265  }
  0xc9   :  { %262 = vst.msk [vmem:[#allocation0] sm:$0x1] %vm261_vm11, %v260_v37  }
  0xca   :  { %268 = vst.msk [vmem:[#allocation0] sm:$0x1] %vm267_vm12, %v266_v38  }
  0xcc   :  { %v272_v39 = vpop.permute.xlu0 %271   ;;  %v278_v40 = vpop.permute.xlu1 %277  }
  0xcd   :  { %274 = vst.msk [vmem:[#allocation0] sm:$0x1] %vm273_vm13, %v272_v39  }
  0xce   :  { %280 = vst.msk [vmem:[#allocation0] sm:$0x1] %vm279_vm14, %v278_v40  }
  0xd0   :  { %v284_v41 = vpop.permute.xlu0 %283   ;;  %v290_v42 = vpop.permute.xlu1 %289  }
  0xd1   :  { %286 = vst.msk [vmem:[#allocation0] sm:$0x1] %vm285_vm15, %v284_v41  }
  0xd2   :  { %292 = vst.msk [vmem:[#allocation0] sm:$0x1] %vm291_vm0, %v290_v42  }
  0xd4   :  { %v296_v43 = vpop.permute.xlu0 %295   ;;  %v302_v44 = vpop.permute.xlu1 %301  }
  0xd5   :  { %298 = vst.msk [vmem:[#allocation0] sm:$0x1] %vm297_vm1, %v296_v43  }
  0xd6   :  { %304 = vst.msk [vmem:[#allocation0] sm:$0x1] %vm303_vm2, %v302_v44  }
  0xd8   :  { %v308_v45 = vpop.permute.xlu0 %307   ;;  %v314_v46 = vpop.permute.xlu1 %313  }
  0xd9   :  { %310 = vst.msk [vmem:[#allocation0] sm:$0x1] %vm309_vm3, %v308_v45  }
  0xda   :  { %316 = vst.msk [vmem:[#allocation0] sm:$0x1] %vm315_vm4, %v314_v46  }
  0xdc   :  { %v320_v47 = vpop.permute.xlu0 %319   ;;  %v326_v48 = vpop.permute.xlu1 %325  }
  0xdd   :  { %322 = vst.msk [vmem:[#allocation0] sm:$0x1] %vm321_vm5, %v320_v47  }
  0xde   :  { %328 = vst.msk [vmem:[#allocation0] sm:$0x1] %vm327_vm6, %v326_v48  }
  0xe0   :  { %v332_v49 = vpop.permute.xlu0 %331   ;;  %v338_v50 = vpop.permute.xlu1 %337  }
  0xe1   :  { %334 = vst.msk [vmem:[#allocation0] sm:$0x1] %vm333_vm7, %v332_v49  }
  0xe2   :  { %340 = vst.msk [vmem:[#allocation0] sm:$0x1] %vm339_vm8, %v338_v50  }
  0xe4   :  { %v344_v51 = vpop.permute.xlu0 %343   ;;  %v350_v52 = vpop.permute.xlu1 %349  }
  0xe5   :  { %346 = vst.msk [vmem:[#allocation0] sm:$0x1] %vm345_vm9, %v344_v51  }
  0xe6   :  { %352 = vst.msk [vmem:[#allocation0] sm:$0x1] %vm351_vm10, %v350_v52  }
  0xed   :  { %v357_v53 = vld [vmem:[#allocation0] sm:$0x1] }
  0xee   :  { %360 = vst [vmem:[%s726_s1] sm:$0x1] %v357_v53 }

// kernel: fnnemb_forward.1
= control target key start
LH: loop header
LB: loop body
LE: loop exit
PB: predicated region body
PF: predicated region fallthrough
CT: control target
= control target key end

     0   :  { %s6795_s0 = inlined_call_operand.vmem [shape: s32[2,64], index: 0, kind: input, shape index: {}]   ;;  %s6796_s1 = inlined_call_operand.vmem [shape: f32[32,128], index: 1, kind: input, shape index: {}]   ;;  %s6797_s2 = inlined_call_operand.vmem [shape: f32[1,128], index: 2, kind: input, shape index: {}]   ;;  %s6798_s3 = inlined_call_operand.vmem [shape: f32[1,128], index: 3, kind: input, shape index: {}]   ;;  %s6799_s4 = inlined_call_operand.vmem [shape: bf16[128,256], index: 4, kind: input, shape index: {}]   ;;  %s6800_s5 = inlined_call_operand.vmem [shape: f32[1,256], index: 5, kind: input, shape index: {}]   ;;  %s6801_s6 = inlined_call_operand.vmem [shape: bf16[256,1024], index: 6, kind: input, shape index: {}]   ;;  %s6802_s7 = inlined_call_operand.vmem [shape: f32[1,1024], index: 7, kind: input, shape index: {}]   ;;  %s6803_s8 = inlined_call_operand.vmem [shape: f32[1,1024], index: 8, kind: input, shape index: {}]   ;;  %s6804_s9 = inlined_call_operand.vmem [shape: f32[1,1024], index: 9, kind: input, shape index: {}]   ;;  %s6805_s10 = inlined_call_operand.vmem [shape: bf16[1024,256], index: 10, kind: input, shape index: {}]   ;;  %s6806_s11 = inlined_call_operand.vmem [shape: f32[1,256], index: 11, kind: input, shape index: {}]   ;;  %s6807_s12 = inlined_call_operand.vmem [shape: f32[1,256], index: 12, kind: input, shape index: {}]   ;;  %s6808_s13 = inlined_call_operand.vmem [shape: f32[1,256], index: 13, kind: input, shape index: {}]   ;;  %s6809_s14 = inlined_call_operand.vmem [shape: bf16[256,256], index: 14, kind: input, shape index: {}]   ;;  %s6810_s15 = inlined_call_operand.vmem [shape: f32[1,256], index: 15, kind: input, shape index: {}]   ;;  %s6811_s16 = inlined_call_operand.vmem [shape: f32[256,64], index: 16, kind: input, shape index: {}]   ;;  %s6812_s17 = inlined_call_operand.<no memory space> [shape: f32[1], index: 17, kind: input, shape index: {}]   ;;  %s6813_s18 = inlined_call_operand.hbm [shape: f32[2,128], index: 18, kind: output, shape index: {}]  }
   0x1   :  { %6849 = sst [smem:[#allocation11_spill]] %s6795_s0 }
   0x2   :  { %6850 = sst [smem:[#allocation12_spill]] %s6796_s1 }
   0x3   :  { %6851 = sst [smem:[#allocation13_spill]] %s6797_s2 }
   0x4   :  { %s6852_s29 = sld [smem:[#allocation12_spill]]  ;;  %v4064_v4 = vld [vmem:[%s6799_s4 + $0x74] ss:$8 sps:$4 sm:$0xff]   ;;  %v4066_v5 = vld [vmem:[%s6799_s4 + $0x70] ss:$8 sps:$4 sm:$0xff]  }
   0x5   :  { %247 = vmatprep.subr.bf16.mxu0 %v4064_v4 }
   0x6   :  { %248 = vmatpush1.bf16.msra.mxu0 %v4066_v5 }
   0xa   :  { %v66_v0 = vld [vmem:[%s6852_s29] sm:$0xff]  ;;  %v68_v1 = vld [vmem:[%s6852_s29 + $0x10] sm:$0xff]  ;;  %v67_v2 = vld [vmem:[%s6852_s29 + $0x8] sm:$0xff] }
   0xb   :  { %72 = vadd.xlane.f32.xlu0 %v66_v0  ;;  %76 = vadd.xlane.f32.xlu1 %v68_v1  ;;  %v69_v3 = vld [vmem:[%s6852_s29 + $0x18] sm:$0xff] }
   0xf   :  { %74 = vadd.xlane.f32.xlu0 %v67_v2  ;;  %78 = vadd.xlane.f32.xlu1 %v69_v3 }
  0x10   :  { %24 = vsyncpa [#allocation5], 0  ;;  %v4067_v22 = vld [vmem:[%s6799_s4 + $0x64] ss:$8 sps:$4 sm:$0xff]   ;;  %v4069_v23 = vld [vmem:[%s6799_s4 + $0x60] ss:$8 sps:$4 sm:$0xff]  }
  0x11   :  { %249 = vmatprep.subr.bf16.mxu0 %v4067_v22  ;;  %v4070_v24 = vld [vmem:[%s6799_s4 + $0x54] ss:$8 sps:$4 sm:$0xff]   ;;  %v4072_v25 = vld [vmem:[%s6799_s4 + $0x50] ss:$8 sps:$4 sm:$0xff]   ;;  %v4073_v26 = vld [vmem:[%s6799_s4 + $0x44] ss:$8 sps:$4 sm:$0xff]  }
  0x12   :  { %250 = vmatpush1.bf16.msra.mxu0 %v4069_v23  ;;  %v4075_v27 = vld [vmem:[%s6799_s4 + $0x40] ss:$8 sps:$4 sm:$0xff]   ;;  %v4076_v28 = vld [vmem:[%s6799_s4 + $0x34] ss:$8 sps:$4 sm:$0xff]   ;;  %v4078_v29 = vld [vmem:[%s6799_s4 + $0x30] ss:$8 sps:$4 sm:$0xff]  }
  0x13   :  { %251 = vmatprep.subr.bf16.mxu0 %v4070_v24  ;;  %v4079_v30 = vld [vmem:[%s6799_s4 + $0x24] ss:$8 sps:$4 sm:$0xff]   ;;  %v4394_v31 = vmov 0   ;;  %v4081_v32 = vld [vmem:[%s6799_s4 + $0x20] ss:$8 sps:$4 sm:$0xff]   ;;  %s6853_s19 = sld [smem:[#allocation13_spill]] }
  0x14   :  { %279 = vmatprep.mubr.bf16.mxu0 %v4394_v31  ;;  %v4082_v33 = vld [vmem:[%s6799_s4 + $0x14] ss:$8 sps:$4 sm:$0xff]   ;;  %v4084_v34 = vld [vmem:[%s6799_s4 + $0x10] ss:$8 sps:$4 sm:$0xff]   ;;  %v4085_v35 = vld [vmem:[%s6799_s4 + $0x4] ss:$8 sps:$4 sm:$0xff]  }
  0x15   :  { %v4087_v36 = vld [vmem:[%s6799_s4] ss:$8 sps:$4 sm:$0xff]   ;;  %s6886_s27 = sld [smem:[#allocation11_spill]]  ;;  %vm3534_vm0 = vcmask 523264   ;;  %vm3639_vm9 = vcmask 130112   ;;  %vm3646_vm10 = vcmask 195712  }
  0x16   :  { %252 = vmatpush1.bf16.msra.mxu0 %v4072_v25  ;;  %v368_v37 = vld [vmem:[%s6801_s6 + $0x1c0] sm:$0xff]  ;;  %v4578_v39 = vld [vmem:[%s6801_s6 + $0x1c8] sm:$0xff]  ;;  %vm3653_vm11 = vcmask 261312   ;;  %vm3674_vm12 = vcmask 1041409   ;;  %vm3677_vm13 = vcmask 254976   ;;  %s4396_s29 = smov [#allocation4]  }
  0x17   :  { %253 = vmatprep.subr.bf16.mxu0 %v4073_v26  ;;  %v372_v38 = vld [vmem:[%s6801_s6 + $0x1e0] sm:$0xff]  ;;  %v4583_v41 = vld [vmem:[%s6801_s6 + $0x1e8] sm:$0xff]  ;;  %s3702_s30 = sshll.u32 %s4396_s29, 4  ;;  %s3703_s30 = int_to_ptr.vmem [resolvable:$true] %s3702_s30 }
  0x18   :  { %v3785_v40 = vcombine.high %v368_v37, %v372_v38  ;;  %v3784_v42 = vcombine.low %v368_v37, %v372_v38  ;;  %v360_v43 = vld [vmem:[%s6801_s6 + $0x180] sm:$0xff]  ;;  %v3786_v45 = vcombine.low %v4578_v39, %v4583_v41  ;;  %v3787_v46 = vcombine.high %v4578_v39, %v4583_v41  ;;  %v337_v39 = vld [vmem:[%s6801_s6 + $0xc8] sm:$0xff]  ;;  %p4377_p1 = scmp.lt.s32.totalorder %s3703_s30, %s3703_s30 }
  0x19   :  { %v364_v44 = vld [vmem:[%s6801_s6 + $0x1a0] sm:$0xff]  ;;  %v341_v41 = vld [vmem:[%s6801_s6 + $0xe8] sm:$0xff] }
  0x1a   :  { %254 = vmatpush1.bf16.msra.mxu0 %v4075_v27  ;;  %v3777_v47 = vcombine.high %v360_v43, %v364_v44  ;;  %v352_v48 = vld [vmem:[%s6801_s6 + $0x140] sm:$0xff]  ;;  %1122 = vmatprep.subr.bf16.mxu1 %v3785_v40  ;;  %v3776_v50 = vcombine.low %v360_v43, %v364_v44 }
  0x1b   :  { %255 = vmatprep.subr.bf16.mxu0 %v4076_v28  ;;  %v356_v49 = vld [vmem:[%s6801_s6 + $0x160] sm:$0xff]  ;;  %1123 = vmatpush1.bf16.msra.mxu1 %v3784_v42 }
  0x1c   :  { %1124 = vmatprep.subr.bf16.mxu1 %v3777_v47  ;;  %v3769_v51 = vcombine.high %v352_v48, %v356_v49  ;;  %v344_v52 = vld [vmem:[%s6801_s6 + $0x100] sm:$0xff]  ;;  %v3768_v54 = vcombine.low %v352_v48, %v356_v49 }
  0x1d   :  { %v348_v53 = vld [vmem:[%s6801_s6 + $0x120] sm:$0xff] }
  0x1e   :  { %256 = vmatpush1.bf16.msra.mxu0 %v4078_v29  ;;  %v3761_v55 = vcombine.high %v344_v52, %v348_v53  ;;  %v336_v56 = vld [vmem:[%s6801_s6 + $0xc0] sm:$0xff]  ;;  %v3760_v58 = vcombine.low %v344_v52, %v348_v53 }
  0x1f   :  { %257 = vmatprep.subr.bf16.mxu0 %v4079_v30  ;;  %1125 = vmatpush1.bf16.msra.mxu1 %v3776_v50  ;;  %v340_v57 = vld [vmem:[%s6801_s6 + $0xe0] sm:$0xff] }
  0x20   :  { %1126 = vmatprep.subr.bf16.mxu1 %v3769_v51  ;;  %v3753_v59 = vcombine.high %v336_v56, %v340_v57  ;;  %v328_v60 = vld [vmem:[%s6801_s6 + $0x80] sm:$0xff]  ;;  %v3752_v62 = vcombine.low %v336_v56, %v340_v57 }
  0x21   :  { %v332_v61 = vld [vmem:[%s6801_s6 + $0xa0] sm:$0xff] }
  0x22   :  { %258 = vmatpush1.bf16.msra.mxu0 %v4081_v32  ;;  %v3745_v63 = vcombine.high %v328_v60, %v332_v61  ;;  %v312_v4 = vld [vmem:[%s6801_s6] sm:$0xff] }
  0x23   :  { %259 = vmatprep.subr.bf16.mxu0 %v4082_v33  ;;  %1127 = vmatpush1.bf16.msra.mxu1 %v3768_v54  ;;  %v316_v5 = vld [vmem:[%s6801_s6 + $0x20] sm:$0xff] }
  0x24   :  { %1128 = vmatprep.subr.bf16.mxu1 %v3761_v55  ;;  %v408_v24 = vld [vmem:[%s6801_s6 + $0x300] sm:$0xff] }
  0x25   :  { %v412_v25 = vld [vmem:[%s6801_s6 + $0x320] sm:$0xff] }
  0x26   :  { %260 = vmatpush1.bf16.msra.mxu0 %v4084_v34  ;;  %v3825_v27 = vcombine.high %v408_v24, %v412_v25  ;;  %v400_v28 = vld [vmem:[%s6801_s6 + $0x2c0] sm:$0xff]  ;;  %v3824_v30 = vcombine.low %v408_v24, %v412_v25  ;;  %v313_v24 = vld [vmem:[%s6801_s6 + $0x8] sm:$0xff] }
  0x27   :  { %261 = vmatprep.subr.bf16.mxu0 %v4085_v35  ;;  %1129 = vmatpush1.bf16.msra.mxu1 %v3760_v58  ;;  %v404_v29 = vld [vmem:[%s6801_s6 + $0x2e0] sm:$0xff]  ;;  %v317_v25 = vld [vmem:[%s6801_s6 + $0x28] sm:$0xff] }
  0x28   :  { %1130 = vmatprep.subr.bf16.mxu1 %v3753_v59  ;;  %v3817_v32 = vcombine.high %v400_v28, %v404_v29  ;;  %v3816_v33 = vcombine.low %v400_v28, %v404_v29  ;;  %v3710_v51 = vld [vmem:[%s6853_s19] ss:$0 sm:$0xff]  ;;  %v361_v59 = vld [vmem:[%s6801_s6 + $0x188] sm:$0xff] }
  0x29   :  { %v3711_v56 = vld [vmem:[%s6798_s3] ss:$0 sm:$0xff]  ;;  %v433_v28 = vld [vmem:[%s6801_s6 + $0x3c8] sm:$0xff] }
  0x2a   :  { %262 = vmatpush1.bf16.msra.mxu0 %v4087_v36  ;;  %v437_v29 = vld [vmem:[%s6801_s6 + $0x3e8] sm:$0xff] }
  0x2b   :  { %1175 = vmatprep.subr.bf16.mxu0 %v3787_v46  ;;  %1131 = vmatpush1.bf16.msra.mxu1 %v3752_v62 }
  0x2c   :  { %1132 = vmatprep.subr.bf16.mxu1 %v3745_v63 }
  0x94   :  { %v73_v6 = vpop.xlane.xlu0 %72  ;;  %v77_v7 = vpop.xlane.xlu1 %76 }
  0x95   :  { %v81_v8 = vmul.f32 0.0078125, %v73_v6  ;;  %v83_v9 = vmul.f32 0.0078125, %v77_v7  ;;  %v3729_v7 = vcombine.high %v312_v4, %v316_v5 }
  0x97   :  { %v4510_v10 = vsub.f32 %v66_v0, %v81_v8  ;;  %v4512_v11 = vsub.f32 %v68_v1, %v83_v9  ;;  %v320_v0 = vld [vmem:[%s6801_s6 + $0x40] sm:$0xff] }
  0x98   :  { %v75_v12 = vpop.xlane.xlu0 %74  ;;  %v79_v13 = vpop.xlane.xlu1 %78  ;;  %v324_v1 = vld [vmem:[%s6801_s6 + $0x60] sm:$0xff] }
  0x99   :  { %v82_v14 = vmul.f32 0.0078125, %v75_v12  ;;  %v89_v15 = vmul.f32 %v4510_v10, %v4510_v10  ;;  %v84_v16 = vmul.f32 0.0078125, %v79_v13  ;;  %v91_v19 = vmul.f32 %v4512_v11, %v4512_v11  ;;  %v432_v8 = vld [vmem:[%s6801_s6 + $0x3c0] sm:$0xff] }
  0x9a   :  { %v3736_v6 = vcombine.low %v320_v0, %v324_v1  ;;  %v436_v9 = vld [vmem:[%s6801_s6 + $0x3e0] sm:$0xff]  ;;  %v3728_v12 = vcombine.low %v312_v4, %v316_v5 }
  0x9b   :  { %v4516_v17 = vsub.f32 %v67_v2, %v82_v14  ;;  %93 = vadd.xlane.f32.xlu0 %v89_v15  ;;  %v4518_v18 = vsub.f32 %v69_v3, %v84_v16  ;;  %v3744_v2 = vcombine.low %v328_v60, %v332_v61  ;;  %v3737_v3 = vcombine.high %v320_v0, %v324_v1  ;;  %v424_v14 = vld [vmem:[%s6801_s6 + $0x380] sm:$0xff] }
  0x9c   :  { %v3849_v13 = vcombine.high %v432_v8, %v436_v9  ;;  %v428_v15 = vld [vmem:[%s6801_s6 + $0x3a0] sm:$0xff]  ;;  %v3848_v16 = vcombine.low %v432_v8, %v436_v9 }
  0x9d   :  { %v90_v20 = vmul.f32 %v4516_v17, %v4516_v17  ;;  %v92_v21 = vmul.f32 %v4518_v18, %v4518_v18  ;;  %1133 = vmatpush1.bf16.msra.mxu1 %v3744_v2  ;;  %v3840_v22 = vcombine.low %v424_v14, %v428_v15  ;;  %v353_v2 = vld [vmem:[%s6801_s6 + $0x148] sm:$0xff] }
  0x9e   :  { %1134 = vmatprep.subr.bf16.mxu1 %v3737_v3  ;;  %v357_v3 = vld [vmem:[%s6801_s6 + $0x168] sm:$0xff] }
  0x9f   :  { %97 = vadd.xlane.f32.xlu0 %v91_v19  ;;  %95 = vadd.xlane.f32.xlu1 %v90_v20  ;;  %v3841_v19 = vcombine.high %v424_v14, %v428_v15  ;;  %v416_v20 = vld [vmem:[%s6801_s6 + $0x340] sm:$0xff]  ;;  %v3771_v5 = vcombine.high %v353_v2, %v357_v3  ;;  %v3770_v9 = vcombine.low %v353_v2, %v357_v3  ;;  %v329_v14 = vld [vmem:[%s6801_s6 + $0x88] sm:$0xff] }
  0xa0   :  { %v333_v15 = vld [vmem:[%s6801_s6 + $0xa8] sm:$0xff]  ;;  %v376_v3 = vld [vmem:[%s6801_s6 + $0x200] sm:$0xff] }
  0xa1   :  { %1135 = vmatpush1.bf16.msra.mxu1 %v3736_v6  ;;  %v345_v6 = vld [vmem:[%s6801_s6 + $0x108] sm:$0xff] }
  0xa2   :  { %1136 = vmatprep.subr.bf16.mxu1 %v3729_v7  ;;  %v349_v7 = vld [vmem:[%s6801_s6 + $0x128] sm:$0xff] }
  0xa3   :  { %99 = vadd.xlane.f32.xlu1 %v92_v21  ;;  %v420_v21 = vld [vmem:[%s6801_s6 + $0x360] sm:$0xff] }
  0xa4   :  { %v3833_v23 = vcombine.high %v416_v20, %v420_v21  ;;  %v3832_v26 = vcombine.low %v416_v20, %v420_v21  ;;  %v321_v20 = vld [vmem:[%s6801_s6 + $0x48] sm:$0xff] }
  0xa5   :  { %1137 = vmatpush1.bf16.msra.mxu1 %v3728_v12  ;;  %v3763_v12 = vcombine.high %v345_v6, %v349_v7  ;;  %v325_v21 = vld [vmem:[%s6801_s6 + $0x68] sm:$0xff] }
  0xa6   :  { %1138 = vmatprep.subr.bf16.mxu1 %v3849_v13  ;;  %v3755_v13 = vcombine.high %v337_v39, %v341_v41 }
  0xa9   :  { %1139 = vmatpush2.bf16.msra.mxu1 %v3848_v16  ;;  %v3754_v16 = vcombine.low %v337_v39, %v341_v41  ;;  %v375_v41 = vld [vmem:[%s6801_s6 + $0x1f8] sm:$0xff] }
  0xaa   :  { %1140 = vmatprep.subr.bf16.mxu1 %v3841_v19  ;;  %v3747_v19 = vcombine.high %v329_v14, %v333_v15 }
  0xad   :  { %1141 = vmatpush2.bf16.msra.mxu1 %v3840_v22  ;;  %v3746_v22 = vcombine.low %v329_v14, %v333_v15  ;;  %v6815_v15 = vlaneseq }
  0xae   :  { %1142 = vmatprep.subr.bf16.mxu1 %v3833_v23  ;;  %v3739_v23 = vcombine.high %v321_v20, %v325_v21 }
  0xb1   :  { %1143 = vmatpush2.bf16.msra.mxu1 %v3832_v26  ;;  %v3738_v26 = vcombine.low %v321_v20, %v325_v21  ;;  %v155_v21 = vld [vmem:[%s6800_s5] sm:$0x3] }
  0xb2   :  { %1144 = vmatprep.subr.bf16.mxu1 %v3825_v27  ;;  %v3731_v27 = vcombine.high %v313_v24, %v317_v25 }
  0xb5   :  { %1145 = vmatpush2.bf16.msra.mxu1 %v3824_v30  ;;  %v3730_v30 = vcombine.low %v313_v24, %v317_v25 }
  0xb6   :  { %1146 = vmatprep.subr.bf16.mxu1 %v3817_v32  ;;  %v3851_v32 = vcombine.high %v433_v28, %v437_v29 }
  0xb9   :  { %1147 = vmatpush2.bf16.msra.mxu1 %v3816_v33  ;;  %v425_v33 = vld [vmem:[%s6801_s6 + $0x388] sm:$0xff] }
 0x124   :  { %v94_v34 = vpop.xlane.xlu0 %93 }
 0x125   :  { %v101_v35 = vmul.f32 0.0078125, %v94_v34  ;;  %v429_v34 = vld [vmem:[%s6801_s6 + $0x3a8] sm:$0xff] }
 0x127   :  { %v105_v36 = vadd.f32 1e-05, %v101_v35  ;;  %v3850_v35 = vcombine.low %v433_v28, %v437_v29 }
 0x128   :  { %v96_v37 = vpop.xlane.xlu1 %95  ;;  %v98_v38 = vpop.xlane.xlu0 %97 }
 0x129   :  { %4328 = vrsqrt.f32 %v105_v36  ;;  %v102_v40 = vmul.f32 0.0078125, %v96_v37  ;;  %v103_v42 = vmul.f32 0.0078125, %v98_v38  ;;  %v3843_v36 = vcombine.high %v425_v33, %v429_v34  ;;  %v417_v37 = vld [vmem:[%s6801_s6 + $0x348] sm:$0xff] }
 0x12a   :  { %v421_v38 = vld [vmem:[%s6801_s6 + $0x368] sm:$0xff] }
 0x12b   :  { %v106_v43 = vadd.f32 1e-05, %v102_v40  ;;  %v107_v44 = vadd.f32 1e-05, %v103_v42  ;;  %v3842_v40 = vcombine.low %v425_v33, %v429_v34  ;;  %v3835_v42 = vcombine.high %v417_v37, %v421_v38 }
 0x12c   :  { %v100_v46 = vpop.xlane.xlu1 %99 }
 0x12d   :  { %4330 = vrsqrt.f32 %v106_v43  ;;  %v104_v47 = vmul.f32 0.0078125, %v100_v46  ;;  %v409_v43 = vld [vmem:[%s6801_s6 + $0x308] sm:$0xff]  ;;  %v3834_v46 = vcombine.low %v417_v37, %v421_v38  ;;  %v366_v38 = vld [vmem:[%s6801_s6 + $0x1b0] sm:$0xff] }
 0x12e   :  { %4332 = vrsqrt.f32 %v107_v44  ;;  %v413_v44 = vld [vmem:[%s6801_s6 + $0x328] sm:$0xff] }
 0x12f   :  { %v108_v48 = vadd.f32 1e-05, %v104_v47  ;;  %v3827_v47 = vcombine.high %v409_v43, %v413_v44 }
 0x131   :  { %4334 = vrsqrt.f32 %v108_v48  ;;  %v401_v48 = vld [vmem:[%s6801_s6 + $0x2c8] sm:$0xff] }
 0x136   :  { %v4329_v49 = vpop.eup %4328 }
 0x137   :  { %v113_v50 = vmul.f32 %v4329_v49, %v4510_v10  ;;  %v365_v10 = vld [vmem:[%s6801_s6 + $0x1a8] sm:$0xff] }
 0x138   :  { %v3779_v1 = vcombine.high %v361_v59, %v365_v10  ;;  %v405_v49 = vld [vmem:[%s6801_s6 + $0x2e8] sm:$0xff] }
 0x139   :  { %v123_v54 = vmul.f32 %v3710_v51, %v113_v50  ;;  %v3826_v50 = vcombine.low %v409_v43, %v413_v44 }
 0x13a   :  { %v4331_v52 = vpop.eup %4330 }
 0x13b   :  { %v114_v53 = vmul.f32 %v4331_v52, %v4516_v17  ;;  %v4333_v55 = vpop.eup %4332  ;;  %v133_v60 = vadd.f32 %v3711_v56, %v123_v54  ;;  %v3818_v52 = vcombine.low %v401_v48, %v405_v49  ;;  %v396_v54 = vld [vmem:[%s6801_s6 + $0x2a0] sm:$0xff] }
 0x13c   :  { %v115_v17 = vmul.f32 %v4333_v55, %v4512_v11  ;;  %v3778_v11 = vcombine.low %v361_v59, %v365_v10  ;;  %v393_v55 = vld [vmem:[%s6801_s6 + $0x288] sm:$0xff] }
 0x13d   :  { %v124_v57 = vmul.f32 %v3710_v51, %v114_v53  ;;  %v392_v53 = vld [vmem:[%s6801_s6 + $0x280] sm:$0xff] }
 0x13e   :  { %v4335_v58 = vpop.eup %4334  ;;  %v125_v4 = vmul.f32 %v3710_v51, %v115_v17  ;;  %v3808_v10 = vcombine.low %v392_v53, %v396_v54  ;;  %v385_v17 = vld [vmem:[%s6801_s6 + $0x248] sm:$0xff] }
 0x13f   :  { %v134_v61 = vadd.f32 %v3711_v56, %v124_v57  ;;  %v116_v62 = vmul.f32 %v4335_v58, %v4518_v18  ;;  %v397_v57 = vld [vmem:[%s6801_s6 + $0x2a8] sm:$0xff] }
 0x140   :  { %v135_v8 = vadd.f32 %v3711_v56, %v125_v4  ;;  %v3810_v58 = vcombine.low %v393_v55, %v397_v57  ;;  %v3811_v59 = vcombine.high %v393_v55, %v397_v57  ;;  %v380_v4 = vld [vmem:[%s6801_s6 + $0x220] sm:$0xff]  ;;  %v355_v55 = vld [vmem:[%s6801_s6 + $0x158] sm:$0xff] }
 0x141   :  { %v137_v63 = vpack.c.bf16 %v134_v61, %v133_v60  ;;  %v126_v0 = vmul.f32 %v3710_v51, %v116_v62  ;;  %v3819_v51 = vcombine.high %v401_v48, %v405_v49  ;;  %v384_v60 = vld [vmem:[%s6801_s6 + $0x240] sm:$0xff] }
 0x142   :  { %v388_v61 = vld [vmem:[%s6801_s6 + $0x260] sm:$0xff] }
 0x143   :  { %280 = vmatmul.mubr.bf16.vlgmr.msra.gmra.mxu0 %v137_v63  ;;  %v136_v18 = vadd.f32 %v3711_v56, %v126_v0  ;;  %v3809_v56 = vcombine.high %v392_v53, %v396_v54  ;;  %v3801_v62 = vcombine.high %v384_v60, %v388_v61  ;;  %v389_v63 = vld [vmem:[%s6801_s6 + $0x268] sm:$0xff]  ;;  %v3800_v2 = vcombine.low %v384_v60, %v388_v61  ;;  %v358_v54 = vld [vmem:[%s6801_s6 + $0x170] sm:$0xff] }
 0x144   :  { %289 = vmatprep.mubr.bf16.mxu0 %v4394_v31  ;;  %1176 = vmatpush1.bf16.msra.mxu0 %v3786_v45  ;;  %v3762_v45 = vcombine.low %v345_v6, %v349_v7  ;;  %v3802_v0 = vcombine.low %v385_v17, %v389_v63 }
 0x145   :  { %1177 = vmatprep.subr.bf16.mxu0 %v3779_v1  ;;  %v138_v31 = vpack.c.bf16 %v136_v18, %v135_v8  ;;  %1148 = vmatprep.subr.bf16.mxu1 %v3809_v56  ;;  %v3803_v1 = vcombine.high %v385_v17, %v389_v63  ;;  %v3793_v18 = vcombine.high %v376_v3, %v380_v4  ;;  %v359_v56 = vld [vmem:[%s6801_s6 + $0x178] sm:$0xff] }
 0x146   :  { %1149 = vmatpush2.bf16.msra.mxu1 %v3808_v10  ;;  %v3792_v8 = vcombine.low %v376_v3, %v380_v4  ;;  %v350_v3 = vld [vmem:[%s6801_s6 + $0x130] sm:$0xff]  ;;  %v347_v4 = vld [vmem:[%s6801_s6 + $0x118] sm:$0xff] }
 0x147   :  { %1150 = vmatprep.subr.bf16.mxu1 %v3801_v62  ;;  %v3775_v62 = vcombine.high %v355_v55, %v359_v56 }
 0x148   :  { %1178 = vmatpush1.bf16.msra.mxu0 %v3778_v11  ;;  %v377_v11 = vld [vmem:[%s6801_s6 + $0x208] sm:$0xff] }
 0x149   :  { %1179 = vmatprep.subr.bf16.mxu0 %v3771_v5  ;;  %v381_v5 = vld [vmem:[%s6801_s6 + $0x228] sm:$0xff] }
 0x14a   :  { %1151 = vmatpush2.bf16.msra.mxu1 %v3800_v2  ;;  %v3794_v6 = vcombine.low %v377_v11, %v381_v5  ;;  %v3795_v7 = vcombine.high %v377_v11, %v381_v5  ;;  %v351_v11 = vld [vmem:[%s6801_s6 + $0x138] sm:$0xff] }
 0x14b   :  { %290 = vmatmul.mubr.bf16.gmra.mxu0 %v138_v31  ;;  %1152 = vmatprep.subr.bf16.mxu1 %v3793_v18  ;;  %v374_v31 = vld [vmem:[%s6801_s6 + $0x1f0] sm:$0xff] }
 0x14c   :  { %1180 = vmatpush1.bf16.msra.mxu0 %v3770_v9  ;;  %v370_v9 = vld [vmem:[%s6801_s6 + $0x1d0] sm:$0xff] }
 0x14d   :  { %1181 = vmatprep.subr.bf16.mxu0 %v3763_v12  ;;  %v371_v12 = vld [vmem:[%s6801_s6 + $0x1d8] sm:$0xff]  ;;  %v3789_v39 = vcombine.high %v370_v9, %v374_v31 }
 0x14e   :  { %1153 = vmatpush2.bf16.msra.mxu1 %v3792_v8  ;;  %v3791_v14 = vcombine.high %v371_v12, %v375_v41  ;;  %v338_v8 = vld [vmem:[%s6801_s6 + $0xd0] sm:$0xff] }
 0x14f   :  { %1228 = vmatprep.subr.bf16.mxu1 %v3789_v39  ;;  %v339_v39 = vld [vmem:[%s6801_s6 + $0xd8] sm:$0xff] }
 0x150   :  { %1182 = vmatpush1.bf16.msra.mxu0 %v3762_v45  ;;  %v3788_v45 = vcombine.low %v370_v9, %v374_v31  ;;  %v3767_v31 = vcombine.high %v347_v4, %v351_v11 }
 0x151   :  { %1183 = vmatprep.subr.bf16.mxu0 %v3755_v13  ;;  %v3790_v13 = vcombine.low %v371_v12, %v375_v41  ;;  %v342_v12 = vld [vmem:[%s6801_s6 + $0xf0] sm:$0xff]  ;;  %v343_v41 = vld [vmem:[%s6801_s6 + $0xf8] sm:$0xff] }
 0x154   :  { %1184 = vmatpush1.bf16.msra.mxu0 %v3754_v16  ;;  %v4796_v16 = vshrl.u32 %v6815_v15, 7 }
 0x155   :  { %1185 = vmatprep.subr.bf16.mxu0 %v3747_v19 }
 0x156   :  { %6854 = vst [vmem:[#allocation7_spill] sm:$0xff] %v4796_v16  ;;  %v4799_v19 = vsub.s32 1, %v4796_v16  ;;  %v4802_v20 = vsub.s32 0, %v4796_v16 }
 0x158   :  { %1186 = vmatpush1.bf16.msra.mxu0 %v3746_v22  ;;  %6855 = vst [vmem:[#allocation8_spill] sm:$0xff] %v4799_v19  ;;  %6856 = vst [vmem:[#allocation9_spill] sm:$0xff] %v4802_v20  ;;  %v160_v24 = vrot.slane %v155_v21, %v4802_v20 }
 0x159   :  { %1187 = vmatprep.subr.bf16.mxu0 %v3739_v23  ;;  %v164_v23 = vrot.slane %v155_v21, %v4799_v19  ;;  %v3759_v21 = vcombine.high %v339_v39, %v343_v41 }
 0x15c   :  { %1188 = vmatpush1.bf16.msra.mxu0 %v3738_v26 }
 0x15d   :  { %1189 = vmatprep.subr.bf16.mxu0 %v3731_v27 }
 0x160   :  { %1190 = vmatpush1.bf16.msra.mxu0 %v3730_v30 }
 0x161   :  { %1191 = vmatprep.subr.bf16.mxu0 %v3851_v32 }
 0x164   :  { %1192 = vmatpush2.bf16.msra.mxu0 %v3850_v35  ;;  %v362_v35 = vld [vmem:[%s6801_s6 + $0x190] sm:$0xff] }
 0x165   :  { %1193 = vmatprep.subr.bf16.mxu0 %v3843_v36  ;;  %v3781_v49 = vcombine.high %v362_v35, %v366_v38  ;;  %v3780_v10 = vcombine.low %v362_v35, %v366_v38 }
 0x168   :  { %1194 = vmatpush2.bf16.msra.mxu0 %v3842_v40  ;;  %v363_v40 = vld [vmem:[%s6801_s6 + $0x198] sm:$0xff] }
 0x169   :  { %1195 = vmatprep.subr.bf16.mxu0 %v3835_v42  ;;  %v367_v42 = vld [vmem:[%s6801_s6 + $0x1b8] sm:$0xff] }
 0x16a   :  { %v3782_v60 = vcombine.low %v363_v40, %v367_v42 }
 0x16c   :  { %1196 = vmatpush2.bf16.msra.mxu0 %v3834_v46 }
 0x16d   :  { %1197 = vmatprep.subr.bf16.mxu0 %v3827_v47 }
 0x170   :  { %1198 = vmatpush2.bf16.msra.mxu0 %v3826_v50  ;;  %v3783_v50 = vcombine.high %v363_v40, %v367_v42  ;;  %v314_v40 = vld [vmem:[%s6801_s6 + $0x10] sm:$0xff] }
 0x171   :  { %1199 = vmatprep.subr.bf16.mxu0 %v3819_v51  ;;  %v354_v51 = vld [vmem:[%s6801_s6 + $0x150] sm:$0xff] }
 0x172   :  { %v3773_v17 = vcombine.high %v354_v51, %v358_v54  ;;  %v3772_v5 = vcombine.low %v354_v51, %v358_v54  ;;  %v318_v42 = vld [vmem:[%s6801_s6 + $0x30] sm:$0xff]  ;;  %v439_v54 = vld [vmem:[%s6801_s6 + $0x3f8] sm:$0xff] }
 0x173   :  { %v434_v51 = vld [vmem:[%s6801_s6 + $0x3d0] sm:$0xff] }
 0x174   :  { %1200 = vmatpush2.bf16.msra.mxu0 %v3818_v52 }
 0x175   :  { %1201 = vmatprep.subr.bf16.mxu0 %v3811_v59 }
 0x178   :  { %1202 = vmatpush2.bf16.msra.mxu0 %v3810_v58 }
 0x179   :  { %1203 = vmatprep.subr.bf16.mxu0 %v3803_v1  ;;  %v346_v1 = vld [vmem:[%s6801_s6 + $0x110] sm:$0xff] }
 0x17a   :  { %v3765_v9 = vcombine.high %v346_v1, %v350_v3 }
 0x17c   :  { %1204 = vmatpush2.bf16.msra.mxu0 %v3802_v0 }
 0x17d   :  { %1205 = vmatprep.subr.bf16.mxu0 %v3795_v7 }
 0x180   :  { %1206 = vmatpush2.bf16.msra.mxu0 %v3794_v6  ;;  %v3774_v6 = vcombine.low %v355_v55, %v359_v56  ;;  %v3732_v55 = vcombine.low %v314_v40, %v318_v42 }
 0x181   :  { %1281 = vmatprep.subr.bf16.mxu0 %v3791_v14  ;;  %v3757_v14 = vcombine.high %v338_v8, %v342_v12 }
 0x203   :  { %v281_v22 = vpop.f32.mrf.mxu0 }
 0x204   :  { %v282_v29 = vadd.f32 %v281_v22, %v160_v24  ;;  %v330_v22 = vld [vmem:[%s6801_s6 + $0x90] sm:$0xff] }
 0x205   :  { %v283_v25 = vpop.f32.mrf.mxu0 }
 0x206   :  { %v284_v27 = vadd.f32 %v283_v25, %v164_v23  ;;  %v300_v43 = vmax.f32 %v282_v29, 0.0  ;;  %v335_v25 = vld [vmem:[%s6801_s6 + $0xb8] sm:$0xff] }
 0x207   :  { %v285_v26 = vpop.f32.mrf.mxu0 }
 0x208   :  { %v286_v28 = vadd.f32 %v285_v26, %v160_v24  ;;  %v301_v36 = vmax.f32 %v284_v27, 0.0  ;;  %v3756_v26 = vcombine.low %v338_v8, %v342_v12  ;;  %v3758_v27 = vcombine.low %v339_v39, %v343_v41  ;;  %v411_v12 = vld [vmem:[%s6801_s6 + $0x318] sm:$0xff] }
 0x209   :  { %v287_v30 = vpop.f32.mrf.mxu0  ;;  %v415_v39 = vld [vmem:[%s6801_s6 + $0x338] sm:$0xff] }
 0x20a   :  { %v288_v32 = vadd.f32 %v287_v30, %v164_v23  ;;  %v302_v33 = vmax.f32 %v286_v28, 0.0  ;;  %v322_v30 = vld [vmem:[%s6801_s6 + $0x50] sm:$0xff] }
 0x20b   :  { %v291_v34 = vpop.f32.mrf.mxu0 }
 0x20c   :  { %v303_v37 = vmax.f32 %v288_v32, 0.0  ;;  %v4821_v47 = vpack.c.bf16 %v302_v33, %v300_v43  ;;  %v292_v57 = vadd.f32 %v291_v34, %v160_v24  ;;  %v326_v32 = vld [vmem:[%s6801_s6 + $0x70] sm:$0xff]  ;;  %v323_v33 = vld [vmem:[%s6801_s6 + $0x58] sm:$0xff] }
 0x20d   :  { %v293_v44 = vpop.f32.mrf.mxu0  ;;  %v327_v34 = vld [vmem:[%s6801_s6 + $0x78] sm:$0xff] }
 0x20e   :  { %v309_v46 = vpack.c.bf16 %v303_v37, %v301_v36  ;;  %v294_v52 = vadd.f32 %v293_v44, %v164_v23  ;;  %v304_v2 = vmax.f32 %v292_v57, 0.0  ;;  %v3741_v37 = vcombine.high %v322_v30, %v326_v32  ;;  %v315_v43 = vld [vmem:[%s6801_s6 + $0x18] sm:$0xff] }
 0x20f   :  { %v295_v48 = vpop.f32.mrf.mxu0  ;;  %v3743_v38 = vcombine.high %v323_v33, %v327_v34  ;;  %v319_v44 = vld [vmem:[%s6801_s6 + $0x38] sm:$0xff] }
 0x210   :  { %v296_v53 = vadd.f32 %v295_v48, %v160_v24  ;;  %1154 = vmatprep.mubr.bf16.mxu1 %v309_v46  ;;  %1207 = vmatprep.mubr.bf16.mxu0 %v309_v46  ;;  %v305_v63 = vmax.f32 %v294_v52, 0.0  ;;  %v331_v24 = vld [vmem:[%s6801_s6 + $0x98] sm:$0xff]  ;;  %v3742_v48 = vcombine.low %v323_v33, %v327_v34  ;;  %v438_v52 = vld [vmem:[%s6801_s6 + $0x3f0] sm:$0xff]  ;;  %v3734_v56 = vcombine.low %v315_v43, %v319_v44 }
 0x211   :  { %v297_v58 = vpop.f32.mrf.mxu0  ;;  %1155 = vmatmul.mubr.bf16.vlgmr.msra.gmra.mxu1 %v4821_v47  ;;  %1208 = vmatmul.mubr.bf16.vlgmr.msra.gmra.mxu0 %v4821_v47  ;;  %v3751_v29 = vcombine.high %v331_v24, %v335_v25  ;;  %v3750_v36 = vcombine.low %v331_v24, %v335_v25  ;;  %v3853_v57 = vcombine.high %v434_v51, %v438_v52  ;;  %v407_v24 = vld [vmem:[%s6801_s6 + $0x2f8] sm:$0xff] }
 0x212   :  { %v298_v59 = vadd.f32 %v297_v58, %v164_v23  ;;  %1229 = vmatpush1.bf16.msra.mxu1 %v3788_v45  ;;  %1282 = vmatpush1.bf16.msra.mxu0 %v3790_v13  ;;  %v306_v61 = vmax.f32 %v296_v53, 0.0  ;;  %v3764_v45 = vcombine.low %v346_v1, %v350_v3  ;;  %v3766_v13 = vcombine.low %v347_v4, %v351_v11  ;;  %v334_v23 = vld [vmem:[%s6801_s6 + $0xb0] sm:$0xff]  ;;  %v435_v53 = vld [vmem:[%s6801_s6 + $0x3d8] sm:$0xff] }
 0x213   :  { %1230 = vmatprep.subr.bf16.mxu1 %v3781_v49  ;;  %1283 = vmatprep.subr.bf16.mxu0 %v3783_v50  ;;  %v3749_v28 = vcombine.high %v330_v22, %v334_v23  ;;  %v3748_v35 = vcombine.low %v330_v22, %v334_v23  ;;  %v3733_v49 = vcombine.high %v314_v40, %v318_v42  ;;  %v418_v1 = vld [vmem:[%s6801_s6 + $0x350] sm:$0xff]  ;;  %v419_v3 = vld [vmem:[%s6801_s6 + $0x358] sm:$0xff] }
 0x214   :  { %v307_v0 = vmax.f32 %v298_v59, 0.0  ;;  %v4851_v7 = vpack.c.bf16 %v306_v61, %v304_v2  ;;  %v3735_v50 = vcombine.high %v315_v43, %v319_v44  ;;  %v3855_v58 = vcombine.high %v435_v53, %v439_v54  ;;  %v426_v59 = vld [vmem:[%s6801_s6 + $0x390] sm:$0xff]  ;;  %v431_v61 = vld [vmem:[%s6801_s6 + $0x3b8] sm:$0xff] }
 0x215   :  { %v422_v2 = vld [vmem:[%s6801_s6 + $0x370] sm:$0xff]  ;;  %v423_v4 = vld [vmem:[%s6801_s6 + $0x378] sm:$0xff] }
 0x216   :  { %v4849_v18 = vpack.c.bf16 %v307_v0, %v305_v63  ;;  %1231 = vmatpush1.bf16.msra.mxu1 %v3780_v10  ;;  %1284 = vmatpush1.bf16.msra.mxu0 %v3782_v60  ;;  %v430_v10 = vld [vmem:[%s6801_s6 + $0x3b0] sm:$0xff]  ;;  %v427_v60 = vld [vmem:[%s6801_s6 + $0x398] sm:$0xff]  ;;  %v3839_v8 = vcombine.high %v419_v3, %v423_v4  ;;  %v3836_v41 = vcombine.low %v418_v1, %v422_v2 }
 0x217   :  { %1232 = vmatprep.subr.bf16.mxu1 %v3773_v17  ;;  %1285 = vmatprep.subr.bf16.mxu0 %v3775_v62  ;;  %v3852_v17 = vcombine.low %v434_v51, %v438_v52  ;;  %v3854_v62 = vcombine.low %v435_v53, %v439_v54  ;;  %v3845_v63 = vcombine.high %v426_v59, %v430_v10  ;;  %v406_v22 = vld [vmem:[%s6801_s6 + $0x2f0] sm:$0xff]  ;;  %v403_v23 = vld [vmem:[%s6801_s6 + $0x2d8] sm:$0xff] }
 0x218   :  { %1164 = vmatprep.mubr.bf16.mxu1 %v4849_v18  ;;  %1217 = vmatprep.mubr.bf16.mxu0 %v4849_v18  ;;  %v3847_v0 = vcombine.high %v427_v60, %v431_v61  ;;  %v3844_v11 = vcombine.low %v426_v59, %v430_v10  ;;  %v399_v33 = vld [vmem:[%s6801_s6 + $0x2b8] sm:$0xff]  ;;  %v390_v40 = vld [vmem:[%s6801_s6 + $0x270] sm:$0xff] }
 0x219   :  { %1165 = vmatmul.mubr.bf16.gmra.mxu1 %v4851_v7  ;;  %1218 = vmatmul.mubr.bf16.gmra.mxu0 %v4851_v7  ;;  %v387_v42 = vld [vmem:[%s6801_s6 + $0x258] sm:$0xff]  ;;  %v382_v51 = vld [vmem:[%s6801_s6 + $0x230] sm:$0xff] }
 0x21a   :  { %1233 = vmatpush1.bf16.msra.mxu1 %v3772_v5  ;;  %1286 = vmatpush1.bf16.msra.mxu0 %v3774_v6  ;;  %v3846_v5 = vcombine.low %v427_v60, %v431_v61  ;;  %v3837_v6 = vcombine.high %v418_v1, %v422_v2  ;;  %v391_v43 = vld [vmem:[%s6801_s6 + $0x278] sm:$0xff]  ;;  %v440_v1 = vld [vmem:[%s6802_s7] sm:$0xff] }
 0x21b   :  { %1260 = vmatprep.mubr.bf16.mxu1 %v309_v46  ;;  %1313 = vmatprep.mubr.bf16.mxu0 %v309_v46  ;;  %v3740_v46 = vcombine.low %v322_v30, %v326_v32  ;;  %v398_v30 = vld [vmem:[%s6801_s6 + $0x2b0] sm:$0xff]  ;;  %v395_v32 = vld [vmem:[%s6801_s6 + $0x298] sm:$0xff] }
 0x21c   :  { %1234 = vmatprep.subr.bf16.mxu1 %v3765_v9  ;;  %1287 = vmatprep.subr.bf16.mxu0 %v3767_v31  ;;  %v410_v9 = vld [vmem:[%s6801_s6 + $0x310] sm:$0xff]  ;;  %v379_v52 = vld [vmem:[%s6801_s6 + $0x218] sm:$0xff] }
 0x21d   :  { %v414_v31 = vld [vmem:[%s6801_s6 + $0x330] sm:$0xff]  ;;  %v383_v53 = vld [vmem:[%s6801_s6 + $0x238] sm:$0xff] }
 0x21e   :  { %1235 = vmatpush1.bf16.msra.mxu1 %v3764_v45  ;;  %1288 = vmatpush1.bf16.msra.mxu0 %v3766_v13  ;;  %v3838_v45 = vcombine.low %v419_v3, %v423_v4  ;;  %v3829_v13 = vcombine.high %v410_v9, %v414_v31  ;;  %v3828_v25 = vcombine.low %v410_v9, %v414_v31  ;;  %v5013_v4 = vsub.s32 2, %v4796_v16 }
 0x21f   :  { %1236 = vmatprep.subr.bf16.mxu1 %v3757_v14  ;;  %1289 = vmatprep.subr.bf16.mxu0 %v3759_v21  ;;  %v3831_v14 = vcombine.high %v411_v12, %v415_v39  ;;  %v402_v21 = vld [vmem:[%s6801_s6 + $0x2d0] sm:$0xff]  ;;  %v3798_v59 = vcombine.low %v379_v52, %v383_v53  ;;  %v5021_v9 = vsub.s32 3, %v4796_v16 }
 0x220   :  { %v3820_v34 = vcombine.low %v402_v21, %v406_v22 }
 0x222   :  { %1237 = vmatpush1.bf16.msra.mxu1 %v3756_v26  ;;  %1290 = vmatpush1.bf16.msra.mxu0 %v3758_v27  ;;  %v3830_v26 = vcombine.low %v411_v12, %v415_v39  ;;  %v3821_v27 = vcombine.high %v402_v21, %v406_v22  ;;  %v5035_v22 = vsub.s32 4, %v4796_v16 }
 0x223   :  { %1238 = vmatprep.subr.bf16.mxu1 %v3749_v28  ;;  %1291 = vmatprep.subr.bf16.mxu0 %v3751_v29  ;;  %v3823_v28 = vcombine.high %v403_v23, %v407_v24  ;;  %v394_v29 = vld [vmem:[%s6801_s6 + $0x290] sm:$0xff] }
 0x224   :  { %v3812_v44 = vcombine.low %v394_v29, %v398_v30 }
 0x226   :  { %1239 = vmatpush1.bf16.msra.mxu1 %v3748_v35  ;;  %1292 = vmatpush1.bf16.msra.mxu0 %v3750_v36  ;;  %v3822_v35 = vcombine.low %v403_v23, %v407_v24  ;;  %v3813_v36 = vcombine.high %v394_v29, %v398_v30  ;;  %v5048_v29 = vsub.s32 5, %v4796_v16 }
 0x227   :  { %1240 = vmatprep.subr.bf16.mxu1 %v3741_v37  ;;  %1293 = vmatprep.subr.bf16.mxu0 %v3743_v38  ;;  %v3815_v37 = vcombine.high %v395_v32, %v399_v33  ;;  %v386_v38 = vld [vmem:[%s6801_s6 + $0x250] sm:$0xff] }
 0x228   :  { %v3804_v54 = vcombine.low %v386_v38, %v390_v40 }
 0x22a   :  { %1241 = vmatpush1.bf16.msra.mxu1 %v3740_v46  ;;  %1294 = vmatpush1.bf16.msra.mxu0 %v3742_v48  ;;  %v3814_v46 = vcombine.low %v395_v32, %v399_v33  ;;  %v3805_v48 = vcombine.high %v386_v38, %v390_v40 }
 0x22b   :  { %1242 = vmatprep.subr.bf16.mxu1 %v3733_v49  ;;  %1295 = vmatprep.subr.bf16.mxu0 %v3735_v50  ;;  %v3807_v49 = vcombine.high %v387_v42, %v391_v43  ;;  %v378_v50 = vld [vmem:[%s6801_s6 + $0x210] sm:$0xff] }
 0x22e   :  { %1243 = vmatpush1.bf16.msra.mxu1 %v3732_v55  ;;  %1296 = vmatpush1.bf16.msra.mxu0 %v3734_v56  ;;  %v3806_v55 = vcombine.low %v387_v42, %v391_v43  ;;  %v3797_v56 = vcombine.high %v378_v50, %v382_v51  ;;  %v5071_v43 = vsub.s32 7, %v4796_v16 }
 0x22f   :  { %1244 = vmatprep.subr.bf16.mxu1 %v3853_v57  ;;  %1297 = vmatprep.subr.bf16.mxu0 %v3855_v58  ;;  %v3799_v57 = vcombine.high %v379_v52, %v383_v53  ;;  %v3796_v58 = vcombine.low %v378_v50, %v382_v51 }
 0x232   :  { %1245 = vmatpush2.bf16.msra.mxu1 %v3852_v17  ;;  %1298 = vmatpush2.bf16.msra.mxu0 %v3854_v62 }
 0x233   :  { %1246 = vmatprep.subr.bf16.mxu1 %v3845_v63  ;;  %1299 = vmatprep.subr.bf16.mxu0 %v3847_v0 }
 0x236   :  { %1247 = vmatpush2.bf16.msra.mxu1 %v3844_v11  ;;  %1300 = vmatpush2.bf16.msra.mxu0 %v3846_v5 }
 0x237   :  { %1248 = vmatprep.subr.bf16.mxu1 %v3837_v6  ;;  %1301 = vmatprep.subr.bf16.mxu0 %v3839_v8  ;;  %v453_v8 = vrot.slane %v440_v1, %v5013_v4 }
 0x23a   :  { %1249 = vmatpush2.bf16.msra.mxu1 %v3836_v41  ;;  %1302 = vmatpush2.bf16.msra.mxu0 %v3838_v45 }
 0x23b   :  { %1250 = vmatprep.subr.bf16.mxu1 %v3829_v13  ;;  %1303 = vmatprep.subr.bf16.mxu0 %v3831_v14  ;;  %v5030_v14 = vrot.slane %v440_v1, %v5021_v9 }
 0x23e   :  { %1251 = vmatpush2.bf16.msra.mxu1 %v3828_v25  ;;  %1304 = vmatpush2.bf16.msra.mxu0 %v3830_v26 }
 0x23f   :  { %1252 = vmatprep.subr.bf16.mxu1 %v3821_v27  ;;  %1305 = vmatprep.subr.bf16.mxu0 %v3823_v28  ;;  %v5045_v28 = vsub.s32 6, %v4796_v16 }
 0x242   :  { %1253 = vmatpush2.bf16.msra.mxu1 %v3820_v34  ;;  %1306 = vmatpush2.bf16.msra.mxu0 %v3822_v35 }
 0x243   :  { %1254 = vmatprep.subr.bf16.mxu1 %v3813_v36  ;;  %1307 = vmatprep.subr.bf16.mxu0 %v3815_v37  ;;  %v5062_v37 = vrot.slane %v440_v1, %v5035_v22 }
 0x246   :  { %1255 = vmatpush2.bf16.msra.mxu1 %v3812_v44  ;;  %1308 = vmatpush2.bf16.msra.mxu0 %v3814_v46 }
 0x247   :  { %1256 = vmatprep.subr.bf16.mxu1 %v3805_v48  ;;  %1309 = vmatprep.subr.bf16.mxu0 %v3807_v49  ;;  %v5077_v48 = vrot.slane %v440_v1, %v5045_v28  ;;  %v5080_v49 = vrot.slane %v440_v1, %v5048_v29 }
 0x24a   :  { %1257 = vmatpush2.bf16.msra.mxu1 %v3804_v54  ;;  %1310 = vmatpush2.bf16.msra.mxu0 %v3806_v55 }
 0x24b   :  { %1258 = vmatprep.subr.bf16.mxu1 %v3797_v56  ;;  %1311 = vmatprep.subr.bf16.mxu0 %v3799_v57 }
 0x24e   :  { %1259 = vmatpush2.bf16.msra.mxu1 %v3796_v58  ;;  %1312 = vmatpush2.bf16.msra.mxu0 %v3798_v59 }
 0x251   :  { %1261 = vmatmul.mubr.bf16.vlgmr.msra.gmra.mxu1 %v4821_v47  ;;  %1314 = vmatmul.mubr.bf16.vlgmr.msra.gmra.mxu0 %v4821_v47  ;;  %v449_v47 = vrot.slane %v440_v1, %v4799_v19 }
 0x252   :  { %1270 = vmatprep.mubr.bf16.mxu1 %v4849_v18  ;;  %1323 = vmatprep.mubr.bf16.mxu0 %v4849_v18  ;;  %v445_v18 = vrot.slane %v440_v1, %v4802_v20 }
 0x259   :  { %1271 = vmatmul.mubr.bf16.gmra.mxu1 %v4851_v7  ;;  %1324 = vmatmul.mubr.bf16.gmra.mxu0 %v4851_v7 }
 0x2d1   :  { %v1156_v10 = vpop.f32.mrf.mxu1  ;;  %v1209_v60 = vpop.f32.mrf.mxu0 }
 0x2d2   :  { %v5017_v6 = vadd.f32 %v1156_v10, %v445_v18  ;;  %v5027_v13 = vadd.f32 %v1209_v60, %v453_v8 }
 0x2d3   :  { %v1158_v61 = vpop.f32.mrf.mxu1  ;;  %v1211_v17 = vpop.f32.mrf.mxu0 }
 0x2d4   :  { %v5015_v7 = vadd.f32 %v1158_v61, %v449_v47  ;;  %v1334_v45 = vmax.f32 %v5017_v6, 0.0  ;;  %v1336_v30 = vmax.f32 %v5027_v13, 0.0  ;;  %v5052_v32 = vadd.f32 %v1211_v17, %v5030_v14 }
 0x2d5   :  { %v1160_v62 = vpop.f32.mrf.mxu1  ;;  %v1213_v63 = vpop.f32.mrf.mxu0  ;;  %v5101_v17 = vrot.slane %v440_v1, %v5071_v43 }
 0x2d6   :  { %v1335_v31 = vmax.f32 %v5015_v7, 0.0  ;;  %v5032_v21 = vadd.f32 %v1160_v62, %v445_v18  ;;  %v5055_v34 = vadd.f32 %v1213_v63, %v453_v8  ;;  %v1337_v50 = vmax.f32 %v5052_v32, 0.0 }
 0x2d7   :  { %v1162_v0 = vpop.f32.mrf.mxu1  ;;  %v1215_v2 = vpop.f32.mrf.mxu0 }
 0x2d8   :  { %v5024_v12 = vadd.f32 %v1162_v0, %v449_v47  ;;  %v1368_v23 = vadd.f32 %v1335_v31, %v1334_v45  ;;  %v6826_v33 = vmax.f32 %v5032_v21, 0.0  ;;  %v6822_v51 = vmax.f32 %v5055_v34, 0.0 }
 0x2d9   :  { %v1166_v3 = vpop.f32.mrf.mxu1  ;;  %v1219_v11 = vpop.f32.mrf.mxu0  ;;  %v5085_v52 = vadd.f32 %v1215_v2, %v5030_v14 }
 0x2da   :  { %v6825_v24 = vmax.f32 %v5024_v12, 0.0  ;;  %v5057_v35 = vadd.f32 %v1166_v3, %v445_v18  ;;  %v1369_v38 = vadd.f32 %v1368_v23, %v1336_v30  ;;  %v5087_v53 = vadd.f32 %v1219_v11, %v453_v8 }
 0x2db   :  { %v1168_v5 = vpop.f32.mrf.mxu1  ;;  %v1221_v39 = vpop.f32.mrf.mxu0  ;;  %v6821_v3 = vmax.f32 %v5085_v52, 0.0 }
 0x2dc   :  { %v5042_v27 = vadd.f32 %v1168_v5, %v449_v47  ;;  %v1377_v40 = vadd.f32 %v6825_v24, %v6826_v33  ;;  %v6820_v56 = vmax.f32 %v5057_v35, 0.0  ;;  %v1370_v59 = vadd.f32 %v1369_v38, %v1337_v50 }
 0x2dd   :  { %v1170_v41 = vpop.f32.mrf.mxu1  ;;  %v1223_v25 = vpop.f32.mrf.mxu0  ;;  %v5115_v1 = vadd.f32 %v1221_v39, %v5030_v14 }
 0x2de   :  { %v6818_v44 = vmax.f32 %v5042_v27, 0.0  ;;  %v5074_v46 = vadd.f32 %v1170_v41, %v445_v18  ;;  %v1378_v10 = vadd.f32 %v1377_v40, %v6822_v51  ;;  %v5098_v60 = vadd.f32 %v1223_v25, %v453_v8 }
 0x2df   :  { %v1172_v26 = vpop.f32.mrf.mxu1  ;;  %v1225_v42 = vpop.f32.mrf.mxu0  ;;  %v6819_v18 = vmax.f32 %v5087_v53, 0.0 }
 0x2e0   :  { %v5059_v36 = vadd.f32 %v1172_v26, %v449_v47  ;;  %v1386_v63 = vadd.f32 %v6818_v44, %v6820_v56  ;;  %v6817_v0 = vmax.f32 %v5074_v46, 0.0  ;;  %v1379_v39 = vadd.f32 %v1378_v10, %v6821_v3 }
 0x2e1   :  { %v6823_v38 = vmax.f32 %v5098_v60, 0.0  ;;  %v6827_v10 = vmax.f32 %v5115_v1, 0.0 }
 0x2e2   :  { %v6816_v57 = vmax.f32 %v5059_v36, 0.0 }
 0x2e4   :  { %v1395_v41 = vadd.f32 %v6816_v57, %v6817_v0  ;;  %v5146_v57 = vadd.f32 %v1225_v42, %v5030_v14 }
 0x311   :  { %v1262_v54 = vpop.f32.mrf.mxu1  ;;  %v1315_v55 = vpop.f32.mrf.mxu0 }
 0x312   :  { %v5092_v58 = vadd.f32 %v1262_v54, %v5062_v37  ;;  %v5118_v11 = vadd.f32 %v1315_v55, %v5077_v48 }
 0x313   :  { %v1264_v61 = vpop.f32.mrf.mxu1  ;;  %v1317_v62 = vpop.f32.mrf.mxu0 }
 0x314   :  { %v6831_v47 = vmax.f32 %v5092_v58, 0.0  ;;  %v5110_v2 = vadd.f32 %v1264_v61, %v5080_v49  ;;  %v5134_v40 = vadd.f32 %v1317_v62, %v5101_v17  ;;  %v1387_v61 = vadd.f32 %v1386_v63, %v6819_v18 }
 0x315   :  { %v1266_v5 = vpop.f32.mrf.mxu1  ;;  %v1319_v8 = vpop.f32.mrf.mxu0  ;;  %v6829_v62 = vmax.f32 %v5118_v11, 0.0  ;;  %v6857_v7 = vmax.f32 %v5092_v58, 0.0  ;;  %v6861_v58 = vmax.f32 %v5024_v12, 0.0 }
 0x316   :  { %v1371_v23 = vadd.f32 %v1370_v59, %v6831_v47  ;;  %v6830_v25 = vmax.f32 %v5110_v2, 0.0  ;;  %v5128_v26 = vadd.f32 %v1266_v5, %v5062_v37  ;;  %v5150_v0 = vadd.f32 %v1319_v8, %v5077_v48 }
 0x317   :  { %v1268_v54 = vpop.f32.mrf.mxu1  ;;  %v1321_v55 = vpop.f32.mrf.mxu0  ;;  %v1341_v14 = vmax.f32 %v5134_v40, 0.0 }
 0x318   :  { %v1372_v59 = vadd.f32 %v1371_v23, %v6830_v25  ;;  %v6824_v15 = vmax.f32 %v5128_v26, 0.0  ;;  %v5142_v5 = vadd.f32 %v1268_v54, %v5080_v49  ;;  %v1396_v23 = vadd.f32 %v1395_v41, %v6823_v38 }
 0x319   :  { %v1272_v44 = vpop.f32.mrf.mxu1  ;;  %v1325_v63 = vpop.f32.mrf.mxu0  ;;  %v5162_v42 = vadd.f32 %v1321_v55, %v5101_v17  ;;  %v6833_v55 = vmax.f32 %v5146_v57, 0.0 }
 0x31a   :  { %v1380_v18 = vadd.f32 %v1379_v39, %v6824_v15  ;;  %v6828_v54 = vmax.f32 %v5142_v5, 0.0  ;;  %v5158_v56 = vadd.f32 %v1272_v44, %v5062_v37  ;;  %v5165_v8 = vadd.f32 %v1325_v63, %v5077_v48 }
 0x31b   :  { %v1274_v3 = vpop.f32.mrf.mxu1  ;;  %v1327_v51 = vpop.f32.mrf.mxu0  ;;  %v1373_v41 = vadd.f32 %v1372_v59, %v6829_v62  ;;  %v1388_v39 = vadd.f32 %v1387_v61, %v6827_v10  ;;  %v1348_v63 = vmax.f32 %v5150_v0, 0.0  ;;  %v1349_v62 = vmax.f32 %v5162_v42, 0.0 }
 0x31c   :  { %v1381_v44 = vadd.f32 %v1380_v18, %v6828_v54  ;;  %v6832_v38 = vmax.f32 %v5158_v56, 0.0  ;;  %v5175_v15 = vadd.f32 %v1274_v3, %v5080_v49  ;;  %v5180_v24 = vadd.f32 %v1327_v51, %v5101_v17 }
 0x31d   :  { %v1276_v33 = vpop.f32.mrf.mxu1  ;;  %v1329_v59 = vpop.f32.mrf.mxu0  ;;  %v1374_v61 = vadd.f32 %v1373_v41, %v1341_v14  ;;  %v1397_v54 = vadd.f32 %v1396_v23, %v6833_v55  ;;  %v6839_v51 = vmax.f32 %v5165_v8, 0.0 }
 0x31e   :  { %v1389_v18 = vadd.f32 %v1388_v39, %v6832_v38  ;;  %v6840_v10 = vmax.f32 %v5175_v15, 0.0  ;;  %v5188_v3 = vadd.f32 %v1276_v33, %v5062_v37  ;;  %v1382_v41 = vadd.f32 %v1381_v44, %v1348_v63 }
 0x31f   :  { %1375 = vadd.xlane.f32.xlu0 %v1374_v61  ;;  %v1278_v25 = vpop.f32.mrf.mxu1  ;;  %v1331_v47 = vpop.f32.mrf.mxu0  ;;  %v5200_v33 = vadd.f32 %v1329_v59, %v5077_v48  ;;  %v6837_v23 = vmax.f32 %v5180_v24, 0.0 }
 0x320   :  { %v1390_v39 = vadd.f32 %v1389_v18, %v6840_v10  ;;  %v6838_v38 = vmax.f32 %v5188_v3, 0.0  ;;  %v5203_v37 = vadd.f32 %v1278_v25, %v5080_v49  ;;  %v1383_v61 = vadd.f32 %v1382_v41, %v1349_v62 }
 0x321   :  { %v5212_v18 = vadd.f32 %v1331_v47, %v5101_v17  ;;  %v6835_v49 = vmax.f32 %v5200_v33, 0.0  ;;  %v6867_v10 = vmax.f32 %v5042_v27, 0.0 }
 0x322   :  { %v1398_v55 = vadd.f32 %v1397_v54, %v6838_v38  ;;  %v6836_v44 = vmax.f32 %v5203_v37, 0.0  ;;  %v1391_v48 = vadd.f32 %v1390_v39, %v6839_v51  ;;  %1384 = vadd.xlane.f32.xlu1 %v1383_v61  ;;  %v6866_v38 = vmax.f32 %v5142_v5, 0.0 }
 0x323   :  { %v6834_v41 = vmax.f32 %v5212_v18, 0.0 }
 0x324   :  { %v1399_v25 = vadd.f32 %v1398_v55, %v6836_v44  ;;  %v1392_v59 = vadd.f32 %v1391_v48, %v6837_v23 }
 0x326   :  { %1393 = vadd.xlane.f32.xlu0 %v1392_v59  ;;  %v1400_v54 = vadd.f32 %v1399_v25, %v6835_v49 }
 0x328   :  { %v1401_v17 = vadd.f32 %v1400_v54, %v6834_v41  ;;  %v6860_v41 = vmax.f32 %v5032_v21, 0.0  ;;  %v6863_v21 = vmax.f32 %v5085_v52, 0.0  ;;  %v6864_v52 = vmax.f32 %v5128_v26, 0.0 }
 0x329   :  { %v6868_v26 = vmax.f32 %v5087_v53, 0.0 }
 0x32a   :  { %1402 = vadd.xlane.f32.xlu1 %v1401_v17 }
 0x3a8   :  { %v1376_v47 = vpop.xlane.xlu0 %1375 }
 0x3a9   :  { %v1405_v39 = vmul.f32 0.0009765625, %v1376_v47 }
 0x3ab   :  { %v5228_v61 = vsub.f32 %v1334_v45, %v1405_v39  ;;  %v5232_v55 = vsub.f32 %v1335_v31, %v1405_v39  ;;  %v5236_v48 = vsub.f32 %v1336_v30, %v1405_v39  ;;  %v1385_v59 = vpop.xlane.xlu1 %1384  ;;  %v5240_v54 = vsub.f32 %v1337_v50, %v1405_v39 }
 0x3ac   :  { %v1406_v25 = vmul.f32 0.0009765625, %v1385_v59  ;;  %v5248_v31 = vsub.f32 %v6857_v7, %v1405_v39  ;;  %v6858_v45 = vmax.f32 %v5110_v2, 0.0  ;;  %v6859_v30 = vmax.f32 %v5118_v11, 0.0 }
 0x3ad   :  { %v1441_v17 = vmul.f32 %v5228_v61, %v5228_v61  ;;  %v1442_v6 = vmul.f32 %v5232_v55, %v5232_v55  ;;  %v1443_v50 = vmul.f32 %v5236_v48, %v5236_v48  ;;  %v1444_v11 = vmul.f32 %v5240_v54, %v5240_v54 }
 0x3ae   :  { %v5252_v13 = vsub.f32 %v6858_v45, %v1405_v39  ;;  %v5256_v47 = vsub.f32 %v6859_v30, %v1405_v39  ;;  %v5262_v49 = vsub.f32 %v6860_v41, %v1406_v25  ;;  %v5266_v7 = vsub.f32 %v6861_v58, %v1406_v25 }
 0x3af   :  { %v1394_v32 = vpop.xlane.xlu0 %1393  ;;  %v1473_v59 = vadd.f32 %v1442_v6, %v1441_v17  ;;  %v6862_v45 = vmax.f32 %v5055_v34, 0.0  ;;  %v5276_v17 = vsub.f32 %v1341_v14, %v1405_v39  ;;  %v5280_v41 = vsub.f32 %v6863_v21, %v1406_v25 }
 0x3b0   :  { %v1407_v2 = vmul.f32 0.0009765625, %v1394_v32  ;;  %v1449_v12 = vmul.f32 %v5262_v49, %v5262_v49  ;;  %v1450_v34 = vmul.f32 %v5266_v7, %v5266_v7  ;;  %v1445_v32 = vmul.f32 %v5248_v31, %v5248_v31 }
 0x3b1   :  { %v5270_v44 = vsub.f32 %v6862_v45, %v1406_v25  ;;  %v1474_v30 = vadd.f32 %v1473_v59, %v1443_v50  ;;  %v1446_v50 = vmul.f32 %v5252_v13, %v5252_v13  ;;  %v1447_v40 = vmul.f32 %v5256_v47, %v5256_v47 }
 0x3b2   :  { %v5294_v39 = vsub.f32 %v6864_v52, %v1406_v25  ;;  %v1482_v58 = vadd.f32 %v1450_v34, %v1449_v12  ;;  %v6865_v45 = vmax.f32 %v5057_v35, 0.0  ;;  %v5304_v51 = vsub.f32 %v6866_v38, %v1406_v25 }
 0x3b3   :  { %v1403_v6 = vpop.xlane.xlu1 %1402  ;;  %v1475_v14 = vadd.f32 %v1474_v30, %v1444_v11  ;;  %v1451_v59 = vmul.f32 %v5270_v44, %v5270_v44  ;;  %v5308_v11 = vsub.f32 %v6867_v10, %v1407_v2  ;;  %v5312_v30 = vsub.f32 %v6868_v26, %v1407_v2 }
 0x3b4   :  { %v5300_v21 = vsub.f32 %v6865_v45, %v1407_v2  ;;  %v1408_v52 = vmul.f32 0.0009765625, %v1403_v6  ;;  %v1448_v12 = vmul.f32 %v5276_v17, %v5276_v17  ;;  %v1452_v35 = vmul.f32 %v5280_v41, %v5280_v41 }
 0x3b5   :  { %v1476_v23 = vadd.f32 %v1475_v14, %v1445_v32  ;;  %v1483_v34 = vadd.f32 %v1482_v58, %v1451_v59  ;;  %v5320_v38 = vsub.f32 %v1348_v63, %v1406_v25  ;;  %v1458_v53 = vmul.f32 %v5308_v11, %v5308_v11 }
 0x3b6   :  { %v1457_v27 = vmul.f32 %v5300_v21, %v5300_v21  ;;  %v5328_v5 = vsub.f32 %v1349_v62, %v1406_v25  ;;  %v1453_v10 = vmul.f32 %v5294_v39, %v5294_v39  ;;  %v1454_v63 = vmul.f32 %v5304_v51, %v5304_v51 }
 0x3b7   :  { %v1477_v32 = vadd.f32 %v1476_v23, %v1446_v50  ;;  %v1484_v6 = vadd.f32 %v1483_v34, %v1452_v35  ;;  %v6869_v23 = vmax.f32 %v5115_v1, 0.0  ;;  %v6870_v14 = vmax.f32 %v5158_v56, 0.0 }
 0x3b8   :  { %v1459_v62 = vmul.f32 %v5312_v30, %v5312_v30  ;;  %v1491_v25 = vadd.f32 %v1458_v53, %v1457_v27  ;;  %v6871_v58 = vmax.f32 %v5074_v46, 0.0  ;;  %v6872_v1 = vmax.f32 %v5059_v36, 0.0 }
 0x3b9   :  { %v5334_v50 = vsub.f32 %v6869_v23, %v1407_v2  ;;  %v1478_v0 = vadd.f32 %v1477_v32, %v1447_v40  ;;  %v5340_v59 = vsub.f32 %v6870_v14, %v1407_v2  ;;  %v1485_v42 = vadd.f32 %v1484_v6, %v1453_v10 }
 0x3ba   :  { %v5346_v45 = vsub.f32 %v6871_v58, %v1408_v52  ;;  %v5350_v26 = vsub.f32 %v6872_v1, %v1408_v52  ;;  %v1455_v35 = vmul.f32 %v5320_v38, %v5320_v38  ;;  %v6873_v56 = vmax.f32 %v5098_v60, 0.0 }
 0x3bb   :  { %v1479_v40 = vadd.f32 %v1478_v0, %v1448_v12  ;;  %v1486_v32 = vadd.f32 %v1485_v42, %v1454_v63  ;;  %v6874_v10 = vmax.f32 %v5175_v15, 0.0  ;;  %v1460_v46 = vmul.f32 %v5334_v50, %v5334_v50 }
 0x3bc   :  { %v5356_v34 = vsub.f32 %v6873_v56, %v1408_v52  ;;  %v1492_v53 = vadd.f32 %v1491_v25, %v1459_v62  ;;  %v1456_v36 = vmul.f32 %v5328_v5, %v5328_v5  ;;  %v6875_v12 = vmax.f32 %v5146_v57, 0.0 }
 0x3bd   :  { %v5360_v27 = vsub.f32 %v6874_v10, %v1407_v2  ;;  %1480 = vadd.xlane.f32.xlu0 %v1479_v40  ;;  %v1465_v60 = vmul.f32 %v5346_v45, %v5346_v45  ;;  %v1466_v15 = vmul.f32 %v5350_v26, %v5350_v26  ;;  %v1487_v23 = vadd.f32 %v1486_v32, %v1455_v35 }
 0x3be   :  { %v5368_v6 = vsub.f32 %v6875_v12, %v1408_v52  ;;  %v6876_v0 = vmax.f32 %v5165_v8, 0.0  ;;  %v1461_v14 = vmul.f32 %v5340_v59, %v5340_v59  ;;  %v1493_v62 = vadd.f32 %v1492_v53, %v1460_v46 }
 0x3bf   :  { %v6877_v42 = vmax.f32 %v5188_v3, 0.0  ;;  %v1467_v25 = vmul.f32 %v5356_v34, %v5356_v34  ;;  %v1500_v58 = vadd.f32 %v1466_v15, %v1465_v60  ;;  %v1488_v1 = vadd.f32 %v1487_v23, %v1456_v36 }
 0x3c0   :  { %v5376_v63 = vsub.f32 %v6876_v0, %v1407_v2  ;;  %v6878_v40 = vmax.f32 %v5180_v24, 0.0  ;;  %v1462_v8 = vmul.f32 %v5360_v27, %v5360_v27  ;;  %v1494_v56 = vadd.f32 %v1493_v62, %v1461_v14 }
 0x3c1   :  { %v5382_v57 = vsub.f32 %v6877_v42, %v1408_v52  ;;  %v6879_v32 = vmax.f32 %v5203_v37, 0.0  ;;  %v1468_v3 = vmul.f32 %v5368_v6, %v5368_v6  ;;  %v1501_v46 = vadd.f32 %v1500_v58, %v1467_v25  ;;  %1489 = vadd.xlane.f32.xlu1 %v1488_v1 }
 0x3c2   :  { %v5388_v35 = vsub.f32 %v6878_v40, %v1407_v2  ;;  %v1463_v53 = vmul.f32 %v5376_v63, %v5376_v63  ;;  %v1495_v36 = vadd.f32 %v1494_v56, %v1462_v8  ;;  %v6880_v24 = vmax.f32 %v5200_v33, 0.0 }
 0x3c3   :  { %v5394_v10 = vsub.f32 %v6879_v32, %v1408_v52  ;;  %v1469_v12 = vmul.f32 %v5382_v57, %v5382_v57  ;;  %v1502_v60 = vadd.f32 %v1501_v46, %v1468_v3  ;;  %v6881_v23 = vmax.f32 %v5212_v18, 0.0 }
 0x3c4   :  { %v5402_v2 = vsub.f32 %v6880_v24, %v1408_v52  ;;  %v1464_v37 = vmul.f32 %v5388_v35, %v5388_v35  ;;  %v1496_v15 = vadd.f32 %v1495_v36, %v1463_v53  ;;  %v1366_v36 = vld [vmem:[%s6803_s8] sm:$0xff]  ;;  %s4372_s8 = scalar_lea.vmem %s3703_s30, 32 }
 0x3c5   :  { %v5410_v0 = vsub.f32 %v6881_v23, %v1408_v52  ;;  %v1470_v14 = vmul.f32 %v5394_v10, %v5394_v10  ;;  %v1503_v62 = vadd.f32 %v1502_v60, %v1469_v12  ;;  %v1367_v24 = vld [vmem:[%s6804_s9] sm:$0xff]  ;;  %v5425_v60 = vrot.slane %v1366_v36, %v5013_v4  ;;  %p4373_p0 = scmp.ne.s32.totalorder %s3703_s30, %s4372_s8  ;;  %p4378_p2 = scmp.lt.s32.totalorder %s4372_s8, %s4372_s8 }
 0x3c6   :  { %v1497_v42 = vadd.f32 %v1496_v15, %v1464_v37  ;;  %v1471_v33 = vmul.f32 %v5402_v2, %v5402_v2  ;;  %v5428_v37 = vrot.slane %v1367_v24, %v5013_v4  ;;  %v5431_v23 = vrot.slane %v1366_v36, %v5021_v9 }
 0x3c7   :  { %v1504_v25 = vadd.f32 %v1503_v62, %v1470_v14  ;;  %v1472_v58 = vmul.f32 %v5410_v0, %v5410_v0  ;;  %v5434_v62 = vrot.slane %v1366_v36, %v4802_v20  ;;  %v5446_v4 = vrot.slane %v1367_v24, %v5035_v22  ;;  %p4379_p3 = por %p4378_p2, %p4377_p1 }
 0x3c8   :  { %1498 = vadd.xlane.f32.xlu0 %v1497_v42  ;;  %v5437_v42 = vrot.slane %v1366_v36, %v4799_v19 }
 0x3c9   :  { %v1505_v1 = vadd.f32 %v1504_v25, %v1471_v33  ;;  %v5440_v25 = vrot.slane %v1367_v24, %v5021_v9  ;;  %v5458_v9 = vrot.slane %v1366_v36, %v5045_v28  ;;  %p4380_p4 = pnand %p4379_p3, %p4373_p0 }
 0x3cb   :  { %v1506_v40 = vadd.f32 %v1505_v1, %v1472_v58  ;;  %v5443_v58 = vrot.slane %v1366_v36, %v5035_v22  ;;  %v5449_v1 = vrot.slane %v1367_v24, %v4802_v20 }
 0x3cd   :  { %1507 = vadd.xlane.f32.xlu1 %v1506_v40 }
 0x446   :  { %v1481_v8 = vpop.xlane.xlu0 %1480 }
 0x447   :  { %v1509_v18 = vmul.f32 0.0009765625, %v1481_v8 }
 0x449   :  { %v1513_v52 = vadd.f32 1e-05, %v1509_v18 }
 0x44a   :  { %v1490_v56 = vpop.xlane.xlu1 %1489 }
 0x44b   :  { %4336 = vrsqrt.f32 %v1513_v52  ;;  %v1510_v32 = vmul.f32 0.0009765625, %v1490_v56  ;;  %v5455_v52 = vrot.slane %v1367_v24, %v4799_v19 }
 0x44d   :  { %v1514_v3 = vadd.f32 1e-05, %v1510_v32 }
 0x44f   :  { %4338 = vrsqrt.f32 %v1514_v3  ;;  %v5463_v3 = vrot.slane %v1366_v36, %v5048_v29 }
 0x451   :  { %v1499_v46 = vpop.xlane.xlu0 %1498 }
 0x452   :  { %v1511_v53 = vmul.f32 0.0009765625, %v1499_v46  ;;  %v5469_v46 = vrot.slane %v1367_v24, %v5045_v28  ;;  %v5485_v28 = vrot.slane %v1367_v24, %v5048_v29 }
 0x454   :  { %v1515_v12 = vadd.f32 1e-05, %v1511_v53  ;;  %6882 = vst [vmem:[#allocation10_spill] sm:$0xff] %v5469_v46  ;;  %v5472_v53 = vrot.slane %v1366_v36, %v5071_v43  ;;  %v5488_v36 = vrot.slane %v1367_v24, %v5071_v43 }
 0x456   :  { %4340 = vrsqrt.f32 %v1515_v12  ;;  %v1508_v15 = vpop.xlane.xlu1 %1507 }
 0x457   :  { %v1512_v14 = vmul.f32 0.0009765625, %v1508_v15 }
 0x458   :  { %v4337_v33 = vpop.eup %4336 }
 0x459   :  { %v1521_v40 = vmul.f32 %v4337_v33, %v5228_v61  ;;  %v1522_v8 = vmul.f32 %v4337_v33, %v5232_v55  ;;  %v1523_v18 = vmul.f32 %v4337_v33, %v5236_v48  ;;  %v1516_v56 = vadd.f32 1e-05, %v1512_v14 }
 0x45a   :  { %v1524_v32 = vmul.f32 %v4337_v33, %v5240_v54  ;;  %v1525_v22 = vmul.f32 %v4337_v33, %v5248_v31  ;;  %v1526_v61 = vmul.f32 %v4337_v33, %v5252_v13  ;;  %v1527_v12 = vmul.f32 %v4337_v33, %v5256_v47 }
 0x45b   :  { %v1594_v55 = vmul.f32 %v5434_v62, %v1521_v40  ;;  %v1595_v48 = vmul.f32 %v5437_v42, %v1522_v8  ;;  %v1596_v54 = vmul.f32 %v5425_v60, %v1523_v18  ;;  %v1528_v15 = vmul.f32 %v4337_v33, %v5276_v17 }
 0x45c   :  { %v4339_v31 = vpop.eup %4338  ;;  %v1597_v14 = vmul.f32 %v5431_v23, %v1524_v32  ;;  %4342 = vrsqrt.f32 %v1516_v56  ;;  %v1598_v47 = vmul.f32 %v5443_v58, %v1525_v22  ;;  %v1599_v8 = vmul.f32 %v5463_v3, %v1526_v61 }
 0x45d   :  { %v5479_v13 = vadd.f32 %v5449_v1, %v1594_v55  ;;  %v5482_v40 = vadd.f32 %v5455_v52, %v1595_v48  ;;  %v5493_v17 = vadd.f32 %v5428_v37, %v1596_v54  ;;  %v1529_v18 = vmul.f32 %v4339_v31, %v5262_v49 }
 0x45e   :  { %v1600_v32 = vmul.f32 %v5458_v9, %v1527_v12  ;;  %v1530_v29 = vmul.f32 %v4339_v31, %v5266_v7  ;;  %v1531_v43 = vmul.f32 %v4339_v31, %v5270_v44  ;;  %v1532_v24 = vmul.f32 %v4339_v31, %v5280_v41 }
 0x45f   :  { %v1699_v33 = vadd.f32 %v5482_v40, %v5479_v13  ;;  %v1601_v56 = vmul.f32 %v5472_v53, %v1528_v15  ;;  %v5504_v22 = vadd.f32 %v5440_v25, %v1597_v14  ;;  %v1533_v55 = vmul.f32 %v4339_v31, %v5294_v39 }
 0x460   :  { %v1534_v48 = vmul.f32 %v4339_v31, %v5304_v51  ;;  %v1602_v49 = vmul.f32 %v5434_v62, %v1529_v18  ;;  %v1603_v12 = vmul.f32 %v5437_v42, %v1530_v29  ;;  %v1604_v7 = vmul.f32 %v5425_v60, %v1531_v43 }
 0x461   :  { %v1700_v61 = vadd.f32 %v1699_v33, %v5493_v17  ;;  %v5513_v41 = vadd.f32 %v5446_v4, %v1598_v47  ;;  %v5516_v54 = vadd.f32 %v5485_v28, %v1599_v8  ;;  %v1535_v14 = vmul.f32 %v4339_v31, %v5320_v38 }
 0x462   :  { %v1536_v39 = vmul.f32 %v4339_v31, %v5328_v5  ;;  %v1605_v51 = vmul.f32 %v5431_v23, %v1532_v24  ;;  %v5523_v33 = vadd.f32 %v5449_v1, %v1602_v49  ;;  %v5526_v18 = vadd.f32 %v5455_v52, %v1603_v12 }
 0x463   :  { %v4341_v44 = vpop.eup %4340  ;;  %v1701_v15 = vadd.f32 %v1700_v61, %v5504_v22  ;;  %v5529_v47 = vadd.f32 %v5469_v46, %v1600_v32  ;;  %v5532_v8 = vadd.f32 %v5488_v36, %v1601_v56  ;;  %v1606_v38 = vmul.f32 %v5443_v58, %v1533_v55 }
 0x464   :  { %v1607_v5 = vmul.f32 %v5463_v3, %v1534_v48  ;;  %v5538_v31 = vadd.f32 %v5428_v37, %v1604_v7  ;;  %v1708_v43 = vadd.f32 %v5526_v18, %v5523_v33  ;;  %v1537_v24 = vmul.f32 %v4341_v44, %v5300_v21 }
 0x465   :  { %v1702_v29 = vadd.f32 %v1701_v15, %v5513_v41  ;;  %v1608_v61 = vmul.f32 %v5458_v9, %v1535_v14  ;;  %v1538_v56 = vmul.f32 %v4341_v44, %v5308_v11  ;;  %v1539_v49 = vmul.f32 %v4341_v44, %v5312_v30 }
 0x466   :  { %v1609_v55 = vmul.f32 %v5472_v53, %v1536_v39  ;;  %v5549_v48 = vadd.f32 %v5440_v25, %v1605_v51  ;;  %v1709_v12 = vadd.f32 %v1708_v43, %v5538_v31  ;;  %v1540_v7 = vmul.f32 %v4341_v44, %v5334_v50 }
 0x467   :  { %v1703_v32 = vadd.f32 %v1702_v29, %v5516_v54  ;;  %v1541_v21 = vmul.f32 %v4341_v44, %v5340_v59  ;;  %v1610_v29 = vmul.f32 %v5434_v62, %v1537_v24  ;;  %v1611_v14 = vmul.f32 %v5437_v42, %v1538_v56 }
 0x468   :  { %v5558_v11 = vadd.f32 %v5446_v4, %v1606_v38  ;;  %v1710_v30 = vadd.f32 %v1709_v12, %v5549_v48  ;;  %v1612_v39 = vmul.f32 %v5425_v60, %v1539_v49  ;;  %v5564_v50 = vadd.f32 %v5485_v28, %v1607_v5 }
 0x469   :  { %v1704_v15 = vadd.f32 %v1703_v32, %v5529_v47  ;;  %v4343_v51 = vpop.eup %4342  ;;  %v1542_v32 = vmul.f32 %v4341_v44, %v5360_v27  ;;  %v1613_v24 = vmul.f32 %v5431_v23, %v1540_v7  ;;  %v5570_v56 = vadd.f32 %v5449_v1, %v1610_v29 }
 0x46a   :  { %v1711_v59 = vadd.f32 %v1710_v30, %v5558_v11  ;;  %v5573_v38 = vadd.f32 %v5455_v52, %v1611_v14  ;;  %v5576_v49 = vadd.f32 %v5469_v46, %v1608_v61  ;;  %v5579_v12 = vadd.f32 %v5488_v36, %v1609_v55 }
 0x46b   :  { %v1705_v43 = vadd.f32 %v1704_v15, %v5532_v8  ;;  %v1543_v5 = vmul.f32 %v4341_v44, %v5376_v63  ;;  %v1614_v27 = vmul.f32 %v5443_v58, %v1541_v21  ;;  %v5585_v7 = vadd.f32 %v5428_v37, %v1612_v39 }
 0x46c   :  { %v1712_v15 = vadd.f32 %v1711_v59, %v5564_v50  ;;  %v1717_v29 = vadd.f32 %v5573_v38, %v5570_v56  ;;  %v1545_v14 = vmul.f32 %v4343_v51, %v5346_v45  ;;  %v1544_v61 = vmul.f32 %v4341_v44, %v5388_v35 }
 0x46d   :  { %1706 = vadd.xlane.f32.xlu0 %v1705_v43  ;;  %v1615_v30 = vmul.f32 %v5463_v3, %v1542_v32  ;;  %v1546_v55 = vmul.f32 %v4343_v51, %v5350_v26  ;;  %v1547_v63 = vmul.f32 %v4343_v51, %v5356_v34  ;;  %v5596_v43 = vadd.f32 %v5440_v25, %v1613_v24 }
 0x46e   :  { %v1713_v21 = vadd.f32 %v1712_v15, %v5576_v49  ;;  %v1718_v39 = vadd.f32 %v1717_v29, %v5585_v7  ;;  %v1548_v59 = vmul.f32 %v4343_v51, %v5368_v6  ;;  %v1616_v16 = vmul.f32 %v5458_v9, %v1543_v5 }
 0x46f   :  { %v5602_v45 = vadd.f32 %v5446_v4, %v1614_v27  ;;  %v1618_v35 = vmul.f32 %v5434_v62, %v1545_v14  ;;  %v1619_v26 = vmul.f32 %v5437_v42, %v1546_v55  ;;  %v1549_v32 = vmul.f32 %v4343_v51, %v5382_v57 }
 0x470   :  { %v1714_v34 = vadd.f32 %v1713_v21, %v5579_v12  ;;  %v1719_v44 = vadd.f32 %v1718_v39, %v5596_v43  ;;  %v1620_v24 = vmul.f32 %v5425_v60, %v1547_v63  ;;  %v1617_v15 = vmul.f32 %v5472_v53, %v1544_v61 }
 0x471   :  { %v5612_v6 = vadd.f32 %v5485_v28, %v1615_v30  ;;  %v5615_v5 = vadd.f32 %v5449_v1, %v1618_v35  ;;  %v1550_v29 = vmul.f32 %v4343_v51, %v5394_v10  ;;  %v1621_v14 = vmul.f32 %v5431_v23, %v1548_v59 }
 0x472   :  { %1715 = vadd.xlane.f32.xlu1 %v1714_v34  ;;  %v1720_v27 = vadd.f32 %v1719_v44, %v5602_v45  ;;  %v5621_v55 = vadd.f32 %v5455_v52, %v1619_v26  ;;  %v5624_v57 = vadd.f32 %v5469_v46, %v1616_v16  ;;  %v1551_v61 = vmul.f32 %v4343_v51, %v5402_v2 }
 0x473   :  { %v1622_v63 = vmul.f32 %v5443_v58, %v1549_v32  ;;  %v5630_v21 = vadd.f32 %v5428_v37, %v1620_v24  ;;  %v5635_v39 = vadd.f32 %v5488_v36, %v1617_v15  ;;  %v1552_v59 = vmul.f32 %v4343_v51, %v5410_v0 }
 0x474   :  { %v1721_v30 = vadd.f32 %v1720_v27, %v5612_v6  ;;  %v1726_v10 = vadd.f32 %v5621_v55, %v5615_v5  ;;  %v1623_v35 = vmul.f32 %v5463_v3, %v1550_v29  ;;  %v5641_v2 = vadd.f32 %v5440_v25, %v1621_v14 }
 0x475   :  { %v1624_v44 = vmul.f32 %v5458_v9, %v1551_v61  ;;  %v5647_v32 = vadd.f32 %v5446_v4, %v1622_v63  ;;  %v1625_v0 = vmul.f32 %v5472_v53, %v1552_v59  ;;  %v4088_v63 = vld [vmem:[%s6805_s10 + $0x70] ss:$8 sps:$4 sm:$0xff]  }
 0x476   :  { %v1722_v16 = vadd.f32 %v1721_v30, %v5624_v57  ;;  %v1727_v26 = vadd.f32 %v1726_v10, %v5630_v21  ;;  %v5652_v51 = vadd.f32 %v5485_v28, %v1623_v35  ;;  %v4090_v10 = vld [vmem:[%s6805_s10 + $0x74] ss:$8 sps:$4 sm:$0xff]   ;;  %v4091_v59 = vld [vmem:[%s6805_s10 + $0x170] ss:$8 sps:$4 sm:$0xff]   ;;  %v4096_v35 = vld [vmem:[%s6805_s10 + $0x64] ss:$8 sps:$4 sm:$0xff]  }
 0x477   :  { %v5656_v27 = vadd.f32 %v5469_v46, %v1624_v44  ;;  %v5660_v14 = vadd.f32 %v5488_v36, %v1625_v0  ;;  %2743 = vmatprep.subr.bf16.mxu1 %v4090_v10  ;;  %v4097_v44 = vld [vmem:[%s6805_s10 + $0x160] ss:$8 sps:$4 sm:$0xff]   ;;  %v4105_v0 = vld [vmem:[%s6805_s10 + $0x154] ss:$8 sps:$4 sm:$0xff]  }
 0x478   :  { %v1723_v34 = vadd.f32 %v1722_v16, %v5635_v39  ;;  %v1728_v24 = vadd.f32 %v1727_v26, %v5641_v2  ;;  %v4093_v16 = vld [vmem:[%s6805_s10 + $0x174] ss:$8 sps:$4 sm:$0xff]   ;;  %v4099_v26 = vld [vmem:[%s6805_s10 + $0x164] ss:$8 sps:$4 sm:$0xff]   ;;  %2744 = vmatpush1.bf16.msra.mxu1 %v4088_v63  ;;  %v4106_v63 = vld [vmem:[%s6805_s10 + $0x40] ss:$8 sps:$4 sm:$0xff]  }
 0x479   :  { %2796 = vmatprep.subr.bf16.mxu0 %v4093_v16  ;;  %2745 = vmatprep.subr.bf16.mxu1 %v4096_v35  ;;  %v4109_v10 = vld [vmem:[%s6805_s10 + $0x140] ss:$8 sps:$4 sm:$0xff]   ;;  %v4117_v16 = vld [vmem:[%s6805_s10 + $0x134] ss:$8 sps:$4 sm:$0xff]   ;;  %v4112_v35 = vld [vmem:[%s6805_s10 + $0x30] ss:$8 sps:$4 sm:$0xff]  }
 0x47a   :  { %1724 = vadd.xlane.f32.xlu0 %v1723_v34  ;;  %v1729_v15 = vadd.f32 %v1728_v24, %v5647_v32  ;;  %v4094_v34 = vld [vmem:[%s6805_s10 + $0x60] ss:$8 sps:$4 sm:$0xff]   ;;  %2797 = vmatpush1.bf16.msra.mxu0 %v4091_v59  ;;  %v4102_v24 = vld [vmem:[%s6805_s10 + $0x54] ss:$8 sps:$4 sm:$0xff]  }
 0x47b   :  { %2798 = vmatprep.subr.bf16.mxu0 %v4099_v26  ;;  %v4114_v59 = vld [vmem:[%s6805_s10 + $0x34] ss:$8 sps:$4 sm:$0xff]   ;;  %v4115_v26 = vld [vmem:[%s6805_s10 + $0x130] ss:$8 sps:$4 sm:$0xff]  }
 0x47c   :  { %v1730_v29 = vadd.f32 %v1729_v15, %v5652_v51  ;;  %2746 = vmatpush1.bf16.msra.mxu1 %v4094_v34  ;;  %v4100_v15 = vld [vmem:[%s6805_s10 + $0x50] ss:$8 sps:$4 sm:$0xff]   ;;  %v4120_v34 = vld [vmem:[%s6805_s10 + $0x24] ss:$8 sps:$4 sm:$0xff]  }
 0x47d   :  { %2747 = vmatprep.subr.bf16.mxu1 %v4102_v24  ;;  %v4118_v24 = vld [vmem:[%s6805_s10 + $0x20] ss:$8 sps:$4 sm:$0xff]  }
 0x47e   :  { %v1731_v61 = vadd.f32 %v1730_v29, %v5656_v27  ;;  %2799 = vmatpush1.bf16.msra.mxu0 %v4097_v44  ;;  %v4103_v29 = vld [vmem:[%s6805_s10 + $0x150] ss:$8 sps:$4 sm:$0xff]   ;;  %v4123_v44 = vld [vmem:[%s6805_s10 + $0x124] ss:$8 sps:$4 sm:$0xff]  }
 0x47f   :  { %2800 = vmatprep.subr.bf16.mxu0 %v4105_v0  ;;  %v4121_v0 = vld [vmem:[%s6805_s10 + $0x120] ss:$8 sps:$4 sm:$0xff]  }
 0x480   :  { %v1732_v30 = vadd.f32 %v1731_v61, %v5660_v14  ;;  %v4108_v61 = vld [vmem:[%s6805_s10 + $0x44] ss:$8 sps:$4 sm:$0xff]   ;;  %2748 = vmatpush1.bf16.msra.mxu1 %v4100_v15  ;;  %v4126_v15 = vld [vmem:[%s6805_s10 + $0x14] ss:$8 sps:$4 sm:$0xff]  }
 0x481   :  { %2749 = vmatprep.subr.bf16.mxu1 %v4108_v61  ;;  %v4124_v61 = vld [vmem:[%s6805_s10 + $0x10] ss:$8 sps:$4 sm:$0xff]  }
 0x482   :  { %1733 = vadd.xlane.f32.xlu1 %v1732_v30  ;;  %v4111_v30 = vld [vmem:[%s6805_s10 + $0x144] ss:$8 sps:$4 sm:$0xff]   ;;  %2801 = vmatpush1.bf16.msra.mxu0 %v4103_v29  ;;  %v4129_v29 = vld [vmem:[%s6805_s10 + $0x114] ss:$8 sps:$4 sm:$0xff]  }
 0x483   :  { %2802 = vmatprep.subr.bf16.mxu0 %v4111_v30  ;;  %v4127_v30 = vld [vmem:[%s6805_s10 + $0x110] ss:$8 sps:$4 sm:$0xff]  }
 0x484   :  { %2750 = vmatpush1.bf16.msra.mxu1 %v4106_v63  ;;  %v4132_v63 = vld [vmem:[%s6805_s10 + $0x4] ss:$8 sps:$4 sm:$0xff]  }
 0x485   :  { %2751 = vmatprep.subr.bf16.mxu1 %v4114_v59  ;;  %v4130_v59 = vld [vmem:[%s6805_s10] ss:$8 sps:$4 sm:$0xff]  }
 0x486   :  { %2803 = vmatpush1.bf16.msra.mxu0 %v4109_v10  ;;  %v4135_v10 = vld [vmem:[%s6805_s10 + $0x104] ss:$8 sps:$4 sm:$0xff]  }
 0x487   :  { %2804 = vmatprep.subr.bf16.mxu0 %v4117_v16  ;;  %v4133_v16 = vld [vmem:[%s6805_s10 + $0x100] ss:$8 sps:$4 sm:$0xff]  }
 0x488   :  { %2752 = vmatpush1.bf16.msra.mxu1 %v4112_v35  ;;  %v4138_v35 = vld [vmem:[%s6805_s10 + $0xf4] ss:$8 sps:$4 sm:$0xff]  }
 0x489   :  { %2753 = vmatprep.subr.bf16.mxu1 %v4120_v34  ;;  %v4136_v34 = vld [vmem:[%s6805_s10 + $0xf0] ss:$8 sps:$4 sm:$0xff]  }
 0x48a   :  { %2805 = vmatpush1.bf16.msra.mxu0 %v4115_v26  ;;  %v4141_v26 = vld [vmem:[%s6805_s10 + $0x1f4] ss:$8 sps:$4 sm:$0xff]  }
 0x48b   :  { %2806 = vmatprep.subr.bf16.mxu0 %v4123_v44  ;;  %v4139_v44 = vld [vmem:[%s6805_s10 + $0x1f0] ss:$8 sps:$4 sm:$0xff]  }
 0x48c   :  { %2754 = vmatpush1.bf16.msra.mxu1 %v4118_v24 }
 0x48d   :  { %2755 = vmatprep.subr.bf16.mxu1 %v4126_v15 }
 0x48e   :  { %2807 = vmatpush1.bf16.msra.mxu0 %v4121_v0 }
 0x48f   :  { %2808 = vmatprep.subr.bf16.mxu0 %v4129_v29 }
 0x490   :  { %2756 = vmatpush1.bf16.msra.mxu1 %v4124_v61 }
 0x491   :  { %2757 = vmatprep.subr.bf16.mxu1 %v4132_v63 }
 0x492   :  { %2809 = vmatpush1.bf16.msra.mxu0 %v4127_v30 }
 0x493   :  { %2810 = vmatprep.subr.bf16.mxu0 %v4135_v10 }
 0x494   :  { %2758 = vmatpush1.bf16.msra.mxu1 %v4130_v59 }
 0x495   :  { %2759 = vmatprep.subr.bf16.mxu1 %v4138_v35 }
 0x496   :  { %2811 = vmatpush1.bf16.msra.mxu0 %v4133_v16 }
 0x497   :  { %2812 = vmatprep.subr.bf16.mxu0 %v4141_v26 }
 0x498   :  { %2760 = vmatpush2.bf16.msra.mxu1 %v4136_v34 }
 0x49a   :  { %2813 = vmatpush2.bf16.msra.mxu0 %v4139_v44 }
 0x4f6   :  { %v1707_v24 = vpop.xlane.xlu0 %1706 }
 0x4f7   :  { %v1735_v0 = vmul.f32 0.0009765625, %v1707_v24 }
 0x4f9   :  { %v5773_v15 = vsub.f32 %v5479_v13, %v1735_v0  ;;  %v5776_v29 = vsub.f32 %v5482_v40, %v1735_v0  ;;  %v5779_v61 = vsub.f32 %v5493_v17, %v1735_v0  ;;  %v5782_v30 = vsub.f32 %v5504_v22, %v1735_v0 }
 0x4fa   :  { %v5789_v16 = vsub.f32 %v5513_v41, %v1735_v0  ;;  %v5794_v17 = vsub.f32 %v5516_v54, %v1735_v0  ;;  %v5808_v24 = vsub.f32 %v5529_v47, %v1735_v0 }
 0x4fb   :  { %v1771_v63 = vmul.f32 %v5773_v15, %v5773_v15  ;;  %v1772_v10 = vmul.f32 %v5776_v29, %v5776_v29  ;;  %v1716_v59 = vpop.xlane.xlu1 %1715  ;;  %v1773_v13 = vmul.f32 %v5779_v61, %v5779_v61  ;;  %v1774_v22 = vmul.f32 %v5782_v30, %v5782_v30 }
 0x4fc   :  { %v1736_v35 = vmul.f32 0.0009765625, %v1716_v59  ;;  %v1775_v54 = vmul.f32 %v5789_v16, %v5789_v16  ;;  %v5820_v59 = vsub.f32 %v5532_v8, %v1735_v0  ;;  %v1776_v47 = vmul.f32 %v5794_v17, %v5794_v17 }
 0x4fd   :  { %v1803_v40 = vadd.f32 %v1772_v10, %v1771_v63 }
 0x4fe   :  { %v5799_v34 = vsub.f32 %v5523_v33, %v1736_v35  ;;  %v5802_v44 = vsub.f32 %v5526_v18, %v1736_v35  ;;  %v5805_v41 = vsub.f32 %v5538_v31, %v1736_v35  ;;  %v5813_v10 = vsub.f32 %v5549_v48, %v1736_v35 }
 0x4ff   :  { %v1804_v26 = vadd.f32 %v1803_v40, %v1773_v13  ;;  %v5825_v13 = vsub.f32 %v5558_v11, %v1736_v35  ;;  %v5832_v8 = vsub.f32 %v5564_v50, %v1736_v35  ;;  %v1778_v11 = vmul.f32 %v5820_v59, %v5820_v59 }
 0x500   :  { %v1779_v33 = vmul.f32 %v5799_v34, %v5799_v34  ;;  %v1780_v18 = vmul.f32 %v5802_v44, %v5802_v44  ;;  %v1781_v48 = vmul.f32 %v5805_v41, %v5805_v41  ;;  %v1782_v0 = vmul.f32 %v5813_v10, %v5813_v10 }
 0x501   :  { %v1805_v63 = vadd.f32 %v1804_v26, %v1774_v22  ;;  %v1777_v26 = vmul.f32 %v5808_v24, %v5808_v24  ;;  %v5839_v46 = vsub.f32 %v5576_v49, %v1736_v35 }
 0x502   :  { %v1812_v40 = vadd.f32 %v1780_v18, %v1779_v33  ;;  %v1783_v33 = vmul.f32 %v5825_v13, %v5825_v13 }
 0x503   :  { %v1806_v31 = vadd.f32 %v1805_v63, %v1775_v54  ;;  %v1725_v22 = vpop.xlane.xlu0 %1724 }
 0x504   :  { %v1737_v20 = vmul.f32 0.0009765625, %v1725_v22  ;;  %v1813_v54 = vadd.f32 %v1812_v40, %v1781_v48  ;;  %v5853_v40 = vsub.f32 %v5579_v12, %v1736_v35 }
 0x505   :  { %v1807_v19 = vadd.f32 %v1806_v31, %v1776_v47 }
 0x506   :  { %v1814_v18 = vadd.f32 %v1813_v54, %v1782_v0  ;;  %v5844_v47 = vsub.f32 %v5570_v56, %v1737_v20  ;;  %v5847_v50 = vsub.f32 %v5573_v38, %v1737_v20  ;;  %v5850_v48 = vsub.f32 %v5585_v7, %v1737_v20 }
 0x507   :  { %v1808_v63 = vadd.f32 %v1807_v19, %v1777_v26  ;;  %v1784_v19 = vmul.f32 %v5832_v8, %v5832_v8  ;;  %v5860_v56 = vsub.f32 %v5596_v43, %v1737_v20  ;;  %v1785_v7 = vmul.f32 %v5839_v46, %v5839_v46 }
 0x508   :  { %v1815_v49 = vadd.f32 %v1814_v18, %v1783_v33  ;;  %v1787_v22 = vmul.f32 %v5844_v47, %v5844_v47  ;;  %v1788_v38 = vmul.f32 %v5847_v50, %v5847_v50  ;;  %v5867_v35 = vsub.f32 %v5602_v45, %v1737_v20 }
 0x509   :  { %v1809_v31 = vadd.f32 %v1808_v63, %v1778_v11  ;;  %v1789_v0 = vmul.f32 %v5850_v48, %v5850_v48  ;;  %v1786_v43 = vmul.f32 %v5853_v40, %v5853_v40  ;;  %v5874_v33 = vsub.f32 %v5612_v6, %v1737_v20 }
 0x50a   :  { %v1816_v26 = vadd.f32 %v1815_v49, %v1784_v19  ;;  %v1821_v54 = vadd.f32 %v1788_v38, %v1787_v22  ;;  %v1790_v18 = vmul.f32 %v5860_v56, %v5860_v56  ;;  %v5888_v38 = vsub.f32 %v5624_v57, %v1737_v20 }
 0x50b   :  { %1810 = vadd.xlane.f32.xlu0 %v1809_v31  ;;  %v1734_v12 = vpop.xlane.xlu1 %1733  ;;  %v1791_v6 = vmul.f32 %v5867_v35, %v5867_v35  ;;  %v1792_v57 = vmul.f32 %v5874_v33, %v5874_v33 }
 0x50c   :  { %v1738_v11 = vmul.f32 0.0009765625, %v1734_v12  ;;  %v1817_v63 = vadd.f32 %v1816_v26, %v1785_v7  ;;  %v1822_v31 = vadd.f32 %v1821_v54, %v1789_v0 }
 0x50e   :  { %v1818_v19 = vadd.f32 %v1817_v63, %v1786_v43  ;;  %v5879_v45 = vsub.f32 %v5615_v5, %v1738_v11  ;;  %v5882_v49 = vsub.f32 %v5621_v55, %v1738_v11  ;;  %v5885_v22 = vsub.f32 %v5630_v21, %v1738_v11 }
 0x50f   :  { %v1823_v7 = vadd.f32 %v1822_v31, %v1790_v18  ;;  %v5893_v26 = vsub.f32 %v5641_v2, %v1738_v11  ;;  %v5900_v21 = vsub.f32 %v5635_v39, %v1737_v20  ;;  %v5905_v0 = vsub.f32 %v5647_v32, %v1738_v11 }
 0x510   :  { %1819 = vadd.xlane.f32.xlu1 %v1818_v19  ;;  %v1795_v5 = vmul.f32 %v5879_v45, %v5879_v45  ;;  %v1796_v55 = vmul.f32 %v5882_v49, %v5882_v49  ;;  %v1797_v2 = vmul.f32 %v5885_v22, %v5885_v22  ;;  %v1793_v43 = vmul.f32 %v5888_v38, %v5888_v38 }
 0x511   :  { %v1824_v12 = vadd.f32 %v1823_v7, %v1791_v6  ;;  %v5912_v18 = vsub.f32 %v5652_v51, %v1738_v11  ;;  %v1798_v20 = vmul.f32 %v5893_v26, %v5893_v26  ;;  %v1794_v31 = vmul.f32 %v5900_v21, %v5900_v21  ;;  %v4142_v51 = vld [vmem:[%s6805_s10 + $0xe0] ss:$8 sps:$4 sm:$0xff]  }
 0x512   :  { %v1830_v54 = vadd.f32 %v1796_v55, %v1795_v5  ;;  %v5919_v19 = vsub.f32 %v5656_v27, %v1738_v11  ;;  %v1799_v6 = vmul.f32 %v5905_v0, %v5905_v0  ;;  %v4144_v55 = vld [vmem:[%s6805_s10 + $0xe4] ss:$8 sps:$4 sm:$0xff]   ;;  %v5933_v27 = vsub.f32 %v5660_v14, %v1738_v11 }
 0x513   :  { %v1825_v63 = vadd.f32 %v1824_v12, %v1792_v57  ;;  %v4145_v57 = vld [vmem:[%s6805_s10 + $0x1e0] ss:$8 sps:$4 sm:$0xff]   ;;  %v1800_v12 = vmul.f32 %v5912_v18, %v5912_v18  ;;  %2761 = vmatprep.subr.bf16.mxu1 %v4144_v55  ;;  %v4159_v55 = vld [vmem:[%s6805_s10 + $0x1c4] ss:$8 sps:$4 sm:$0xff]  }
 0x514   :  { %v1831_v39 = vadd.f32 %v1830_v54, %v1797_v2  ;;  %v4147_v54 = vld [vmem:[%s6805_s10 + $0x1e4] ss:$8 sps:$4 sm:$0xff]   ;;  %2762 = vmatpush2.bf16.msra.mxu1 %v4142_v51  ;;  %v1802_v14 = vmul.f32 %v5933_v27, %v5933_v27  ;;  %v4157_v51 = vld [vmem:[%s6805_s10 + $0x1c0] ss:$8 sps:$4 sm:$0xff]  }
 0x515   :  { %v1826_v32 = vadd.f32 %v1825_v63, %v1793_v43  ;;  %v1801_v43 = vmul.f32 %v5919_v19, %v5919_v19  ;;  %2814 = vmatprep.subr.bf16.mxu0 %v4147_v54  ;;  %v4163_v54 = vld [vmem:[%s6805_s10 + $0x1b0] ss:$8 sps:$4 sm:$0xff]  }
 0x516   :  { %v1832_v7 = vadd.f32 %v1831_v39, %v1798_v20  ;;  %2815 = vmatpush2.bf16.msra.mxu0 %v4145_v57  ;;  %v4148_v39 = vld [vmem:[%s6805_s10 + $0xd0] ss:$8 sps:$4 sm:$0xff]   ;;  %v4162_v57 = vld [vmem:[%s6805_s10 + $0xb4] ss:$8 sps:$4 sm:$0xff]  }
 0x517   :  { %v1827_v5 = vadd.f32 %v1826_v32, %v1794_v31  ;;  %v4150_v31 = vld [vmem:[%s6805_s10 + $0xd4] ss:$8 sps:$4 sm:$0xff]   ;;  %v4151_v32 = vld [vmem:[%s6805_s10 + $0x1d0] ss:$8 sps:$4 sm:$0xff]  }
 0x518   :  { %v1833_v2 = vadd.f32 %v1832_v7, %v1799_v6  ;;  %v4153_v6 = vld [vmem:[%s6805_s10 + $0x1d4] ss:$8 sps:$4 sm:$0xff]   ;;  %2763 = vmatprep.subr.bf16.mxu1 %v4150_v31  ;;  %v4154_v7 = vld [vmem:[%s6805_s10 + $0xc0] ss:$8 sps:$4 sm:$0xff]   ;;  %v4172_v31 = vld [vmem:[%s6805_s10 + $0x90] ss:$8 sps:$4 sm:$0xff]  }
 0x519   :  { %1828 = vadd.xlane.f32.xlu0 %v1827_v5  ;;  %2816 = vmatprep.subr.bf16.mxu0 %v4153_v6  ;;  %v4156_v5 = vld [vmem:[%s6805_s10 + $0xc4] ss:$8 sps:$4 sm:$0xff]  }
 0x51a   :  { %v1834_v63 = vadd.f32 %v1833_v2, %v1800_v12  ;;  %2764 = vmatpush2.bf16.msra.mxu1 %v4148_v39  ;;  %2817 = vmatpush2.bf16.msra.mxu0 %v4151_v32  ;;  %v4165_v12 = vld [vmem:[%s6805_s10 + $0x1b4] ss:$8 sps:$4 sm:$0xff]   ;;  %v4160_v2 = vld [vmem:[%s6805_s10 + $0xb0] ss:$8 sps:$4 sm:$0xff]   ;;  %v4180_v6 = vld [vmem:[%s6805_s10 + $0x84] ss:$8 sps:$4 sm:$0xff]  }
 0x51b   :  { %2765 = vmatprep.subr.bf16.mxu1 %v4156_v5  ;;  %2818 = vmatprep.subr.bf16.mxu0 %v4159_v55  ;;  %v4177_v39 = vld [vmem:[%s6805_s10 + $0x194] ss:$8 sps:$4 sm:$0xff]   ;;  %v4175_v32 = vld [vmem:[%s6805_s10 + $0x190] ss:$8 sps:$4 sm:$0xff]   ;;  %v4178_v5 = vld [vmem:[%s6805_s10 + $0x80] ss:$8 sps:$4 sm:$0xff]  }
 0x51c   :  { %v1835_v11 = vadd.f32 %v1834_v63, %v1801_v43  ;;  %v4168_v43 = vld [vmem:[%s6805_s10 + $0xa4] ss:$8 sps:$4 sm:$0xff]   ;;  %v4166_v63 = vld [vmem:[%s6805_s10 + $0xa0] ss:$8 sps:$4 sm:$0xff]   ;;  %v4186_v55 = vld [vmem:[%s6805_s10 + $0x274] ss:$8 sps:$4 sm:$0xff]  }
 0x51e   :  { %v1836_v20 = vadd.f32 %v1835_v11, %v1802_v14  ;;  %2766 = vmatpush2.bf16.msra.mxu1 %v4154_v7  ;;  %2819 = vmatpush2.bf16.msra.mxu0 %v4157_v51  ;;  %v4169_v14 = vld [vmem:[%s6805_s10 + $0x1a0] ss:$8 sps:$4 sm:$0xff]   ;;  %v4171_v11 = vld [vmem:[%s6805_s10 + $0x1a4] ss:$8 sps:$4 sm:$0xff]  }
 0x51f   :  { %2767 = vmatprep.subr.bf16.mxu1 %v4162_v57  ;;  %2820 = vmatprep.subr.bf16.mxu0 %v4165_v12  ;;  %v4183_v7 = vld [vmem:[%s6805_s10 + $0x184] ss:$8 sps:$4 sm:$0xff]   ;;  %v4181_v51 = vld [vmem:[%s6805_s10 + $0x180] ss:$8 sps:$4 sm:$0xff]   ;;  %v4189_v57 = vld [vmem:[%s6805_s10 + $0x374] ss:$8 sps:$4 sm:$0xff]  }
 0x520   :  { %1837 = vadd.xlane.f32.xlu1 %v1836_v20  ;;  %v4174_v20 = vld [vmem:[%s6805_s10 + $0x94] ss:$8 sps:$4 sm:$0xff]  }
 0x522   :  { %2768 = vmatpush2.bf16.msra.mxu1 %v4160_v2  ;;  %2821 = vmatpush2.bf16.msra.mxu0 %v4163_v54 }
 0x523   :  { %2769 = vmatprep.subr.bf16.mxu1 %v4168_v43  ;;  %2822 = vmatprep.subr.bf16.mxu0 %v4171_v11 }
 0x526   :  { %2770 = vmatpush2.bf16.msra.mxu1 %v4166_v63  ;;  %2823 = vmatpush2.bf16.msra.mxu0 %v4169_v14 }
 0x527   :  { %2771 = vmatprep.subr.bf16.mxu1 %v4174_v20  ;;  %2824 = vmatprep.subr.bf16.mxu0 %v4177_v39 }
 0x52a   :  { %2772 = vmatpush2.bf16.msra.mxu1 %v4172_v31  ;;  %2825 = vmatpush2.bf16.msra.mxu0 %v4175_v32 }
 0x52b   :  { %2773 = vmatprep.subr.bf16.mxu1 %v4180_v6  ;;  %2826 = vmatprep.subr.bf16.mxu0 %v4183_v7 }
 0x52e   :  { %2774 = vmatpush2.bf16.msra.mxu1 %v4178_v5  ;;  %2827 = vmatpush2.bf16.msra.mxu0 %v4181_v51 }
 0x52f   :  { %2849 = vmatprep.subr.bf16.mxu1 %v4186_v55  ;;  %2902 = vmatprep.subr.bf16.mxu0 %v4189_v57 }
 0x594   :  { %v1811_v12 = vpop.xlane.xlu0 %1810 }
 0x595   :  { %v1839_v2 = vmul.f32 0.0009765625, %v1811_v12 }
 0x597   :  { %v1843_v54 = vadd.f32 1e-05, %v1839_v2 }
 0x599   :  { %4344 = vrsqrt.f32 %v1843_v54  ;;  %v1820_v43 = vpop.xlane.xlu1 %1819 }
 0x59a   :  { %v1840_v63 = vmul.f32 0.0009765625, %v1820_v43 }
 0x59c   :  { %v1844_v14 = vadd.f32 1e-05, %v1840_v63 }
 0x59e   :  { %4346 = vrsqrt.f32 %v1844_v14 }
 0x5a2   :  { %v1829_v11 = vpop.xlane.xlu0 %1828 }
 0x5a3   :  { %v1841_v20 = vmul.f32 0.0009765625, %v1829_v11 }
 0x5a5   :  { %v1845_v31 = vadd.f32 1e-05, %v1841_v20 }
 0x5a6   :  { %v4345_v39 = vpop.eup %4344 }
 0x5a7   :  { %v1852_v32 = vmul.f32 %v4345_v39, %v5776_v29  ;;  %v1854_v6 = vmul.f32 %v4345_v39, %v5782_v30  ;;  %v1851_v7 = vmul.f32 %v4345_v39, %v5773_v15  ;;  %v1853_v5 = vmul.f32 %v4345_v39, %v5779_v61 }
 0x5a8   :  { %v1856_v51 = vmul.f32 %v4345_v39, %v5794_v17  ;;  %v1858_v55 = vmul.f32 %v4345_v39, %v5820_v59  ;;  %v1855_v57 = vmul.f32 %v4345_v39, %v5789_v16  ;;  %4348 = vrsqrt.f32 %v1845_v31 }
 0x5a9   :  { %v1884_v12 = vmul.f32 %v1852_v32, %v5437_v42  ;;  %v1886_v2 = vmul.f32 %v1854_v6, %v5431_v23  ;;  %v1883_v54 = vmul.f32 %v1851_v7, %v5434_v62  ;;  %v1885_v29 = vmul.f32 %v1853_v5, %v5425_v60  ;;  %v1838_v30 = vpop.xlane.xlu1 %1837 }
 0x5aa   :  { %v1857_v15 = vmul.f32 %v4345_v39, %v5808_v24  ;;  %v1842_v43 = vmul.f32 0.0009765625, %v1838_v30  ;;  %v1888_v61 = vmul.f32 %v1856_v51, %v5463_v3  ;;  %v1890_v17 = vmul.f32 %v1858_v55, %v5472_v53 }
 0x5ab   :  { %v1887_v59 = vmul.f32 %v1855_v57, %v5443_v58  ;;  %v4347_v16 = vpop.eup %4346  ;;  %v1916_v63 = vadd.f32 %v1884_v12, %v5455_v52  ;;  %v1918_v14 = vadd.f32 %v1886_v2, %v5440_v25  ;;  %v1915_v11 = vadd.f32 %v1883_v54, %v5449_v1 }
 0x5ac   :  { %v1917_v20 = vadd.f32 %v1885_v29, %v5428_v37  ;;  %v1846_v31 = vadd.f32 1e-05, %v1842_v43  ;;  %v1860_v32 = vmul.f32 %v4347_v16, %v5802_v44  ;;  %v1862_v24 = vmul.f32 %v4347_v16, %v5813_v10 }
 0x5ad   :  { %v1859_v39 = vmul.f32 %v4347_v16, %v5799_v34  ;;  %v1861_v6 = vmul.f32 %v4347_v16, %v5805_v41  ;;  %v1864_v7 = vmul.f32 %v4347_v16, %v5832_v8  ;;  %v1863_v5 = vmul.f32 %v4347_v16, %v5825_v13 }
 0x5ae   :  { %v1889_v51 = vmul.f32 %v1857_v15, %v5458_v9  ;;  %4350 = vrsqrt.f32 %v1846_v31  ;;  %v1892_v55 = vmul.f32 %v1860_v32, %v5437_v42  ;;  %v1894_v57 = vmul.f32 %v1862_v24, %v5431_v23  ;;  %v4184_v32 = vld [vmem:[%s6805_s10 + $0x270] ss:$8 sps:$4 sm:$0xff]  }
 0x5af   :  { %v1891_v12 = vmul.f32 %v1859_v39, %v5434_v62  ;;  %v1893_v44 = vmul.f32 %v1861_v6, %v5425_v60  ;;  %v1896_v10 = vmul.f32 %v1864_v7, %v5463_v3  ;;  %v1866_v34 = vmul.f32 %v4347_v16, %v5853_v40  ;;  %v6883_v7 = vld [vmem:[#allocation10_spill] sm:$0xff] }
 0x5b0   :  { %v1895_v41 = vmul.f32 %v1863_v5, %v5443_v58  ;;  %v1924_v8 = vadd.f32 %v1892_v55, %v5455_v52  ;;  %v1926_v13 = vadd.f32 %v1894_v57, %v5440_v25  ;;  %v1865_v54 = vmul.f32 %v4347_v16, %v5839_v46  ;;  %v4187_v46 = vld [vmem:[%s6805_s10 + $0x370] ss:$8 sps:$4 sm:$0xff]  }
 0x5b1   :  { %v1923_v2 = vadd.f32 %v1891_v12, %v5449_v1  ;;  %v1925_v29 = vadd.f32 %v1893_v44, %v5428_v37  ;;  %v6061_v30 = vadd.f32 %v1888_v61, %v5485_v28  ;;  %v6064_v15 = vadd.f32 %v1887_v59, %v5446_v4  ;;  %v4192_v59 = vld [vmem:[%s6805_s10 + $0x264] ss:$8 sps:$4 sm:$0xff]   ;;  %v4190_v44 = vld [vmem:[%s6805_s10 + $0x260] ss:$8 sps:$4 sm:$0xff]  }
 0x5b2   :  { %v6067_v40 = vadd.f32 %v1895_v41, %v5446_v4  ;;  %v1948_v43 = vpack.c.bf16 %v1924_v8, %v1916_v63  ;;  %v1950_v31 = vpack.c.bf16 %v1926_v13, %v1918_v14  ;;  %v1897_v61 = vmul.f32 %v1865_v54, %v5458_v9  ;;  %v4195_v63 = vld [vmem:[%s6805_s10 + $0x364] ss:$8 sps:$4 sm:$0xff]   ;;  %v4198_v41 = vld [vmem:[%s6805_s10 + $0x254] ss:$8 sps:$4 sm:$0xff]  }
 0x5b3   :  { %v1947_v16 = vpack.c.bf16 %v1923_v2, %v1915_v11  ;;  %v1949_v24 = vpack.c.bf16 %v1925_v29, %v1917_v20  ;;  %v1898_v14 = vmul.f32 %v1866_v34, %v5472_v53  ;;  %v6084_v39 = vadd.f32 %v1890_v17, %v5488_v36  ;;  %v4201_v8 = vld [vmem:[%s6805_s10 + $0x354] ss:$8 sps:$4 sm:$0xff]  }
 0x5b4   :  { %v1951_v6 = vpack.c.bf16 %v6067_v40, %v6064_v15  ;;  %2775 = vmatprep.mubr.bf16.mxu1 %v1948_v43  ;;  %2828 = vmatprep.mubr.bf16.mxu0 %v1950_v31  ;;  %v6089_v20 = vadd.f32 %v1896_v10, %v5485_v28  ;;  %v6092_v5 = vadd.f32 %v1889_v51, %v6883_v7  ;;  %v4193_v51 = vld [vmem:[%s6805_s10 + $0x360] ss:$8 sps:$4 sm:$0xff]  }
 0x5b5   :  { %v4349_v11 = vpop.eup %4348  ;;  %v6095_v55 = vadd.f32 %v1897_v61, %v6883_v7  ;;  %2776 = vmatmul.mubr.bf16.vlgmr.msra.gmra.mxu1 %v1947_v16  ;;  %2829 = vmatmul.mubr.bf16.vlgmr.msra.gmra.mxu0 %v1949_v24  ;;  %v4199_v24 = vld [vmem:[%s6805_s10 + $0x350] ss:$8 sps:$4 sm:$0xff]  }
 0x5b6   :  { %v1868_v17 = vmul.f32 %v4349_v11, %v5847_v50  ;;  %v1870_v57 = vmul.f32 %v4349_v11, %v5860_v56  ;;  %v1867_v12 = vmul.f32 %v4349_v11, %v5844_v47  ;;  %2850 = vmatpush1.bf16.msra.mxu1 %v4184_v32  ;;  %2903 = vmatpush1.bf16.msra.mxu0 %v4187_v46  ;;  %v4196_v46 = vld [vmem:[%s6805_s10 + $0x250] ss:$8 sps:$4 sm:$0xff]  }
 0x5b7   :  { %v1869_v10 = vmul.f32 %v4349_v11, %v5850_v48  ;;  %v1953_v34 = vpack.c.bf16 %v6095_v55, %v6092_v5  ;;  %v1872_v50 = vmul.f32 %v4349_v11, %v5874_v33  ;;  %2851 = vmatprep.subr.bf16.mxu1 %v4192_v59  ;;  %2904 = vmatprep.subr.bf16.mxu0 %v4195_v63  ;;  %v4204_v63 = vld [vmem:[%s6805_s10 + $0x244] ss:$8 sps:$4 sm:$0xff]  }
 0x5b8   :  { %v1900_v47 = vmul.f32 %v1868_v17, %v5437_v42  ;;  %v1902_v56 = vmul.f32 %v1870_v57, %v5431_v23  ;;  %v1899_v48 = vmul.f32 %v1867_v12, %v5434_v62  ;;  %v1874_v2 = vmul.f32 %v4349_v11, %v5900_v21 }
 0x5b9   :  { %v1901_v13 = vmul.f32 %v1869_v10, %v5425_v60  ;;  %v1904_v33 = vmul.f32 %v1872_v50, %v5463_v3  ;;  %v1871_v54 = vmul.f32 %v4349_v11, %v5867_v35  ;;  %v1952_v31 = vpack.c.bf16 %v6089_v20, %v6061_v30  ;;  %v4222_v30 = vld [vmem:[%s6805_s10 + $0x214] ss:$8 sps:$4 sm:$0xff]  }
 0x5ba   :  { %v1932_v29 = vadd.f32 %v1900_v47, %v5455_v52  ;;  %v1934_v43 = vadd.f32 %v1902_v56, %v5440_v25  ;;  %v6128_v32 = vadd.f32 %v1898_v14, %v5488_v36  ;;  %2852 = vmatpush1.bf16.msra.mxu1 %v4190_v44  ;;  %2905 = vmatpush1.bf16.msra.mxu0 %v4193_v51  ;;  %v4207_v44 = vld [vmem:[%s6805_s10 + $0x344] ss:$8 sps:$4 sm:$0xff]  }
 0x5bb   :  { %v1931_v21 = vadd.f32 %v1899_v48, %v5449_v1  ;;  %v1906_v35 = vmul.f32 %v1874_v2, %v5472_v53  ;;  %v1873_v16 = vmul.f32 %v4349_v11, %v5888_v38  ;;  %v4351_v61 = vpop.eup %4350  ;;  %2853 = vmatprep.subr.bf16.mxu1 %v4198_v41  ;;  %2906 = vmatprep.subr.bf16.mxu0 %v4201_v8 }
 0x5bc   :  { %v1933_v59 = vadd.f32 %v1901_v13, %v5428_v37  ;;  %v6144_v14 = vadd.f32 %v1904_v33, %v5485_v28  ;;  %v1903_v17 = vmul.f32 %v1871_v54, %v5443_v58  ;;  %v1876_v38 = vmul.f32 %v4351_v61, %v5882_v49  ;;  %v4211_v54 = vld [vmem:[%s6805_s10 + $0x330] ss:$8 sps:$4 sm:$0xff]  }
 0x5bd   :  { %v1878_v11 = vmul.f32 %v4351_v61, %v5893_v26  ;;  %v1875_v57 = vmul.f32 %v4351_v61, %v5879_v45  ;;  %v1877_v12 = vmul.f32 %v4351_v61, %v5885_v22  ;;  %v1880_v51 = vmul.f32 %v4351_v61, %v5912_v18  ;;  %v4202_v18 = vld [vmem:[%s6805_s10 + $0x240] ss:$8 sps:$4 sm:$0xff]  }
 0x5be   :  { %v1882_v10 = vmul.f32 %v4351_v61, %v5933_v27  ;;  %v6157_v50 = vadd.f32 %v1906_v35, %v5488_v36  ;;  %v1879_v47 = vmul.f32 %v4351_v61, %v5905_v0  ;;  %v1908_v49 = vmul.f32 %v1876_v38, %v5437_v42  ;;  %2854 = vmatpush1.bf16.msra.mxu1 %v4196_v46  ;;  %v4205_v27 = vld [vmem:[%s6805_s10 + $0x340] ss:$8 sps:$4 sm:$0xff]   ;;  %v4210_v42 = vld [vmem:[%s6805_s10 + $0x234] ss:$8 sps:$4 sm:$0xff]  }
 0x5bf   :  { %v1910_v26 = vmul.f32 %v1878_v11, %v5431_v23  ;;  %v1907_v45 = vmul.f32 %v1875_v57, %v5434_v62  ;;  %v1909_v22 = vmul.f32 %v1877_v12, %v5425_v60  ;;  %2907 = vmatpush1.bf16.msra.mxu0 %v4199_v24  ;;  %2855 = vmatprep.subr.bf16.mxu1 %v4204_v63  ;;  %v4231_v24 = vld [vmem:[%s6805_s10 + $0x304] ss:$8 sps:$4 sm:$0xff]   ;;  %v4229_v63 = vld [vmem:[%s6805_s10 + $0x300] ss:$8 sps:$4 sm:$0xff]   ;;  %v4237_v38 = vld [vmem:[%s6805_s10 + $0x3f4] ss:$8 sps:$4 sm:$0xff]  }
 0x5c0   :  { %v1912_v23 = vmul.f32 %v1880_v51, %v5463_v3  ;;  %v1914_v62 = vmul.f32 %v1882_v10, %v5472_v53  ;;  %v1911_v60 = vmul.f32 %v1879_v47, %v5443_v58  ;;  %v1940_v0 = vadd.f32 %v1908_v49, %v5455_v52  ;;  %2908 = vmatprep.subr.bf16.mxu0 %v4207_v44  ;;  %v4232_v11 = vld [vmem:[%s6805_s10 + $0x2f0] ss:$8 sps:$4 sm:$0xff]   ;;  %v4240_v12 = vld [vmem:[%s6805_s10 + $0x2e4] ss:$8 sps:$4 sm:$0xff]   ;;  %v4238_v51 = vld [vmem:[%s6805_s10 + $0x2e0] ss:$8 sps:$4 sm:$0xff]  }
 0x5c1   :  { %v1942_v56 = vadd.f32 %v1910_v26, %v5440_v25  ;;  %v1939_v41 = vadd.f32 %v1907_v45, %v5449_v1  ;;  %v1941_v8 = vadd.f32 %v1909_v22, %v5428_v37  ;;  %v6187_v3 = vadd.f32 %v1903_v17, %v5446_v4  ;;  %v4208_v37 = vld [vmem:[%s6805_s10 + $0x230] ss:$8 sps:$4 sm:$0xff]   ;;  %v4213_v1 = vld [vmem:[%s6805_s10 + $0x334] ss:$8 sps:$4 sm:$0xff]   ;;  %v4243_v44 = vld [vmem:[%s6805_s10 + $0x3e4] ss:$8 sps:$4 sm:$0xff]  }
 0x5c2   :  { %v6181_v48 = vadd.f32 %v1912_v23, %v5485_v28  ;;  %v6184_v13 = vadd.f32 %v1914_v62, %v5488_v36  ;;  %v6190_v58 = vadd.f32 %v1911_v60, %v5446_v4  ;;  %v1956_v52 = vpack.c.bf16 %v1940_v0, %v1932_v29  ;;  %2856 = vmatpush1.bf16.msra.mxu1 %v4202_v18  ;;  %v4216_v29 = vld [vmem:[%s6805_s10 + $0x224] ss:$8 sps:$4 sm:$0xff]   ;;  %v4234_v17 = vld [vmem:[%s6805_s10 + $0x2f4] ss:$8 sps:$4 sm:$0xff]   ;;  %v4235_v57 = vld [vmem:[%s6805_s10 + $0x3f0] ss:$8 sps:$4 sm:$0xff]  }
 0x5c3   :  { %v1958_v53 = vpack.c.bf16 %v1942_v56, %v1934_v43  ;;  %v1955_v25 = vpack.c.bf16 %v1939_v41, %v1931_v21  ;;  %v1957_v33 = vpack.c.bf16 %v1941_v8, %v1933_v59  ;;  %2909 = vmatpush1.bf16.msra.mxu0 %v4205_v27  ;;  %2857 = vmatprep.subr.bf16.mxu1 %v4210_v42  ;;  %v4219_v21 = vld [vmem:[%s6805_s10 + $0x324] ss:$8 sps:$4 sm:$0xff]   ;;  %v4226_v59 = vld [vmem:[%s6805_s10 + $0x200] ss:$8 sps:$4 sm:$0xff]   ;;  %v4246_v47 = vld [vmem:[%s6805_s10 + $0x2d4] ss:$8 sps:$4 sm:$0xff]  }
 0x5c4   :  { %v1960_v28 = vpack.c.bf16 %v6181_v48, %v6144_v14  ;;  %v1962_v4 = vpack.c.bf16 %v6184_v13, %v6157_v50  ;;  %v1959_v36 = vpack.c.bf16 %v6190_v58, %v6187_v3  ;;  %2785 = vmatprep.mubr.bf16.mxu1 %v1956_v52  ;;  %v1954_v2 = vpack.c.bf16 %v6128_v32, %v6084_v39  ;;  %v4217_v32 = vld [vmem:[%s6805_s10 + $0x320] ss:$8 sps:$4 sm:$0xff]   ;;  %v4249_v49 = vld [vmem:[%s6805_s10 + $0x3d4] ss:$8 sps:$4 sm:$0xff]   ;;  %v4244_v26 = vld [vmem:[%s6805_s10 + $0x2d0] ss:$8 sps:$4 sm:$0xff]  }
 0x5c5   :  { %2838 = vmatprep.mubr.bf16.mxu0 %v1958_v53  ;;  %v1881_v43 = vmul.f32 %v4351_v61, %v5919_v19  ;;  %v1905_v46 = vmul.f32 %v1873_v16, %v5458_v9  ;;  %2786 = vmatmul.mubr.bf16.gmra.mxu1 %v1955_v25  ;;  %v4214_v19 = vld [vmem:[%s6805_s10 + $0x220] ss:$8 sps:$4 sm:$0xff]   ;;  %v4220_v16 = vld [vmem:[%s6805_s10 + $0x210] ss:$8 sps:$4 sm:$0xff]   ;;  %v4228_v61 = vld [vmem:[%s6805_s10 + $0x204] ss:$8 sps:$4 sm:$0xff]  }
 0x5c6   :  { %2839 = vmatmul.mubr.bf16.gmra.mxu0 %v1957_v33  ;;  %2881 = vmatprep.mubr.bf16.mxu1 %v1952_v31  ;;  %v4225_v31 = vld [vmem:[%s6805_s10 + $0x314] ss:$8 sps:$4 sm:$0xff]   ;;  %v4241_v10 = vld [vmem:[%s6805_s10 + $0x3e0] ss:$8 sps:$4 sm:$0xff]   ;;  %v4247_v45 = vld [vmem:[%s6805_s10 + $0x3d0] ss:$8 sps:$4 sm:$0xff]  }
 0x5c7   :  { %2934 = vmatprep.mubr.bf16.mxu0 %v1954_v2  ;;  %v1913_v39 = vmul.f32 %v1881_v43, %v5458_v9  ;;  %2910 = vmatprep.subr.bf16.mxu0 %v4213_v1  ;;  %v6231_v20 = vadd.f32 %v1905_v46, %v6883_v7  ;;  %v4252_v22 = vld [vmem:[%s6805_s10 + $0x2c4] ss:$8 sps:$4 sm:$0xff]   ;;  %v4250_v27 = vld [vmem:[%s6805_s10 + $0x2c0] ss:$8 sps:$4 sm:$0xff]   ;;  %v4258_v23 = vld [vmem:[%s6805_s10 + $0x2b4] ss:$8 sps:$4 sm:$0xff]  }
 0x5c8   :  { %2858 = vmatpush1.bf16.msra.mxu1 %v4208_v37  ;;  %2911 = vmatpush1.bf16.msra.mxu0 %v4211_v54  ;;  %v4255_v18 = vld [vmem:[%s6805_s10 + $0x3c4] ss:$8 sps:$4 sm:$0xff]   ;;  %v4253_v42 = vld [vmem:[%s6805_s10 + $0x3c0] ss:$8 sps:$4 sm:$0xff]   ;;  %v4261_v62 = vld [vmem:[%s6805_s10 + $0x3b4] ss:$8 sps:$4 sm:$0xff]  }
 0x5c9   :  { %2859 = vmatprep.subr.bf16.mxu1 %v4216_v29  ;;  %v6234_v9 = vadd.f32 %v1913_v39, %v6883_v7  ;;  %2912 = vmatprep.subr.bf16.mxu0 %v4219_v21  ;;  %v4223_v7 = vld [vmem:[%s6805_s10 + $0x310] ss:$8 sps:$4 sm:$0xff]   ;;  %v4264_v56 = vld [vmem:[%s6805_s10 + $0x2a4] ss:$8 sps:$4 sm:$0xff]   ;;  %v4262_v8 = vld [vmem:[%s6805_s10 + $0x2a0] ss:$8 sps:$4 sm:$0xff]  }
 0x5ca   :  { %v4256_v60 = vld [vmem:[%s6805_s10 + $0x2b0] ss:$8 sps:$4 sm:$0xff]   ;;  %v4267_v41 = vld [vmem:[%s6805_s10 + $0x3a4] ss:$8 sps:$4 sm:$0xff]   ;;  %v4265_v52 = vld [vmem:[%s6805_s10 + $0x3a0] ss:$8 sps:$4 sm:$0xff]  }
 0x5cb   :  { %v1961_v35 = vpack.c.bf16 %v6234_v9, %v6231_v20  ;;  %v4259_v0 = vld [vmem:[%s6805_s10 + $0x3b0] ss:$8 sps:$4 sm:$0xff]   ;;  %v4270_v53 = vld [vmem:[%s6805_s10 + $0x294] ss:$8 sps:$4 sm:$0xff]   ;;  %v4276_v1 = vld [vmem:[%s6805_s10 + $0x284] ss:$8 sps:$4 sm:$0xff]  }
 0x5cc   :  { %2860 = vmatpush1.bf16.msra.mxu1 %v4214_v19  ;;  %2913 = vmatpush1.bf16.msra.mxu0 %v4217_v32  ;;  %v4273_v25 = vld [vmem:[%s6805_s10 + $0x394] ss:$8 sps:$4 sm:$0xff]   ;;  %v4268_v33 = vld [vmem:[%s6805_s10 + $0x290] ss:$8 sps:$4 sm:$0xff]   ;;  %v4279_v2 = vld [vmem:[%s6805_s10 + $0x384] ss:$8 sps:$4 sm:$0xff]  }
 0x5cd   :  { %2861 = vmatprep.subr.bf16.mxu1 %v4222_v30  ;;  %2914 = vmatprep.subr.bf16.mxu0 %v4225_v31  ;;  %v4271_v37 = vld [vmem:[%s6805_s10 + $0x390] ss:$8 sps:$4 sm:$0xff]   ;;  %v4274_v54 = vld [vmem:[%s6805_s10 + $0x280] ss:$8 sps:$4 sm:$0xff]  }
 0x5ce   :  { %v4277_v29 = vld [vmem:[%s6805_s10 + $0x380] ss:$8 sps:$4 sm:$0xff]   ;;  %v6884_v3 = vld [vmem:[#allocation9_spill] sm:$0xff] }
 0x5cf   :  { %v2091_v50 = vld [vmem:[%s6806_s11] sm:$0x3] }
 0x5d0   :  { %2862 = vmatpush1.bf16.msra.mxu1 %v4220_v16  ;;  %2915 = vmatpush1.bf16.msra.mxu0 %v4223_v7  ;;  %v2096_v58 = vrot.slane %v2091_v50, %v6884_v3 }
 0x5d1   :  { %2863 = vmatprep.subr.bf16.mxu1 %v4228_v61  ;;  %2916 = vmatprep.subr.bf16.mxu0 %v4231_v24 }
 0x5d4   :  { %2864 = vmatpush1.bf16.msra.mxu1 %v4226_v59  ;;  %2917 = vmatpush1.bf16.msra.mxu0 %v4229_v63 }
 0x5d5   :  { %2865 = vmatprep.subr.bf16.mxu1 %v4234_v17  ;;  %2918 = vmatprep.subr.bf16.mxu0 %v4237_v38 }
 0x5d8   :  { %2866 = vmatpush2.bf16.msra.mxu1 %v4232_v11  ;;  %2919 = vmatpush2.bf16.msra.mxu0 %v4235_v57 }
 0x5d9   :  { %2867 = vmatprep.subr.bf16.mxu1 %v4240_v12  ;;  %2920 = vmatprep.subr.bf16.mxu0 %v4243_v44 }
 0x5dc   :  { %2868 = vmatpush2.bf16.msra.mxu1 %v4238_v51  ;;  %2921 = vmatpush2.bf16.msra.mxu0 %v4241_v10 }
 0x5dd   :  { %2869 = vmatprep.subr.bf16.mxu1 %v4246_v47  ;;  %2922 = vmatprep.subr.bf16.mxu0 %v4249_v49 }
 0x5e0   :  { %2870 = vmatpush2.bf16.msra.mxu1 %v4244_v26  ;;  %2923 = vmatpush2.bf16.msra.mxu0 %v4247_v45 }
 0x5e1   :  { %2871 = vmatprep.subr.bf16.mxu1 %v4252_v22  ;;  %2924 = vmatprep.subr.bf16.mxu0 %v4255_v18 }
 0x5e4   :  { %2872 = vmatpush2.bf16.msra.mxu1 %v4250_v27  ;;  %2925 = vmatpush2.bf16.msra.mxu0 %v4253_v42 }
 0x5e5   :  { %2873 = vmatprep.subr.bf16.mxu1 %v4258_v23  ;;  %2926 = vmatprep.subr.bf16.mxu0 %v4261_v62 }
 0x5e8   :  { %2874 = vmatpush2.bf16.msra.mxu1 %v4256_v60  ;;  %2927 = vmatpush2.bf16.msra.mxu0 %v4259_v0 }
 0x5e9   :  { %2875 = vmatprep.subr.bf16.mxu1 %v4264_v56  ;;  %2928 = vmatprep.subr.bf16.mxu0 %v4267_v41 }
 0x5ec   :  { %2876 = vmatpush2.bf16.msra.mxu1 %v4262_v8  ;;  %2929 = vmatpush2.bf16.msra.mxu0 %v4265_v52 }
 0x5ed   :  { %2877 = vmatprep.subr.bf16.mxu1 %v4270_v53  ;;  %2930 = vmatprep.subr.bf16.mxu0 %v4273_v25 }
 0x5f0   :  { %2878 = vmatpush2.bf16.msra.mxu1 %v4268_v33  ;;  %2931 = vmatpush2.bf16.msra.mxu0 %v4271_v37 }
 0x5f1   :  { %2879 = vmatprep.subr.bf16.mxu1 %v4276_v1  ;;  %2932 = vmatprep.subr.bf16.mxu0 %v4279_v2 }
 0x5f4   :  { %2880 = vmatpush2.bf16.msra.mxu1 %v4274_v54  ;;  %2933 = vmatpush2.bf16.msra.mxu0 %v4277_v29 }
 0x5f7   :  { %2882 = vmatmul.mubr.bf16.vlgmr.msra.gmra.mxu1 %v1951_v6  ;;  %2935 = vmatmul.mubr.bf16.vlgmr.msra.gmra.mxu0 %v1953_v34 }
 0x5f8   :  { %2891 = vmatprep.mubr.bf16.mxu1 %v1960_v28  ;;  %2944 = vmatprep.mubr.bf16.mxu0 %v1962_v4 }
 0x5ff   :  { %2892 = vmatmul.mubr.bf16.gmra.mxu1 %v1959_v36  ;;  %2945 = vmatmul.mubr.bf16.gmra.mxu0 %v1961_v35  ;;  %v6885_v36 = vld [vmem:[#allocation8_spill] sm:$0xff] }
 0x600   :  { %v2100_v46 = vrot.slane %v2091_v50, %v6885_v36 }
 0x675   :  { %v2777_v15 = vpop.f32.mrf.mxu1  ;;  %v2830_v40 = vpop.f32.mrf.mxu0 }
 0x676   :  { %v2778_v39 = vadd.f32 %v2777_v15, %v2096_v58 }
 0x677   :  { %v2779_v6 = vpop.f32.mrf.mxu1  ;;  %v2832_v5 = vpop.f32.mrf.mxu0 }
 0x678   :  { %v2780_v32 = vadd.f32 %v2779_v6, %v2100_v46  ;;  %v2831_v20 = vadd.f32 %v2830_v40, %v2778_v39 }
 0x679   :  { %v2781_v55 = vpop.f32.mrf.mxu1  ;;  %v2834_v34 = vpop.f32.mrf.mxu0 }
 0x67a   :  { %v2782_v9 = vadd.f32 %v2781_v55, %v2096_v58  ;;  %v2833_v16 = vadd.f32 %v2832_v5, %v2780_v32  ;;  %v4282_v32 = vld [vmem:[%s6809_s14 + $0x74] ss:$8 sps:$4 sm:$0xff]  }
 0x67b   :  { %v2783_v14 = vpop.f32.mrf.mxu1  ;;  %v2836_v48 = vpop.f32.mrf.mxu0  ;;  %3276 = vmatprep.subr.bf16.mxu1 %v4282_v32 }
 0x67c   :  { %v2784_v7 = vadd.f32 %v2783_v14, %v2100_v46  ;;  %v2835_v17 = vadd.f32 %v2834_v34, %v2782_v9  ;;  %v4288_v9 = vld [vmem:[%s6809_s14 + $0x54] ss:$8 sps:$4 sm:$0xff]  }
 0x67e   :  { %v2837_v51 = vadd.f32 %v2836_v48, %v2784_v7  ;;  %v4294_v7 = vld [vmem:[%s6809_s14 + $0x34] ss:$8 sps:$4 sm:$0xff]  }
 0x685   :  { %v2787_v28 = vpop.f32.mrf.mxu1 }
 0x686   :  { %v2840_v43 = vpop.f32.mrf.mxu0  ;;  %v2788_v59 = vadd.f32 %v2787_v28, %v2096_v58 }
 0x687   :  { %v2789_v13 = vpop.f32.mrf.mxu1 }
 0x688   :  { %v2842_v4 = vpop.f32.mrf.mxu0  ;;  %v2790_v12 = vadd.f32 %v2789_v13, %v2100_v46  ;;  %v2841_v26 = vadd.f32 %v2840_v43, %v2788_v59  ;;  %v4295_v59 = vld [vmem:[%s6809_s14 + $0x20] ss:$8 sps:$4 sm:$0xff]  }
 0x689   :  { %v2791_v21 = vpop.f32.mrf.mxu1 }
 0x68a   :  { %v2844_v19 = vpop.f32.mrf.mxu0  ;;  %v2792_v45 = vadd.f32 %v2791_v21, %v2096_v58  ;;  %v2843_v60 = vadd.f32 %v2842_v4, %v2790_v12  ;;  %v4306_v12 = vld [vmem:[%s6809_s14 + $0xf4] ss:$8 sps:$4 sm:$0xff]  }
 0x68b   :  { %v2793_v30 = vpop.f32.mrf.mxu1 }
 0x68c   :  { %v2846_v31 = vpop.f32.mrf.mxu0  ;;  %v2794_v56 = vadd.f32 %v2793_v30, %v2100_v46  ;;  %v2845_v25 = vadd.f32 %v2844_v19, %v2792_v45  ;;  %v4280_v19 = vld [vmem:[%s6809_s14 + $0x70] ss:$8 sps:$4 sm:$0xff]   ;;  %v4285_v30 = vld [vmem:[%s6809_s14 + $0x64] ss:$8 sps:$4 sm:$0xff]  }
 0x68d   :  { %3277 = vmatpush1.bf16.msra.mxu1 %v4280_v19 }
 0x68e   :  { %v2847_v40 = vadd.f32 %v2846_v31, %v2794_v56  ;;  %3278 = vmatprep.subr.bf16.mxu1 %v4285_v30  ;;  %v4286_v31 = vld [vmem:[%s6809_s14 + $0x50] ss:$8 sps:$4 sm:$0xff]  }
 0x6b7   :  { %v2883_v35 = vpop.f32.mrf.mxu1  ;;  %v2936_v24 = vpop.f32.mrf.mxu0 }
 0x6b8   :  { %v2884_v61 = vadd.f32 %v2883_v35, %v2831_v20  ;;  %v4283_v20 = vld [vmem:[%s6809_s14 + $0x60] ss:$8 sps:$4 sm:$0xff]   ;;  %v4291_v35 = vld [vmem:[%s6809_s14 + $0x44] ss:$8 sps:$4 sm:$0xff]  }
 0x6b9   :  { %v2885_v63 = vpop.f32.mrf.mxu1  ;;  %v2938_v57 = vpop.f32.mrf.mxu0  ;;  %3279 = vmatpush1.bf16.msra.mxu1 %v4283_v20 }
 0x6ba   :  { %v6378_v38 = vadd.f32 %v2936_v24, %v2884_v61  ;;  %v2886_v11 = vadd.f32 %v2885_v63, %v2833_v16  ;;  %3280 = vmatprep.subr.bf16.mxu1 %v4288_v9  ;;  %v4289_v16 = vld [vmem:[%s6809_s14 + $0x40] ss:$8 sps:$4 sm:$0xff]   ;;  %v4292_v61 = vld [vmem:[%s6809_s14 + $0x30] ss:$8 sps:$4 sm:$0xff]   ;;  %v4297_v24 = vld [vmem:[%s6809_s14 + $0x24] ss:$8 sps:$4 sm:$0xff]  }
 0x6bb   :  { %v2887_v44 = vpop.f32.mrf.mxu1  ;;  %v2940_v49 = vpop.f32.mrf.mxu0  ;;  %v4300_v63 = vld [vmem:[%s6809_s14 + $0x14] ss:$8 sps:$4 sm:$0xff]  }
 0x6bc   :  { %v6380_v10 = vadd.f32 %v2938_v57, %v2886_v11  ;;  %v2888_v47 = vadd.f32 %v2887_v44, %v2835_v17  ;;  %v2955_v18 = vmax.f32 %v6378_v38, 0.0  ;;  %v4298_v17 = vld [vmem:[%s6809_s14 + $0x10] ss:$8 sps:$4 sm:$0xff]   ;;  %v4303_v11 = vld [vmem:[%s6809_s14 + $0x4] ss:$8 sps:$4 sm:$0xff]  }
 0x6bd   :  { %v2889_v22 = vpop.f32.mrf.mxu1  ;;  %v2942_v62 = vpop.f32.mrf.mxu0  ;;  %3281 = vmatpush1.bf16.msra.mxu1 %v4286_v31  ;;  %v4301_v57 = vld [vmem:[%s6809_s14] ss:$8 sps:$4 sm:$0xff]   ;;  %v4304_v44 = vld [vmem:[%s6809_s14 + $0xf0] ss:$8 sps:$4 sm:$0xff]  }
 0x6be   :  { %v2956_v27 = vmax.f32 %v6380_v10, 0.0  ;;  %v6384_v42 = vadd.f32 %v2940_v49, %v2888_v47  ;;  %v2890_v23 = vadd.f32 %v2889_v22, %v2837_v51  ;;  %3282 = vmatprep.subr.bf16.mxu1 %v4291_v35 }
 0x6bf   :  { %v2893_v0 = vpop.f32.mrf.mxu1  ;;  %v2946_v52 = vpop.f32.mrf.mxu0 }
 0x6c0   :  { %v6386_v41 = vadd.f32 %v2942_v62, %v2890_v23  ;;  %v2894_v8 = vadd.f32 %v2893_v0, %v2841_v26  ;;  %v2965_v53 = vadd.f32 %v2956_v27, %v2955_v18  ;;  %v2957_v37 = vmax.f32 %v6384_v42, 0.0 }
 0x6c1   :  { %v2895_v33 = vpop.f32.mrf.mxu1  ;;  %v2948_v29 = vpop.f32.mrf.mxu0  ;;  %3283 = vmatpush1.bf16.msra.mxu1 %v4289_v16 }
 0x6c2   :  { %v2958_v1 = vmax.f32 %v6386_v41, 0.0  ;;  %v6394_v2 = vadd.f32 %v2946_v52, %v2894_v8  ;;  %v2896_v54 = vadd.f32 %v2895_v33, %v2843_v60  ;;  %2966 = vadd.xlane.f32.xlu0 %v2965_v53  ;;  %3284 = vmatprep.subr.bf16.mxu1 %v4294_v7 }
 0x6c3   :  { %v2897_v15 = vpop.f32.mrf.mxu1  ;;  %v2950_v55 = vpop.f32.mrf.mxu0 }
 0x6c4   :  { %v6396_v6 = vadd.f32 %v2948_v29, %v2896_v54  ;;  %v2898_v5 = vadd.f32 %v2897_v15, %v2845_v25  ;;  %v2968_v34 = vadd.f32 %v2958_v1, %v2957_v37  ;;  %v2959_v48 = vmax.f32 %v6394_v2, 0.0 }
 0x6c5   :  { %v2899_v14 = vpop.f32.mrf.mxu1  ;;  %v2952_v13 = vpop.f32.mrf.mxu0  ;;  %3285 = vmatpush1.bf16.msra.mxu1 %v4292_v61 }
 0x6c6   :  { %v2960_v28 = vmax.f32 %v6396_v6, 0.0  ;;  %v6404_v43 = vadd.f32 %v2950_v55, %v2898_v5  ;;  %v2900_v50 = vadd.f32 %v2899_v14, %v2847_v40  ;;  %2969 = vadd.xlane.f32.xlu1 %v2968_v34  ;;  %3286 = vmatprep.subr.bf16.mxu1 %v4297_v24  ;;  %v4309_v40 = vld [vmem:[%s6809_s14 + $0xe4] ss:$8 sps:$4 sm:$0xff]   ;;  %v4307_v6 = vld [vmem:[%s6809_s14 + $0xe0] ss:$8 sps:$4 sm:$0xff]  }
 0x6c7   :  { %v4312_v5 = vld [vmem:[%s6809_s14 + $0xd4] ss:$8 sps:$4 sm:$0xff]   ;;  %v4310_v55 = vld [vmem:[%s6809_s14 + $0xd0] ss:$8 sps:$4 sm:$0xff]   ;;  %v4313_v34 = vld [vmem:[%s6809_s14 + $0xc0] ss:$8 sps:$4 sm:$0xff]  }
 0x6c8   :  { %v6406_v58 = vadd.f32 %v2952_v13, %v2900_v50  ;;  %v2971_v4 = vadd.f32 %v2960_v28, %v2959_v48  ;;  %v2961_v46 = vmax.f32 %v6404_v43, 0.0  ;;  %v4315_v14 = vld [vmem:[%s6809_s14 + $0xc4] ss:$8 sps:$4 sm:$0xff]   ;;  %v4319_v50 = vld [vmem:[%s6809_s14 + $0xa0] ss:$8 sps:$4 sm:$0xff]  }
 0x6c9   :  { %3287 = vmatpush1.bf16.msra.mxu1 %v4295_v59  ;;  %v4321_v43 = vld [vmem:[%s6809_s14 + $0xa4] ss:$8 sps:$4 sm:$0xff]   ;;  %v4324_v13 = vld [vmem:[%s6809_s14 + $0x94] ss:$8 sps:$4 sm:$0xff]   ;;  %v2963_v24 = vld [vmem:[%s6807_s12] sm:$0x3] }
 0x6ca   :  { %v2962_v21 = vmax.f32 %v6406_v58, 0.0  ;;  %2972 = vadd.xlane.f32.xlu0 %v2971_v4  ;;  %3288 = vmatprep.subr.bf16.mxu1 %v4300_v63  ;;  %v4322_v58 = vld [vmem:[%s6809_s14 + $0x90] ss:$8 sps:$4 sm:$0xff]   ;;  %v4327_v4 = vld [vmem:[%s6809_s14 + $0x84] ss:$8 sps:$4 sm:$0xff]   ;;  %v6566_v63 = vrot.slane %v2963_v24, %v6884_v3 }
 0x6cc   :  { %v2974_v39 = vadd.f32 %v2962_v21, %v2961_v46 }
 0x6cd   :  { %3289 = vmatpush1.bf16.msra.mxu1 %v4298_v17  ;;  %v6569_v17 = vrot.slane %v2963_v24, %v6885_v36 }
 0x6ce   :  { %2975 = vadd.xlane.f32.xlu1 %v2974_v39  ;;  %3290 = vmatprep.subr.bf16.mxu1 %v4303_v11 }
 0x6d1   :  { %3291 = vmatpush1.bf16.msra.mxu1 %v4301_v57  ;;  %v2964_v57 = vld [vmem:[%s6808_s13] sm:$0x3] }
 0x6d2   :  { %3292 = vmatprep.subr.bf16.mxu1 %v4306_v12 }
 0x6d5   :  { %3293 = vmatpush2.bf16.msra.mxu1 %v4304_v44 }
 0x6d6   :  { %3294 = vmatprep.subr.bf16.mxu1 %v4309_v40 }
 0x6d9   :  { %3295 = vmatpush2.bf16.msra.mxu1 %v4307_v6 }
 0x6da   :  { %3296 = vmatprep.subr.bf16.mxu1 %v4312_v5 }
 0x6dd   :  { %3297 = vmatpush2.bf16.msra.mxu1 %v4310_v55 }
 0x6de   :  { %3298 = vmatprep.subr.bf16.mxu1 %v4315_v14 }
 0x6e1   :  { %3299 = vmatpush2.bf16.msra.mxu1 %v4313_v34 }
 0x74b   :  { %v2967_v51 = vpop.xlane.xlu0 %2966 }
 0x74c   :  { %v2978_v47 = vmul.f32 0.00390625, %v2967_v51 }
 0x74e   :  { %v6474_v49 = vsub.f32 %v2955_v18, %v2978_v47  ;;  %v6478_v26 = vsub.f32 %v2956_v27, %v2978_v47  ;;  %v6578_v47 = vrot.slane %v2964_v57, %v6884_v3 }
 0x74f   :  { %v2970_v45 = vpop.xlane.xlu1 %2969 }
 0x750   :  { %v2979_v22 = vmul.f32 0.00390625, %v2970_v45  ;;  %v2990_v23 = vmul.f32 %v6474_v49, %v6474_v49  ;;  %v2991_v62 = vmul.f32 %v6478_v26, %v6478_v26  ;;  %v6581_v45 = vrot.slane %v2964_v57, %v6885_v36 }
 0x752   :  { %v6486_v60 = vsub.f32 %v2957_v37, %v2979_v22  ;;  %v6490_v38 = vsub.f32 %v2958_v1, %v2979_v22  ;;  %v2998_v18 = vadd.f32 %v2991_v62, %v2990_v23 }
 0x753   :  { %v2973_v10 = vpop.xlane.xlu0 %2972 }
 0x754   :  { %v2980_v27 = vmul.f32 0.00390625, %v2973_v10  ;;  %2999 = vadd.xlane.f32.xlu0 %v2998_v18  ;;  %v2992_v0 = vmul.f32 %v6486_v60, %v6486_v60  ;;  %v2993_v56 = vmul.f32 %v6490_v38, %v6490_v38 }
 0x756   :  { %v6498_v8 = vsub.f32 %v2959_v48, %v2980_v27  ;;  %v6502_v42 = vsub.f32 %v2960_v28, %v2980_v27  ;;  %v3001_v41 = vadd.f32 %v2993_v56, %v2992_v0  ;;  %v4318_v48 = vld [vmem:[%s6809_s14 + $0xb4] ss:$8 sps:$4 sm:$0xff]   ;;  %v4316_v28 = vld [vmem:[%s6809_s14 + $0xb0] ss:$8 sps:$4 sm:$0xff]  }
 0x757   :  { %v2976_v52 = vpop.xlane.xlu1 %2975  ;;  %3300 = vmatprep.subr.bf16.mxu1 %v4318_v48 }
 0x758   :  { %v2981_v53 = vmul.f32 0.00390625, %v2976_v52  ;;  %3002 = vadd.xlane.f32.xlu1 %v3001_v41  ;;  %v2994_v25 = vmul.f32 %v6498_v8, %v6498_v8  ;;  %v2995_v33 = vmul.f32 %v6502_v42, %v6502_v42  ;;  %3301 = vmatpush2.bf16.msra.mxu1 %v4316_v28 }
 0x759   :  { %3302 = vmatprep.subr.bf16.mxu1 %v4321_v43 }
 0x75a   :  { %v6510_v37 = vsub.f32 %v2961_v46, %v2981_v53  ;;  %v6514_v1 = vsub.f32 %v2962_v21, %v2981_v53  ;;  %v3004_v2 = vadd.f32 %v2995_v33, %v2994_v25  ;;  %v4325_v46 = vld [vmem:[%s6809_s14 + $0x80] ss:$8 sps:$4 sm:$0xff]  }
 0x75c   :  { %3005 = vadd.xlane.f32.xlu0 %v3004_v2  ;;  %v2996_v54 = vmul.f32 %v6510_v37, %v6510_v37  ;;  %v2997_v29 = vmul.f32 %v6514_v1, %v6514_v1  ;;  %3303 = vmatpush2.bf16.msra.mxu1 %v4319_v50 }
 0x75d   :  { %3304 = vmatprep.subr.bf16.mxu1 %v4324_v13 }
 0x75e   :  { %v3007_v15 = vadd.f32 %v2997_v29, %v2996_v54 }
 0x760   :  { %3008 = vadd.xlane.f32.xlu1 %v3007_v15  ;;  %3305 = vmatpush2.bf16.msra.mxu1 %v4322_v58 }
 0x761   :  { %3306 = vmatprep.subr.bf16.mxu1 %v4327_v4 }
 0x764   :  { %3307 = vmatpush2.bf16.msra.mxu1 %v4325_v46 }
 0x7dd   :  { %v3000_v21 = vpop.xlane.xlu0 %2999 }
 0x7de   :  { %v3010_v39 = vmul.f32 0.00390625, %v3000_v21 }
 0x7e0   :  { %v3014_v19 = vadd.f32 1e-05, %v3010_v39 }
 0x7e1   :  { %v3003_v32 = vpop.xlane.xlu1 %3002 }
 0x7e2   :  { %4352 = vrsqrt.f32 %v3014_v19  ;;  %v3011_v30 = vmul.f32 0.00390625, %v3003_v32 }
 0x7e4   :  { %v3015_v20 = vadd.f32 1e-05, %v3011_v30 }
 0x7e5   :  { %v3006_v9 = vpop.xlane.xlu0 %3005 }
 0x7e6   :  { %4354 = vrsqrt.f32 %v3015_v20  ;;  %v3012_v31 = vmul.f32 0.00390625, %v3006_v9 }
 0x7e8   :  { %v3016_v35 = vadd.f32 1e-05, %v3012_v31 }
 0x7e9   :  { %v3009_v16 = vpop.xlane.xlu1 %3008 }
 0x7ea   :  { %4356 = vrsqrt.f32 %v3016_v35  ;;  %v3013_v7 = vmul.f32 0.00390625, %v3009_v16 }
 0x7ec   :  { %v3017_v61 = vadd.f32 1e-05, %v3013_v7 }
 0x7ee   :  { %4358 = vrsqrt.f32 %v3017_v61 }
 0x7ef   :  { %v4353_v59 = vpop.eup %4352 }
 0x7f0   :  { %v3022_v11 = vmul.f32 %v4353_v59, %v6474_v49  ;;  %v3023_v12 = vmul.f32 %v4353_v59, %v6478_v26 }
 0x7f2   :  { %v3042_v51 = vmul.f32 %v6569_v17, %v3023_v12  ;;  %v3041_v22 = vmul.f32 %v6566_v63, %v3022_v11 }
 0x7f3   :  { %v4355_v44 = vpop.eup %4354 }
 0x7f4   :  { %v3024_v23 = vmul.f32 %v4355_v44, %v6486_v60  ;;  %v3025_v49 = vmul.f32 %v4355_v44, %v6490_v38  ;;  %v3061_v10 = vadd.f32 %v6581_v45, %v3042_v51  ;;  %v3060_v27 = vadd.f32 %v6578_v47, %v3041_v22  ;;  %v3448_v51 = vld [vmem:[%s6811_s16 + $0xf8] sm:$0xff] }
 0x7f5   :  { %v3432_v22 = vld [vmem:[%s6811_s16 + $0x78] sm:$0xff]  ;;  %4017 = vmatprep.subr.mxu0 %v3448_v51  ;;  %v3417_v51 = vld [vmem:[%s6811_s16] sm:$0xff] }
 0x7f6   :  { %v3044_v62 = vmul.f32 %v6569_v17, %v3025_v49  ;;  %v3043_v18 = vmul.f32 %v6566_v63, %v3024_v23  ;;  %v3447_v23 = vld [vmem:[%s6811_s16 + $0xf0] sm:$0xff]  ;;  %4018 = vmatpush3.msra.mxu0 %v3432_v22 }
 0x7f7   :  { %v4357_v26 = vpop.eup %4356  ;;  %v3431_v49 = vld [vmem:[%s6811_s16 + $0x70] sm:$0xff]  ;;  %4019 = vmatprep.subr.mxu0 %v3447_v23 }
 0x7f8   :  { %v3063_v0 = vadd.f32 %v6581_v45, %v3044_v62  ;;  %v3062_v56 = vadd.f32 %v6578_v47, %v3043_v18  ;;  %v3027_v41 = vmul.f32 %v4357_v26, %v6502_v42  ;;  %v3026_v52 = vmul.f32 %v4357_v26, %v6498_v8  ;;  %v3446_v62 = vld [vmem:[%s6811_s16 + $0xe8] sm:$0xff]  ;;  %4020 = vmatpush3.msra.mxu0 %v3431_v49  ;;  %v3445_v26 = vld [vmem:[%s6811_s16 + $0xe0] sm:$0xff] }
 0x7f9   :  { %v3430_v18 = vld [vmem:[%s6811_s16 + $0x68] sm:$0xff]  ;;  %4021 = vmatprep.subr.mxu0 %v3446_v62 }
 0x7fa   :  { %v3069_v60 = vpack.c.bf16 %v3063_v0, %v3061_v10  ;;  %v3068_v53 = vpack.c.bf16 %v3062_v56, %v3060_v27  ;;  %v3046_v33 = vmul.f32 %v6569_v17, %v3027_v41  ;;  %v3045_v54 = vmul.f32 %v6566_v63, %v3026_v52  ;;  %4022 = vmatpush3.msra.mxu0 %v3430_v18 }
 0x7fb   :  { %v4359_v38 = vpop.eup %4358  ;;  %4023 = vmatprep.subr.mxu0 %v3445_v26 }
 0x7fc   :  { %3308 = vmatprep.mubr.bf16.mxu1 %v3069_v60  ;;  %v3029_v25 = vmul.f32 %v4359_v38, %v6514_v1  ;;  %v3028_v2 = vmul.f32 %v4359_v38, %v6510_v37  ;;  %v3065_v42 = vadd.f32 %v6581_v45, %v3046_v33  ;;  %v3064_v40 = vadd.f32 %v6578_v47, %v3045_v54  ;;  %v3104_v37 = vld [vmem:[%s6810_s15] sm:$0x3] }
 0x7fd   :  { %3309 = vmatmul.mubr.bf16.vlgmr.msra.gmra.mxu1 %v3068_v53  ;;  %v3109_v55 = vrot.slane %v3104_v37, %v6884_v3  ;;  %v3113_v34 = vrot.slane %v3104_v37, %v6885_v36 }
 0x7fe   :  { %v3048_v29 = vmul.f32 %v6569_v17, %v3029_v25  ;;  %v3047_v15 = vmul.f32 %v6566_v63, %v3028_v2 }
 0x800   :  { %v3067_v8 = vadd.f32 %v6581_v45, %v3048_v29  ;;  %v3066_v6 = vadd.f32 %v6578_v47, %v3047_v15 }
 0x802   :  { %v3071_v1 = vpack.c.bf16 %v3067_v8, %v3065_v42  ;;  %v3070_v5 = vpack.c.bf16 %v3066_v6, %v3064_v40 }
 0x804   :  { %3318 = vmatprep.mubr.bf16.mxu1 %v3071_v1 }
 0x805   :  { %3319 = vmatmul.mubr.bf16.gmra.mxu1 %v3070_v5 }
 0x8bd   :  { %v3310_v14 = vpop.f32.mrf.mxu1 }
 0x8be   :  { %v3311_v48 = vadd.f32 %v3310_v14, %v3109_v55 }
 0x8bf   :  { %v3312_v28 = vpop.f32.mrf.mxu1 }
 0x8c0   :  { %v3313_v43 = vadd.f32 %v3312_v28, %v3113_v34  ;;  %v3329_v13 = vmax.f32 %v3311_v48, 0.0 }
 0x8c1   :  { %v3314_v50 = vpop.f32.mrf.mxu1 }
 0x8c2   :  { %v3330_v58 = vmax.f32 %v3313_v43, 0.0  ;;  %v3315_v4 = vadd.f32 %v3314_v50, %v3109_v55  ;;  %v3429_v50 = vld [vmem:[%s6811_s16 + $0x60] sm:$0xff] }
 0x8c3   :  { %v3316_v46 = vpop.f32.mrf.mxu1  ;;  %4024 = vmatpush3.msra.mxu0 %v3429_v50 }
 0x8c4   :  { %v3317_v21 = vadd.f32 %v3316_v46, %v3113_v34  ;;  %v3337_v39 = vadd.f32 %v3330_v58, %v3329_v13  ;;  %v3331_v32 = vmax.f32 %v3315_v4, 0.0  ;;  %v3443_v4 = vld [vmem:[%s6811_s16 + $0xd0] sm:$0xff] }
 0x8c5   :  { %v3320_v19 = vpop.f32.mrf.mxu1  ;;  %v3427_v46 = vld [vmem:[%s6811_s16 + $0x50] sm:$0xff] }
 0x8c6   :  { %v3332_v30 = vmax.f32 %v3317_v21, 0.0  ;;  %v3321_v20 = vadd.f32 %v3320_v19, %v3109_v55  ;;  %3338 = vadd.xlane.f32.xlu0 %v3337_v39  ;;  %v3442_v21 = vld [vmem:[%s6811_s16 + $0xc8] sm:$0xff]  ;;  %v3441_v19 = vld [vmem:[%s6811_s16 + $0xc0] sm:$0xff] }
 0x8c7   :  { %v3322_v9 = vpop.f32.mrf.mxu1  ;;  %v3426_v39 = vld [vmem:[%s6811_s16 + $0x48] sm:$0xff] }
 0x8c8   :  { %v3323_v31 = vadd.f32 %v3322_v9, %v3113_v34  ;;  %v3340_v35 = vadd.f32 %v3332_v30, %v3331_v32  ;;  %v3333_v16 = vmax.f32 %v3321_v20, 0.0  ;;  %v3424_v20 = vld [vmem:[%s6811_s16 + $0x38] sm:$0xff]  ;;  %v3439_v9 = vld [vmem:[%s6811_s16 + $0xb0] sm:$0xff] }
 0x8c9   :  { %v3324_v36 = vpop.f32.mrf.mxu1 }
 0x8ca   :  { %v3334_v7 = vmax.f32 %v3323_v31, 0.0  ;;  %v3325_v61 = vadd.f32 %v3324_v36, %v3109_v55  ;;  %3341 = vadd.xlane.f32.xlu1 %v3340_v35  ;;  %v3423_v31 = vld [vmem:[%s6811_s16 + $0x30] sm:$0xff]  ;;  %v3438_v35 = vld [vmem:[%s6811_s16 + $0xa8] sm:$0xff] }
 0x8cb   :  { %v3326_v24 = vpop.f32.mrf.mxu1  ;;  %v3422_v36 = vld [vmem:[%s6811_s16 + $0x28] sm:$0xff] }
 0x8cc   :  { %v3327_v59 = vadd.f32 %v3326_v24, %v3113_v34  ;;  %v3343_v11 = vadd.f32 %v3334_v7, %v3333_v16  ;;  %v3335_v57 = vmax.f32 %v3325_v61, 0.0  ;;  %v3436_v61 = vld [vmem:[%s6811_s16 + $0x98] sm:$0xff] }
 0x8cd   :  { %v3420_v24 = vld [vmem:[%s6811_s16 + $0x18] sm:$0xff] }
 0x8ce   :  { %v3336_v12 = vmax.f32 %v3327_v59, 0.0  ;;  %3344 = vadd.xlane.f32.xlu0 %v3343_v11  ;;  %v3435_v59 = vld [vmem:[%s6811_s16 + $0x90] sm:$0xff] }
 0x8cf   :  { %v3419_v11 = vld [vmem:[%s6811_s16 + $0x10] sm:$0xff] }
 0x8d0   :  { %v3346_v44 = vadd.f32 %v3336_v12, %v3335_v57 }
 0x8d2   :  { %3347 = vadd.xlane.f32.xlu1 %v3346_v44  ;;  %v3433_v44 = vld [vmem:[%s6811_s16 + $0x80] sm:$0xff] }
 0x94f   :  { %v3339_v10 = vpop.xlane.xlu0 %3338 }
 0x950   :  { %v3349_v27 = vmul.f32 0.00390625, %v3339_v10 }
 0x952   :  { %v6630_v0 = vsub.f32 %v3329_v13, %v3349_v27  ;;  %v6632_v56 = vsub.f32 %v3330_v58, %v3349_v27  ;;  %v3444_v13 = vld [vmem:[%s6811_s16 + $0xd8] sm:$0xff] }
 0x953   :  { %v3342_v41 = vpop.xlane.xlu1 %3341  ;;  %4025 = vmatprep.subr.mxu0 %v3444_v13  ;;  %v3428_v58 = vld [vmem:[%s6811_s16 + $0x58] sm:$0xff] }
 0x954   :  { %v3350_v52 = vmul.f32 0.00390625, %v3342_v41  ;;  %v3361_v60 = vmul.f32 %v6630_v0, %v6630_v0  ;;  %v3362_v53 = vmul.f32 %v6632_v56, %v6632_v56  ;;  %4026 = vmatpush3.msra.mxu0 %v3428_v58 }
 0x955   :  { %4027 = vmatprep.subr.mxu0 %v3443_v4 }
 0x956   :  { %v6638_v38 = vsub.f32 %v3331_v32, %v3350_v52  ;;  %v6640_v25 = vsub.f32 %v3332_v30, %v3350_v52  ;;  %v3369_v33 = vadd.f32 %v3362_v53, %v3361_v60  ;;  %4028 = vmatpush3.msra.mxu0 %v3427_v46  ;;  %v3425_v32 = vld [vmem:[%s6811_s16 + $0x40] sm:$0xff]  ;;  %v3440_v30 = vld [vmem:[%s6811_s16 + $0xb8] sm:$0xff] }
 0x957   :  { %v3345_v2 = vpop.xlane.xlu0 %3344  ;;  %4029 = vmatprep.subr.mxu0 %v3442_v21 }
 0x958   :  { %v3351_v54 = vmul.f32 0.00390625, %v3345_v2  ;;  %3370 = vadd.xlane.f32.xlu0 %v3369_v33  ;;  %v3363_v29 = vmul.f32 %v6638_v38, %v6638_v38  ;;  %v3364_v15 = vmul.f32 %v6640_v25, %v6640_v25  ;;  %4030 = vmatpush3.msra.mxu0 %v3426_v39 }
 0x959   :  { %4031 = vmatprep.subr.mxu0 %v3441_v19 }
 0x95a   :  { %v6646_v42 = vsub.f32 %v3333_v16, %v3351_v54  ;;  %v6648_v8 = vsub.f32 %v3334_v7, %v3351_v54  ;;  %v3372_v40 = vadd.f32 %v3364_v15, %v3363_v29  ;;  %4032 = vmatpush3.msra.mxu0 %v3425_v32  ;;  %v3437_v16 = vld [vmem:[%s6811_s16 + $0xa0] sm:$0xff]  ;;  %v4395_v32 = vmov 1966171168  }
 0x95b   :  { %v3348_v6 = vpop.xlane.xlu1 %3347  ;;  %4033 = vmatprep.subr.mxu0 %v3440_v30  ;;  %v3421_v7 = vld [vmem:[%s6811_s16 + $0x20] sm:$0xff]  ;;  %v3554_v30 = vunpack.c.l.s4 %v4395_v32 }
 0x95c   :  { %v3352_v1 = vmul.f32 0.00390625, %v3348_v6  ;;  %3373 = vadd.xlane.f32.xlu1 %v3372_v40  ;;  %v3365_v5 = vmul.f32 %v6646_v42, %v6646_v42  ;;  %v3366_v37 = vmul.f32 %v6648_v8, %v6648_v8  ;;  %4034 = vmatpush3.msra.mxu0 %v3424_v20 }
 0x95d   :  { %4035 = vmatprep.subr.mxu0 %v3439_v9  ;;  %v3555_v20 = vunpack.c.0.s8 %v3554_v30 }
 0x95e   :  { %v6654_v55 = vsub.f32 %v3335_v57, %v3352_v1  ;;  %v6656_v34 = vsub.f32 %v3336_v12, %v3352_v1  ;;  %v3375_v14 = vadd.f32 %v3366_v37, %v3365_v5  ;;  %4036 = vmatpush3.msra.mxu0 %v3423_v31  ;;  %v3434_v57 = vld [vmem:[%s6811_s16 + $0x88] sm:$0xff] }
 0x95f   :  { %4037 = vmatprep.subr.mxu0 %v3438_v35  ;;  %v3418_v12 = vld [vmem:[%s6811_s16 + $0x8] sm:$0xff] }
 0x960   :  { %3376 = vadd.xlane.f32.xlu0 %v3375_v14  ;;  %v3367_v48 = vmul.f32 %v6654_v55, %v6654_v55  ;;  %v3368_v28 = vmul.f32 %v6656_v34, %v6656_v34  ;;  %4038 = vmatpush3.msra.mxu0 %v3422_v36 }
 0x961   :  { %4039 = vmatprep.subr.mxu0 %v3437_v16 }
 0x962   :  { %v3378_v43 = vadd.f32 %v3368_v28, %v3367_v48  ;;  %4040 = vmatpush3.msra.mxu0 %v3421_v7 }
 0x963   :  { %4041 = vmatprep.subr.mxu0 %v3436_v61 }
 0x964   :  { %3379 = vadd.xlane.f32.xlu1 %v3378_v43  ;;  %4042 = vmatpush3.msra.mxu0 %v3420_v24 }
 0x965   :  { %4043 = vmatprep.subr.mxu0 %v3435_v59 }
 0x966   :  { %4044 = vmatpush3.msra.mxu0 %v3419_v11 }
 0x967   :  { %4045 = vmatprep.subr.mxu0 %v3434_v57 }
 0x968   :  { %4046 = vmatpush3.msra.mxu0 %v3418_v12 }
 0x969   :  { %4047 = vmatprep.subr.mxu0 %v3433_v44 }
 0x96a   :  { %4048 = vmatpush3.msra.mxu0 %v3417_v51 }
 0x9e1   :  { %v3371_v22 = vpop.xlane.xlu0 %3370 }
 0x9e2   :  { %v3381_v23 = vmul.f32 0.00390625, %v3371_v22 }
 0x9e4   :  { %v3385_v49 = vadd.f32 1e-05, %v3381_v23 }
 0x9e5   :  { %v3374_v62 = vpop.xlane.xlu1 %3373 }
 0x9e6   :  { %4360 = vrsqrt.f32 %v3385_v49  ;;  %v3382_v18 = vmul.f32 0.00390625, %v3374_v62 }
 0x9e8   :  { %v3386_v26 = vadd.f32 1e-05, %v3382_v18 }
 0x9e9   :  { %v3377_v10 = vpop.xlane.xlu0 %3376 }
 0x9ea   :  { %4362 = vrsqrt.f32 %v3386_v26  ;;  %v3383_v27 = vmul.f32 0.00390625, %v3377_v10 }
 0x9ec   :  { %v3387_v41 = vadd.f32 1e-05, %v3383_v27 }
 0x9ed   :  { %v3380_v52 = vpop.xlane.xlu1 %3379 }
 0x9ee   :  { %4364 = vrsqrt.f32 %v3387_v41  ;;  %v3384_v60 = vmul.f32 0.00390625, %v3380_v52 }
 0x9f0   :  { %v3388_v53 = vadd.f32 1e-05, %v3384_v60 }
 0x9f2   :  { %4366 = vrsqrt.f32 %v3388_v53 }
 0x9f3   :  { %v4361_v33 = vpop.eup %4360 }
 0x9f4   :  { %v3393_v2 = vmul.f32 %v4361_v33, %v6630_v0  ;;  %v3394_v54 = vmul.f32 %v4361_v33, %v6632_v56 }
 0x9f6   :  { %v3402_v29 = vmul.f32 %v3394_v54, %v6569_v17  ;;  %v3401_v15 = vmul.f32 %v3393_v2, %v6566_v63 }
 0x9f7   :  { %v4363_v40 = vpop.eup %4362 }
 0x9f8   :  { %v3410_v6 = vadd.f32 %v3402_v29, %v6581_v45  ;;  %v3409_v1 = vadd.f32 %v3401_v15, %v6578_v47  ;;  %v3396_v5 = vmul.f32 %v4363_v40, %v6640_v25  ;;  %v3395_v37 = vmul.f32 %v4363_v40, %v6638_v38 }
 0x9fa   :  { %3513 = vmatprep.mubr.f32.mxu0 %v3410_v6  ;;  %v3404_v14 = vmul.f32 %v3396_v5, %v6569_v17  ;;  %v3403_v0 = vmul.f32 %v3395_v37, %v6566_v63 }
 0x9fb   :  { %v4365_v48 = vpop.eup %4364  ;;  %3514 = vmatmul.mubr.f32.vlgmr.msra.gmra.mxu0 %v3409_v1 }
 0x9fc   :  { %v3412_v56 = vadd.f32 %v3404_v14, %v6581_v45  ;;  %v3411_v28 = vadd.f32 %v3403_v0, %v6578_v47  ;;  %v3398_v43 = vmul.f32 %v4365_v48, %v6648_v8  ;;  %v3397_v50 = vmul.f32 %v4365_v48, %v6646_v42 }
 0x9fd   :  { %v6888_v0 = vlaneseq }
 0x9fe   :  { %3518 = vmatprep.mubr.f32.mxu0 %v3412_v56  ;;  %v3406_v25 = vmul.f32 %v3398_v43, %v6569_v17  ;;  %v3405_v38 = vmul.f32 %v3397_v50, %v6566_v63 }
 0x9ff   :  { %v4367_v13 = vpop.eup %4366  ;;  %3519 = vmatmul.mubr.f32.gmra.mxu0 %v3411_v28  ;;  %v3629_v48 = vand.u32 127, %v6888_v0 }
 0xa00   :  { %v3414_v58 = vadd.f32 %v3406_v25, %v6581_v45  ;;  %v3413_v4 = vadd.f32 %v3405_v38, %v6578_v47  ;;  %v3400_v46 = vmul.f32 %v4367_v13, %v6656_v34  ;;  %v3399_v21 = vmul.f32 %v4367_v13, %v6654_v55  ;;  %v4016_v34 = vld.sshfl [vmem:[%s6886_s27] sm:$0x11 pattern:$0x75316420]  ;;  %v6887_v55 = vld [vmem:[#allocation7_spill] sm:$0xff] }
 0xa01   :  { %v3558_v9 = vsub.s32 %v3555_v20, %v6887_v55  ;;  %v3542_v57 = vadd.s32 8, %v6887_v55  ;;  %v3544_v52 = vadd.s32 24, %v6887_v55  ;;  %v3634_v43 = vadd.s32 4294967288, %v3629_v48 }
 0xa02   :  { %3523 = vmatprep.mubr.f32.mxu0 %v3414_v58  ;;  %v3408_v8 = vmul.f32 %v3400_v46, %v6569_v17  ;;  %v3407_v42 = vmul.f32 %v3399_v21, %v6566_v63  ;;  %v3552_v17 = vcombine.high %v4016_v34, %v4016_v34  ;;  %v3641_v50 = vadd.s32 4294967280, %v3629_v48 }
 0xa03   :  { %3524 = vmatmul.mubr.f32.gmra.mxu0 %v3413_v4  ;;  %v3559_v63 = vrot.slane %v4016_v34, %v3558_v9  ;;  %v3648_v25 = vadd.s32 4294967272, %v3629_v48  ;;  %v3637_v58 = vsub.s32 %v3634_v43, %v6887_v55  ;;  %v3632_v46 = vsub.s32 %v3629_v48, %v6887_v55 }
 0xa04   :  { %v3416_v39 = vadd.f32 %v3408_v8, %v6581_v45  ;;  %v3415_v19 = vadd.f32 %v3407_v42, %v6578_v47  ;;  %v3566_v16 = vrot.slane %v3552_v17, %v3558_v9  ;;  %v3644_v4 = vsub.s32 %v3641_v50, %v6887_v55 }
 0xa05   :  { %v3570_v7 = vrot.slane %v3559_v63, %v6884_v3  ;;  %v3651_v21 = vsub.s32 %v3648_v25, %v6887_v55  ;;  %vm3692_vm14 = vcmp.eq.s32.totalorder %v3629_v48, 1  ;;  %vm3691_vm15 = vcmp.eq.s32.totalorder %v3629_v48, 0 }
 0xa06   :  { %3528 = vmatprep.mubr.f32.mxu0 %v3416_v39  ;;  %v3574_v59 = vrot.slane %v3566_v16, %v6884_v3  ;;  %v3543_v3 = vadd.s32 16, %v6887_v55 }
 0xa07   :  { %3529 = vmatmul.mubr.f32.gmra.mxu0 %v3415_v19  ;;  %vm3575_vm1 = vcmp.eq.s32.totalorder %v6887_v55, %v3570_v7  ;;  %vm3576_vm3 = vcmp.eq.s32.totalorder %v3542_v57, %v3570_v7  ;;  %vm3578_vm7 = vcmp.eq.s32.totalorder %v3544_v52, %v3570_v7 }
 0xa08   :  { %vm3579_vm2 = vcmp.eq.s32.totalorder %v6887_v55, %v3574_v59  ;;  %vm3580_vm4 = vcmp.eq.s32.totalorder %v3542_v57, %v3574_v59  ;;  %vm3577_vm5 = vcmp.eq.s32.totalorder %v3543_v3, %v3570_v7  ;;  %vm3581_vm6 = vcmp.eq.s32.totalorder %v3543_v3, %v3574_v59 }
 0xa09   :  { %vm3582_vm8 = vcmp.eq.s32.totalorder %v3544_v52, %v3574_v59 }
 0xabb   :  { %v4049_v31 = vpop.f32.mrf.mxu0 }
 0xabd   :  { %v4050_v35 = vpop.f32.mrf.mxu0 }
 0xabe   :  { %v4051_v36 = vadd.f32 %v4050_v35, %v4049_v31 }
 0xabf   :  { %v4052_v45 = vpop.f32.mrf.mxu0 }
 0xac0   :  { %3535 = vst.msk [vmem:[#allocation2] sm:$0xff] %vm3534_vm0, %v4051_v36 }
 0xac1   :  { %v4053_v47 = vpop.f32.mrf.mxu0 }
 0xac2   :  { %v4054_v61 = vadd.f32 %v4053_v47, %v4052_v45 }
 0xac3   :  { %v4055_v24 = vpop.f32.mrf.mxu0 }
 0xac4   :  { %3536 = vst.msk [vmem:[#allocation2 + $0x8] sm:$0xff] %vm3534_vm0, %v4054_v61  ;;  %v3682_v61 = vstv %s6812_s17 }
 0xac5   :  { %v4056_v11 = vpop.f32.mrf.mxu0 }
 0xac6   :  { %v4057_v12 = vadd.f32 %v4056_v11, %v4055_v24 }
 0xac7   :  { %v4058_v44 = vpop.f32.mrf.mxu0  ;;  %v3583_v51 = vld [vmem:[#allocation2] sm:$0xff] }
 0xac8   :  { %3537 = vst.msk [vmem:[#allocation2 + $0x10] sm:$0xff] %vm3534_vm0, %v4057_v12  ;;  %v3587_v22 = vsel %vm3575_vm1, %v3583_v51, 0.0  ;;  %v3591_v18 = vsel %vm3579_vm2, %v3583_v51, 0.0 }
 0xac9   :  { %v4059_v23 = vpop.f32.mrf.mxu0  ;;  %v3596_v49 = vsel %vm3534_vm0, %v3587_v22, 0.0  ;;  %v3608_v41 = vsel %vm3534_vm0, %v3591_v18, 0.0 }
 0xaca   :  { %v4060_v62 = vadd.f32 %v4059_v23, %v4058_v44  ;;  %3597 = vadd.xlane.f32.xlu0 %v3596_v49 }
 0xacb   :  { %v3584_v26 = vld [vmem:[#allocation2 + $0x8] sm:$0xff] }
 0xacc   :  { %3538 = vst.msk [vmem:[#allocation2 + $0x18] sm:$0xff] %vm3534_vm0, %v4060_v62  ;;  %v3588_v10 = vsel %vm3576_vm3, %v3584_v26, 0.0  ;;  %v3592_v60 = vsel %vm3580_vm4, %v3584_v26, 0.0 }
 0xacd   :  { %v3599_v27 = vsel %vm3534_vm0, %v3588_v10, 0.0  ;;  %v3611_v2 = vsel %vm3534_vm0, %v3592_v60, 0.0 }
 0xace   :  { %3600 = vadd.xlane.f32.xlu1 %v3599_v27  ;;  %3609 = vadd.xlane.f32.xlu0 %v3608_v41 }
 0xacf   :  { %v3585_v53 = vld [vmem:[#allocation2 + $0x10] sm:$0xff] }
 0xad0   :  { %v3589_v33 = vsel %vm3577_vm5, %v3585_v53, 0.0  ;;  %v3593_v29 = vsel %vm3581_vm6, %v3585_v53, 0.0 }
 0xad1   :  { %v3602_v54 = vsel %vm3534_vm0, %v3589_v33, 0.0  ;;  %v3614_v6 = vsel %vm3534_vm0, %v3593_v29, 0.0 }
 0xad2   :  { %3612 = vadd.xlane.f32.xlu1 %v3611_v2  ;;  %3603 = vadd.xlane.f32.xlu0 %v3602_v54 }
 0xad3   :  { %v3586_v15 = vld [vmem:[#allocation2 + $0x18] sm:$0xff] }
 0xad4   :  { %v3590_v40 = vsel %vm3578_vm7, %v3586_v15, 0.0  ;;  %v3594_v5 = vsel %vm3582_vm8, %v3586_v15, 0.0 }
 0xad5   :  { %v3605_v1 = vsel %vm3534_vm0, %v3590_v40, 0.0  ;;  %v3617_v37 = vsel %vm3534_vm0, %v3594_v5, 0.0 }
 0xad6   :  { %3615 = vadd.xlane.f32.xlu1 %v3614_v6  ;;  %3606 = vadd.xlane.f32.xlu0 %v3605_v1 }
 0xada   :  { %3618 = vadd.xlane.f32.xlu1 %v3617_v37 }
 0xb53   :  { %v3598_v14 = vpop.xlane.xlu0 %3597 }
 0xb54   :  { %v3633_v20 = vrot.slane %v3598_v14, %v3632_v46 }
 0xb57   :  { %v3601_v56 = vpop.xlane.xlu1 %3600  ;;  %v3610_v28 = vpop.xlane.xlu0 %3609 }
 0xb58   :  { %v3638_v39 = vrot.slane %v3601_v56, %v3637_v58  ;;  %v3658_v34 = vrot.slane %v3610_v28, %v3632_v46 }
 0xb5a   :  { %v3640_v17 = vsel %vm3639_vm9, %v3638_v39, %v3633_v20 }
 0xb5b   :  { %v3613_v38 = vpop.xlane.xlu1 %3612  ;;  %v3604_v13 = vpop.xlane.xlu0 %3603 }
 0xb5c   :  { %v3662_v19 = vrot.slane %v3613_v38, %v3637_v58  ;;  %v3645_v32 = vrot.slane %v3604_v13, %v3644_v4 }
 0xb5e   :  { %v3663_v35 = vsel %vm3639_vm9, %v3662_v19, %v3658_v34  ;;  %v3647_v36 = vsel %vm3646_vm10, %v3645_v32, %v3640_v17 }
 0xb5f   :  { %v3616_v8 = vpop.xlane.xlu1 %3615  ;;  %v3607_v42 = vpop.xlane.xlu0 %3606 }
 0xb60   :  { %v3667_v30 = vrot.slane %v3616_v8, %v3644_v4  ;;  %v3652_v9 = vrot.slane %v3607_v42, %v3651_v21 }
 0xb62   :  { %v3668_v45 = vsel %vm3646_vm10, %v3667_v30, %v3663_v35  ;;  %v3654_v55 = vsel %vm3653_vm11, %v3652_v9, %v3647_v36 }
 0xb63   :  { %v3619_v31 = vpop.xlane.xlu1 %3618 }
 0xb64   :  { %v3672_v63 = vrot.slane %v3619_v31, %v3651_v21 }
 0xb66   :  { %v3673_v16 = vsel %vm3653_vm11, %v3672_v63, %v3668_v45 }
 0xb67   :  { %v3675_v47 = vsel %vm3674_vm12, %v3673_v16, %v3654_v55 }
 0xb68   :  { %v3678_v7 = vsel %vm3677_vm13, %v3675_v47, 0.0 }
 0xb69   :  { %3679 = vadd.xlane.f32.xlu0 %v3678_v7 }
 0xbf2   :  { %v3680_v24 = vpop.xlane.xlu0 %3679 }
 0xbf3   :  { %v3683_v59 = vadd.f32 %v3682_v61, %v3680_v24 }
 0xbf5   :  { %v3684_v11 = vsub.f32 0.0, %v3683_v59 }
 0xbf7   :  { %v3685_v57 = vmul.f32 1.442695, %v3684_v11 }
 0xbf9   :  { %4368 = vpow2.f32 %v3685_v57 }
 0xc06   :  { %v4369_v12 = vpop.eup %4368 }
 0xc07   :  { %v3687_v44 = vadd.f32 1.0, %v4369_v12 }
 0xc09   :  { %4370 = vrcp.f32 %v3687_v44 }
 0xc16   :  { %v4371_v51 = vpop.eup %4370 }
 0xc17   :  { %v3690_v22 = vsub.f32 1.0, %v4371_v51  ;;  %v3693_v23 = vsel %vm3692_vm14, %v4371_v51, 0.0 }
 0xc19   :  { %v3694_v49 = vsel %vm3691_vm15, %v3690_v22, %v3693_v23 }
 0xc1a   :  { %3695 = vst [vmem:[#allocation4] sm:$0x3] %v3694_v49 }
 0xc1b   :  { %4383 = shalt.err (!%p4380_p4)
}
 0xc1c   :  { %3705 = dma.vmem_to_hbm [thread:$0]  %s3703_s30, 32, %s6813_s18, [#allocation5]  }
 0xc1d   :  { %4392 = dma.done.wait [#allocation5], 32  }
 0xc1e   :  { %4393 = vsyncadd [#allocation5], 4294967264 }
 0xc1f   :  { %3709 = vsyncpa [#allocation5], 1 }

</bundles_post_ra>
